<compile_context>
chip_gen: v7x
topology: tpu7x:2x2x1
jax: 0.10.0
libtpu: 0.0.40
codegen_flags: <defaults>
</compile_context>

<pallas_src>
import functools

import jax
import jax.numpy as jnp
from jax import lax
from jax.experimental import pallas as pl
from jax.experimental.pallas import tpu as pltpu


def _leaky_relu(x, slope=0.1):
    return jnp.where(x > 0, x, slope * x)


def _zero_border(pad_ref, nb, h, w, c):
    """Zero only the 1-pixel halo of a (nb, h+2, w+2, c) padded scratch.

    The interior is fully overwritten every grid step, so a full zero-fill of
    the scratch would only burn vector-store slots.
    """
    zrow = jnp.zeros((nb, 1, w + 2, c), pad_ref.dtype)
    zcol = jnp.zeros((nb, h, 1, c), pad_ref.dtype)
    pad_ref[:, pl.ds(0, 1), :, :] = zrow
    pad_ref[:, pl.ds(h + 1, 1), :, :] = zrow
    pad_ref[:, pl.ds(1, h), pl.ds(0, 1), :] = zcol
    pad_ref[:, pl.ds(1, h), pl.ds(w + 1, 1), :] = zcol


def basic_block_kernel(x_ref, w1_ref, s1_ref, b1_ref, w2_ref, s2_ref, b2_ref,
                       out_ref, xpad_ref, mid_ref,
                       *, nb, H, W, stride, is_maxpool):
    """Fused BasicBlock forward for `nb` batch elements.

    x_ref   : (nb, H, W, Cin)   unpadded NHWC input (also the residual)
    w*_ref  : (9, Cin, Cout)    bf16 3x3 conv weights, one (Cin,Cout) tap each
    s*/b*   : (1, C)            folded BatchNorm scale / shift (f32)
    out_ref : (nb, Hp, Wp, Cout)
    xpad_ref, mid_ref : f32 VMEM scratches (nb, H+2, W+2, C) — zero-padded
                        input / intermediate for the two convolutions.
    """
    Cin = x_ref.shape[-1]
    Cmid = w1_ref.shape[-1]
    Cout = w2_ref.shape[-1]
    M = nb * H * W
    cdt = w1_ref.dtype            # MXU operand dtype (bf16); accum stays f32

    # ---- stage input into the zero-padded scratch (padding done in-kernel,
    #      so the wrapper never materializes a padded copy in HBM)
    _zero_border(xpad_ref, nb, H, W, Cin)
    xpad_ref[:, pl.ds(1, H), pl.ds(1, W), :] = x_ref[...]

    def conv3x3(src_ref, w_ref, c_out):
        # 3x3, stride 1, pad 1 as 9 shifted (M, C) x (C, c_out) MXU matmuls,
        # bf16 operands, f32 accumulation.
        c_in = src_ref.shape[-1]
        acc = jnp.zeros((M, c_out), jnp.float32)
        for tap in range(9):
            dy, dx = tap // 3, tap % 3
            win = src_ref[:, pl.ds(dy, H), pl.ds(dx, W), :]
            win = win.reshape(M, c_in).astype(cdt)
            acc = acc + jnp.dot(win, w_ref[tap],
                                preferred_element_type=jnp.float32)
        return acc

    # ---- conv1 -> folded BN1 -> LeakyReLU (f32 elementwise)
    y = conv3x3(xpad_ref, w1_ref, Cmid)
    y = _leaky_relu(y * s1_ref[...] + b1_ref[...])

    # ---- stage the intermediate into its padded scratch for conv2
    _zero_border(mid_ref, nb, H, W, Cmid)
    mid_ref[:, pl.ds(1, H), pl.ds(1, W), :] = y.reshape(nb, H, W, Cmid)

    # ---- conv2 -> folded BN2 -> identity residual -> LeakyReLU
    z = conv3x3(mid_ref, w2_ref, Cout)
    z = z * s2_ref[...] + b2_ref[...]
    # downsample=None -> identity residual (wrapper asserts Cin == Cout).
    z = z + x_ref[...].reshape(M, Cin)
    z = _leaky_relu(z)

    # ---- MaxPool2d(stride): non-overlapping stride x stride window
    if is_maxpool and stride > 1:
        S = stride
        p = z.reshape(nb, H, W // S, S, Cout)
        p = jnp.max(p, axis=3)                         # pool along W
        p = p.reshape(nb, H // S, S, W // S, Cout)
        p = jnp.max(p, axis=2)                         # pool along H
        out_ref[...] = p.astype(out_ref.dtype)
    else:
        out_ref[...] = z.reshape(nb, H, W, Cout).astype(out_ref.dtype)


def basic_block_forward(x_nchw, params, *, stride=1, is_maxpool=True, eps=1e-5,
                        batch_block=1, compute_dtype=jnp.bfloat16):
    """BasicBlock forward.  x_nchw: (N, Cin, H, W) float32, returns NCHW."""
    N, Cin, H, W = x_nchw.shape
    w1 = params["conv1_w"]          # (Cmid, Cin, 3, 3)  torch OIHW
    w2 = params["conv2_w"]          # (Cout, Cmid, 3, 3)
    Cmid, Cout = w1.shape[0], w2.shape[0]
    assert w1.shape[1] == Cin and w2.shape[1] == Cmid
    # downsample=None implies an identity residual; fail loudly otherwise.
    assert Cin == Cout, "identity residual requires inplanes == planes"
    pool = is_maxpool and stride > 1
    if pool:
        assert H % stride == 0 and W % stride == 0
    assert N % batch_block == 0
    nb = batch_block
    Hp, Wp = (H // stride, W // stride) if pool else (H, W)

    # NCHW -> NHWC (channels on the TPU lane dim).  No jnp.pad here — the
    # zero padding is done inside the kernel via a VMEM staging scratch.
    x = jnp.transpose(x_nchw, (0, 2, 3, 1)).astype(jnp.float32)

    # OIHW -> (kh*kw, Cin, Cout): one (Cin, Cout) MXU tap weight per offset,
    # stored in the matmul dtype (bf16 feeds the MXU at full rate).
    w1_taps = jnp.transpose(w1, (2, 3, 1, 0)).reshape(9, Cin, Cmid)
    w2_taps = jnp.transpose(w2, (2, 3, 1, 0)).reshape(9, Cmid, Cout)
    w1_taps = w1_taps.astype(compute_dtype)
    w2_taps = w2_taps.astype(compute_dtype)

    def fold_bn(gamma, beta, mean, var):
        scale = gamma / jnp.sqrt(var + eps)
        shift = beta - mean * scale
        return (scale.reshape(1, -1).astype(jnp.float32),
                shift.reshape(1, -1).astype(jnp.float32))

    s1, b1 = fold_bn(params["bn1_gamma"], params["bn1_beta"],
                     params["bn1_mean"], params["bn1_var"])
    s2, b2 = fold_bn(params["bn2_gamma"], params["bn2_beta"],
                     params["bn2_mean"], params["bn2_var"])

    kernel = functools.partial(basic_block_kernel, nb=nb, H=H, W=W,
                               stride=stride, is_maxpool=is_maxpool)

    # Rough VMEM budget: double-buffered x/out blocks + padded f32 scratches
    # + bf16 tap weights + live f32 accumulator.  Floor 16 MiB, cap 32 MiB so
    # it stays safely within v7x's 64 MiB physical VMEM.
    wsz = jnp.dtype(compute_dtype).itemsize
    est = (2 * nb * H * W * Cin * 4
           + 2 * nb * Hp * Wp * Cout * 4
           + nb * (H + 2) * (W + 2) * (Cin + Cmid) * 4
           + 2 * 9 * (Cin * Cmid + Cmid * Cout) * wsz
           + 2 * nb * H * W * max(Cmid, Cout) * 4)
    vmem_limit = int(min(32 * 1024 * 1024, max(16 * 1024 * 1024, 2 * est)))

    out_nhwc = pl.pallas_call(
        kernel,
        out_shape=jax.ShapeDtypeStruct((N, Hp, Wp, Cout), jnp.float32),
        grid=(N // nb,),
        in_specs=[
            pl.BlockSpec((nb, H, W, Cin), lambda n: (n, 0, 0, 0)),
            pl.BlockSpec((9, Cin, Cmid), lambda n: (0, 0, 0)),
            pl.BlockSpec((1, Cmid), lambda n: (0, 0)),
            pl.BlockSpec((1, Cmid), lambda n: (0, 0)),
            pl.BlockSpec((9, Cmid, Cout), lambda n: (0, 0, 0)),
            pl.BlockSpec((1, Cout), lambda n: (0, 0)),
            pl.BlockSpec((1, Cout), lambda n: (0, 0)),
        ],
        out_specs=pl.BlockSpec((nb, Hp, Wp, Cout), lambda n: (n, 0, 0, 0)),
        scratch_shapes=[
            pltpu.VMEM((nb, H + 2, W + 2, Cin), jnp.float32),   # padded input
            pltpu.VMEM((nb, H + 2, W + 2, Cmid), jnp.float32),  # padded mid
        ],
        compiler_params=pltpu.CompilerParams(
            dimension_semantics=("parallel",),
            vmem_limit_bytes=vmem_limit),
    )(x, w1_taps, s1, b1, w2_taps, s2, b2)

    return jnp.transpose(out_nhwc, (0, 3, 1, 2))   # back to NCHW


# ------------------------- pure-JAX reference -------------------------------
def basic_block_reference(x, params, *, stride=1, is_maxpool=True, eps=1e-5):
    def conv3x3(t, w):
        return lax.conv_general_dilated(
            t, w, window_strides=(1, 1), padding=((1, 1), (1, 1)),
            dimension_numbers=("NCHW", "OIHW", "NCHW"))

    def bn(t, g, b, m, v):
        g, b = g.reshape(1, -1, 1, 1), b.reshape(1, -1, 1, 1)
        m, v = m.reshape(1, -1, 1, 1), v.reshape(1, -1, 1, 1)
        return (t - m) / jnp.sqrt(v + eps) * g + b

    lrelu = lambda t: jnp.where(t > 0, t, 0.1 * t)
    out = lrelu(bn(conv3x3(x, params["conv1_w"]),
                   params["bn1_gamma"], params["bn1_beta"],
                   params["bn1_mean"], params["bn1_var"]))
    out = bn(conv3x3(out, params["conv2_w"]),
             params["bn2_gamma"], params["bn2_beta"],
             params["bn2_mean"], params["bn2_var"])
    out = lrelu(out + x)
    if is_maxpool and stride > 1:
        out = lax.reduce_window(out, -jnp.inf, lax.max,
                                (1, 1, stride, stride), (1, 1, stride, stride),
                                "VALID")
    return out


if __name__ == "__main__":
    N, inplanes, planes, H, W = 2, 8, 8, 16, 16
    stride, is_maxpool = 2, True

    key = jax.random.PRNGKey(0)
    ks = jax.random.split(key, 11)
    params = {
        "conv1_w":   0.1 * jax.random.normal(ks[0], (planes, inplanes, 3, 3), jnp.float32),
        "bn1_gamma": 1.0 + 0.1 * jax.random.normal(ks[1], (planes,), jnp.float32),
        "bn1_beta":  0.1 * jax.random.normal(ks[2], (planes,), jnp.float32),
        "bn1_mean":  0.1 * jax.random.normal(ks[3], (planes,), jnp.float32),
        "bn1_var":   0.5 + jax.random.uniform(ks[4], (planes,), jnp.float32),
        "conv2_w":   0.1 * jax.random.normal(ks[5], (planes, planes, 3, 3), jnp.float32),
        "bn2_gamma": 1.0 + 0.1 * jax.random.normal(ks[6], (planes,), jnp.float32),
        "bn2_beta":  0.1 * jax.random.normal(ks[7], (planes,), jnp.float32),
        "bn2_mean":  0.1 * jax.random.normal(ks[8], (planes,), jnp.float32),
        "bn2_var":   0.5 + jax.random.uniform(ks[9], (planes,), jnp.float32),
    }
    x = jax.random.normal(ks[10], (N, inplanes, H, W), jnp.float32)

    out = basic_block_forward(x, params, stride=stride, is_maxpool=is_maxpool,
                              batch_block=1)
    out = jax.block_until_ready(out)

    ref = basic_block_reference(x, params, stride=stride, is_maxpool=is_maxpool)
    ref = jax.block_until_ready(ref)

    assert out.shape == (N, planes, H // stride, W // stride), out.shape
    # bf16 MXU operands with f32 accumulation -> slightly looser tolerance
    # against the pure-f32 reference.
    assert bool(jnp.allclose(out, ref, atol=5e-2, rtol=5e-2)), \
        f"max abs diff {float(jnp.max(jnp.abs(out - ref)))}"

    print("KERNEL_OK")
</pallas_src>

<mosaic_0001>
module attributes {stable_mosaic.version = 11 : i64} {
  func.func @basic_block_kernel(%arg0: i32, %arg1: memref<1x16x16x8xf32, #tpu.memory_space<vmem>>, %arg2: memref<9x8x8xbf16, #tpu.memory_space<vmem>>, %arg3: memref<1x8xf32, #tpu.memory_space<vmem>>, %arg4: memref<1x8xf32, #tpu.memory_space<vmem>>, %arg5: memref<9x8x8xbf16, #tpu.memory_space<vmem>>, %arg6: memref<1x8xf32, #tpu.memory_space<vmem>>, %arg7: memref<1x8xf32, #tpu.memory_space<vmem>>, %arg8: memref<1x8x8x8xf32, #tpu.memory_space<vmem>>, %arg9: memref<1x18x18x8xf32, #tpu.memory_space<vmem>>, %arg10: memref<1x18x18x8xf32, #tpu.memory_space<vmem>>) attributes {dimension_semantics = [#tpu.dimension_semantics<parallel>], iteration_bounds = array<i64: 2>, scalar_prefetch = 0 : i64, scratch_operands = 2 : i64, tpu.core_type = #tpu.core_type<tc>, window_params = [{transform_indices = @transform_0, window_bounds = array<i64: 1, 16, 16, 8>}, {pipeline_mode = #tpu.pipeline_mode<synchronous>, transform_indices = @transform_1, window_bounds = array<i64: 9, 8, 8>}, {pipeline_mode = #tpu.pipeline_mode<synchronous>, transform_indices = @transform_2, window_bounds = array<i64: 1, 8>}, {pipeline_mode = #tpu.pipeline_mode<synchronous>, transform_indices = @transform_3, window_bounds = array<i64: 1, 8>}, {pipeline_mode = #tpu.pipeline_mode<synchronous>, transform_indices = @transform_4, window_bounds = array<i64: 9, 8, 8>}, {pipeline_mode = #tpu.pipeline_mode<synchronous>, transform_indices = @transform_5, window_bounds = array<i64: 1, 8>}, {pipeline_mode = #tpu.pipeline_mode<synchronous>, transform_indices = @transform_6, window_bounds = array<i64: 1, 8>}, {transform_indices = @transform_7, window_bounds = array<i64: 1, 8, 8, 8>}]} {
    %cst = arith.constant 0.000000e+00 : f32
    %0 = vector.broadcast %cst : f32 to vector<1x1x18x8xf32>
    %cst_0 = arith.constant 0.000000e+00 : f32
    %1 = vector.broadcast %cst_0 : f32 to vector<1x16x1x8xf32>
    %c0 = arith.constant 0 : index
    %c0_1 = arith.constant 0 : index
    %c0_2 = arith.constant 0 : index
    %c0_3 = arith.constant 0 : index
    %2 = vector.load %arg9[%c0, %c0_1, %c0_2, %c0_3] : memref<1x18x18x8xf32, #tpu.memory_space<vmem>>, vector<1x1x18x8xf32>
    tpu.vector_store %arg9[%c0, %c0_1, %c0_2, %c0_3], %0 {strides = array<i32>} : memref<1x18x18x8xf32, #tpu.memory_space<vmem>>, vector<1x1x18x8xf32>,
    %c0_4 = arith.constant 0 : index
    %c17 = arith.constant 17 : index
    %c0_5 = arith.constant 0 : index
    %c0_6 = arith.constant 0 : index
    %3 = vector.load %arg9[%c0_4, %c17, %c0_5, %c0_6] : memref<1x18x18x8xf32, #tpu.memory_space<vmem>>, vector<1x1x18x8xf32>
    tpu.vector_store %arg9[%c0_4, %c17, %c0_5, %c0_6], %0 {strides = array<i32>} : memref<1x18x18x8xf32, #tpu.memory_space<vmem>>, vector<1x1x18x8xf32>,
    %c0_7 = arith.constant 0 : index
    %c1 = arith.constant 1 : index
    %c0_8 = arith.constant 0 : index
    %c0_9 = arith.constant 0 : index
    %4 = vector.load %arg9[%c0_7, %c1, %c0_8, %c0_9] : memref<1x18x18x8xf32, #tpu.memory_space<vmem>>, vector<1x16x1x8xf32>
    tpu.vector_store %arg9[%c0_7, %c1, %c0_8, %c0_9], %1 {strides = array<i32>} : memref<1x18x18x8xf32, #tpu.memory_space<vmem>>, vector<1x16x1x8xf32>,
    %c0_10 = arith.constant 0 : index
    %c1_11 = arith.constant 1 : index
    %c17_12 = arith.constant 17 : index
    %c0_13 = arith.constant 0 : index
    %5 = vector.load %arg9[%c0_10, %c1_11, %c17_12, %c0_13] : memref<1x18x18x8xf32, #tpu.memory_space<vmem>>, vector<1x16x1x8xf32>
    tpu.vector_store %arg9[%c0_10, %c1_11, %c17_12, %c0_13], %1 {strides = array<i32>} : memref<1x18x18x8xf32, #tpu.memory_space<vmem>>, vector<1x16x1x8xf32>,
    %c0_14 = arith.constant 0 : index
    %c0_15 = arith.constant 0 : index
    %c0_16 = arith.constant 0 : index
    %c0_17 = arith.constant 0 : index
    %6 = vector.load %arg1[%c0_14, %c0_15, %c0_16, %c0_17] : memref<1x16x16x8xf32, #tpu.memory_space<vmem>>, vector<1x16x16x8xf32>
    %c0_18 = arith.constant 0 : index
    %c1_19 = arith.constant 1 : index
    %c1_20 = arith.constant 1 : index
    %c0_21 = arith.constant 0 : index
    %7 = vector.load %arg9[%c0_18, %c1_19, %c1_20, %c0_21] : memref<1x18x18x8xf32, #tpu.memory_space<vmem>>, vector<1x16x16x8xf32>
    tpu.vector_store %arg9[%c0_18, %c1_19, %c1_20, %c0_21], %6 {strides = array<i32>} : memref<1x18x18x8xf32, #tpu.memory_space<vmem>>, vector<1x16x16x8xf32>,
    %cst_22 = arith.constant 0.000000e+00 : f32
    %8 = vector.broadcast %cst_22 : f32 to vector<256x8xf32>
    %c0_23 = arith.constant 0 : index
    %c0_24 = arith.constant 0 : index
    %c0_25 = arith.constant 0 : index
    %c0_26 = arith.constant 0 : index
    %9 = vector.load %arg9[%c0_23, %c0_24, %c0_25, %c0_26] : memref<1x18x18x8xf32, #tpu.memory_space<vmem>>, vector<1x16x16x8xf32>
    %10 = vector.shape_cast %9 : vector<1x16x16x8xf32> to vector<256x8xf32>
    %11 = arith.truncf %10 : vector<256x8xf32> to vector<256x8xbf16>
    %c0_27 = arith.constant 0 : index
    %c0_28 = arith.constant 0 : index
    %c0_29 = arith.constant 0 : index
    %12 = vector.load %arg2[%c0_27, %c0_28, %c0_29] : memref<9x8x8xbf16, #tpu.memory_space<vmem>>, vector<1x8x8xbf16>
    %13 = vector.shape_cast %12 : vector<1x8x8xbf16> to vector<8x8xbf16>
    %cst_30 = arith.constant dense<0.000000e+00> : vector<256x8xf32>
    %14 = tpu.matmul %11, %13, %cst_30 {dimension_numbers = #tpu.dot_dimension_numbers<[1], [0], [0], [1], [0, 0, 1, 1], [], []>} : vector<256x8xbf16>, vector<8x8xbf16>, vector<256x8xf32> -> vector<256x8xf32>
    %15 = arith.addf %8, %14 : vector<256x8xf32>
    %c0_31 = arith.constant 0 : index
    %c0_32 = arith.constant 0 : index
    %c1_33 = arith.constant 1 : index
    %c0_34 = arith.constant 0 : index
    %16 = vector.load %arg9[%c0_31, %c0_32, %c1_33, %c0_34] : memref<1x18x18x8xf32, #tpu.memory_space<vmem>>, vector<1x16x16x8xf32>
    %17 = vector.shape_cast %16 : vector<1x16x16x8xf32> to vector<256x8xf32>
    %18 = arith.truncf %17 : vector<256x8xf32> to vector<256x8xbf16>
    %c1_35 = arith.constant 1 : index
    %c0_36 = arith.constant 0 : index
    %c0_37 = arith.constant 0 : index
    %19 = vector.load %arg2[%c1_35, %c0_36, %c0_37] : memref<9x8x8xbf16, #tpu.memory_space<vmem>>, vector<1x8x8xbf16>
    %20 = vector.shape_cast %19 : vector<1x8x8xbf16> to vector<8x8xbf16>
    %cst_38 = arith.constant dense<0.000000e+00> : vector<256x8xf32>
    %21 = tpu.matmul %18, %20, %cst_38 {dimension_numbers = #tpu.dot_dimension_numbers<[1], [0], [0], [1], [0, 0, 1, 1], [], []>} : vector<256x8xbf16>, vector<8x8xbf16>, vector<256x8xf32> -> vector<256x8xf32>
    %22 = arith.addf %15, %21 : vector<256x8xf32>
    %c0_39 = arith.constant 0 : index
    %c0_40 = arith.constant 0 : index
    %c2 = arith.constant 2 : index
    %c0_41 = arith.constant 0 : index
    %23 = vector.load %arg9[%c0_39, %c0_40, %c2, %c0_41] : memref<1x18x18x8xf32, #tpu.memory_space<vmem>>, vector<1x16x16x8xf32>
    %24 = vector.shape_cast %23 : vector<1x16x16x8xf32> to vector<256x8xf32>
    %25 = arith.truncf %24 : vector<256x8xf32> to vector<256x8xbf16>
    %c2_42 = arith.constant 2 : index
    %c0_43 = arith.constant 0 : index
    %c0_44 = arith.constant 0 : index
    %26 = vector.load %arg2[%c2_42, %c0_43, %c0_44] : memref<9x8x8xbf16, #tpu.memory_space<vmem>>, vector<1x8x8xbf16>
    %27 = vector.shape_cast %26 : vector<1x8x8xbf16> to vector<8x8xbf16>
    %cst_45 = arith.constant dense<0.000000e+00> : vector<256x8xf32>
    %28 = tpu.matmul %25, %27, %cst_45 {dimension_numbers = #tpu.dot_dimension_numbers<[1], [0], [0], [1], [0, 0, 1, 1], [], []>} : vector<256x8xbf16>, vector<8x8xbf16>, vector<256x8xf32> -> vector<256x8xf32>
    %29 = arith.addf %22, %28 : vector<256x8xf32>
    %c0_46 = arith.constant 0 : index
    %c1_47 = arith.constant 1 : index
    %c0_48 = arith.constant 0 : index
    %c0_49 = arith.constant 0 : index
    %30 = vector.load %arg9[%c0_46, %c1_47, %c0_48, %c0_49] : memref<1x18x18x8xf32, #tpu.memory_space<vmem>>, vector<1x16x16x8xf32>
    %31 = vector.shape_cast %30 : vector<1x16x16x8xf32> to vector<256x8xf32>
    %32 = arith.truncf %31 : vector<256x8xf32> to vector<256x8xbf16>
    %c3 = arith.constant 3 : index
    %c0_50 = arith.constant 0 : index
    %c0_51 = arith.constant 0 : index
    %33 = vector.load %arg2[%c3, %c0_50, %c0_51] : memref<9x8x8xbf16, #tpu.memory_space<vmem>>, vector<1x8x8xbf16>
    %34 = vector.shape_cast %33 : vector<1x8x8xbf16> to vector<8x8xbf16>
    %cst_52 = arith.constant dense<0.000000e+00> : vector<256x8xf32>
    %35 = tpu.matmul %32, %34, %cst_52 {dimension_numbers = #tpu.dot_dimension_numbers<[1], [0], [0], [1], [0, 0, 1, 1], [], []>} : vector<256x8xbf16>, vector<8x8xbf16>, vector<256x8xf32> -> vector<256x8xf32>
    %36 = arith.addf %29, %35 : vector<256x8xf32>
    %c0_53 = arith.constant 0 : index
    %c1_54 = arith.constant 1 : index
    %c1_55 = arith.constant 1 : index
    %c0_56 = arith.constant 0 : index
    %37 = vector.load %arg9[%c0_53, %c1_54, %c1_55, %c0_56] : memref<1x18x18x8xf32, #tpu.memory_space<vmem>>, vector<1x16x16x8xf32>
    %38 = vector.shape_cast %37 : vector<1x16x16x8xf32> to vector<256x8xf32>
    %39 = arith.truncf %38 : vector<256x8xf32> to vector<256x8xbf16>
    %c4 = arith.constant 4 : index
    %c0_57 = arith.constant 0 : index
    %c0_58 = arith.constant 0 : index
    %40 = vector.load %arg2[%c4, %c0_57, %c0_58] : memref<9x8x8xbf16, #tpu.memory_space<vmem>>, vector<1x8x8xbf16>
    %41 = vector.shape_cast %40 : vector<1x8x8xbf16> to vector<8x8xbf16>
    %cst_59 = arith.constant dense<0.000000e+00> : vector<256x8xf32>
    %42 = tpu.matmul %39, %41, %cst_59 {dimension_numbers = #tpu.dot_dimension_numbers<[1], [0], [0], [1], [0, 0, 1, 1], [], []>} : vector<256x8xbf16>, vector<8x8xbf16>, vector<256x8xf32> -> vector<256x8xf32>
    %43 = arith.addf %36, %42 : vector<256x8xf32>
    %c0_60 = arith.constant 0 : index
    %c1_61 = arith.constant 1 : index
    %c2_62 = arith.constant 2 : index
    %c0_63 = arith.constant 0 : index
    %44 = vector.load %arg9[%c0_60, %c1_61, %c2_62, %c0_63] : memref<1x18x18x8xf32, #tpu.memory_space<vmem>>, vector<1x16x16x8xf32>
    %45 = vector.shape_cast %44 : vector<1x16x16x8xf32> to vector<256x8xf32>
    %46 = arith.truncf %45 : vector<256x8xf32> to vector<256x8xbf16>
    %c5 = arith.constant 5 : index
    %c0_64 = arith.constant 0 : index
    %c0_65 = arith.constant 0 : index
    %47 = vector.load %arg2[%c5, %c0_64, %c0_65] : memref<9x8x8xbf16, #tpu.memory_space<vmem>>, vector<1x8x8xbf16>
    %48 = vector.shape_cast %47 : vector<1x8x8xbf16> to vector<8x8xbf16>
    %cst_66 = arith.constant dense<0.000000e+00> : vector<256x8xf32>
    %49 = tpu.matmul %46, %48, %cst_66 {dimension_numbers = #tpu.dot_dimension_numbers<[1], [0], [0], [1], [0, 0, 1, 1], [], []>} : vector<256x8xbf16>, vector<8x8xbf16>, vector<256x8xf32> -> vector<256x8xf32>
    %50 = arith.addf %43, %49 : vector<256x8xf32>
    %c0_67 = arith.constant 0 : index
    %c2_68 = arith.constant 2 : index
    %c0_69 = arith.constant 0 : index
    %c0_70 = arith.constant 0 : index
    %51 = vector.load %arg9[%c0_67, %c2_68, %c0_69, %c0_70] : memref<1x18x18x8xf32, #tpu.memory_space<vmem>>, vector<1x16x16x8xf32>
    %52 = vector.shape_cast %51 : vector<1x16x16x8xf32> to vector<256x8xf32>
    %53 = arith.truncf %52 : vector<256x8xf32> to vector<256x8xbf16>
    %c6 = arith.constant 6 : index
    %c0_71 = arith.constant 0 : index
    %c0_72 = arith.constant 0 : index
    %54 = vector.load %arg2[%c6, %c0_71, %c0_72] : memref<9x8x8xbf16, #tpu.memory_space<vmem>>, vector<1x8x8xbf16>
    %55 = vector.shape_cast %54 : vector<1x8x8xbf16> to vector<8x8xbf16>
    %cst_73 = arith.constant dense<0.000000e+00> : vector<256x8xf32>
    %56 = tpu.matmul %53, %55, %cst_73 {dimension_numbers = #tpu.dot_dimension_numbers<[1], [0], [0], [1], [0, 0, 1, 1], [], []>} : vector<256x8xbf16>, vector<8x8xbf16>, vector<256x8xf32> -> vector<256x8xf32>
    %57 = arith.addf %50, %56 : vector<256x8xf32>
    %c0_74 = arith.constant 0 : index
    %c2_75 = arith.constant 2 : index
    %c1_76 = arith.constant 1 : index
    %c0_77 = arith.constant 0 : index
    %58 = vector.load %arg9[%c0_74, %c2_75, %c1_76, %c0_77] : memref<1x18x18x8xf32, #tpu.memory_space<vmem>>, vector<1x16x16x8xf32>
    %59 = vector.shape_cast %58 : vector<1x16x16x8xf32> to vector<256x8xf32>
    %60 = arith.truncf %59 : vector<256x8xf32> to vector<256x8xbf16>
    %c7 = arith.constant 7 : index
    %c0_78 = arith.constant 0 : index
    %c0_79 = arith.constant 0 : index
    %61 = vector.load %arg2[%c7, %c0_78, %c0_79] : memref<9x8x8xbf16, #tpu.memory_space<vmem>>, vector<1x8x8xbf16>
    %62 = vector.shape_cast %61 : vector<1x8x8xbf16> to vector<8x8xbf16>
    %cst_80 = arith.constant dense<0.000000e+00> : vector<256x8xf32>
    %63 = tpu.matmul %60, %62, %cst_80 {dimension_numbers = #tpu.dot_dimension_numbers<[1], [0], [0], [1], [0, 0, 1, 1], [], []>} : vector<256x8xbf16>, vector<8x8xbf16>, vector<256x8xf32> -> vector<256x8xf32>
    %64 = arith.addf %57, %63 : vector<256x8xf32>
    %c0_81 = arith.constant 0 : index
    %c2_82 = arith.constant 2 : index
    %c2_83 = arith.constant 2 : index
    %c0_84 = arith.constant 0 : index
    %65 = vector.load %arg9[%c0_81, %c2_82, %c2_83, %c0_84] : memref<1x18x18x8xf32, #tpu.memory_space<vmem>>, vector<1x16x16x8xf32>
    %66 = vector.shape_cast %65 : vector<1x16x16x8xf32> to vector<256x8xf32>
    %67 = arith.truncf %66 : vector<256x8xf32> to vector<256x8xbf16>
    %c8 = arith.constant 8 : index
    %c0_85 = arith.constant 0 : index
    %c0_86 = arith.constant 0 : index
    %68 = vector.load %arg2[%c8, %c0_85, %c0_86] : memref<9x8x8xbf16, #tpu.memory_space<vmem>>, vector<1x8x8xbf16>
    %69 = vector.shape_cast %68 : vector<1x8x8xbf16> to vector<8x8xbf16>
    %cst_87 = arith.constant dense<0.000000e+00> : vector<256x8xf32>
    %70 = tpu.matmul %67, %69, %cst_87 {dimension_numbers = #tpu.dot_dimension_numbers<[1], [0], [0], [1], [0, 0, 1, 1], [], []>} : vector<256x8xbf16>, vector<8x8xbf16>, vector<256x8xf32> -> vector<256x8xf32>
    %71 = arith.addf %64, %70 : vector<256x8xf32>
    %c0_88 = arith.constant 0 : index
    %c0_89 = arith.constant 0 : index
    %72 = vector.load %arg3[%c0_88, %c0_89] : memref<1x8xf32, #tpu.memory_space<vmem>>, vector<1x8xf32>
    %73 = vector.broadcast %72 : vector<1x8xf32> to vector<256x8xf32>
    %74 = arith.mulf %71, %73 : vector<256x8xf32>
    %c0_90 = arith.constant 0 : index
    %c0_91 = arith.constant 0 : index
    %75 = vector.load %arg4[%c0_90, %c0_91] : memref<1x8xf32, #tpu.memory_space<vmem>>, vector<1x8xf32>
    %76 = vector.broadcast %75 : vector<1x8xf32> to vector<256x8xf32>
    %77 = arith.addf %74, %76 : vector<256x8xf32>
    %cst_92 = arith.constant 0.000000e+00 : f32
    %78 = vector.broadcast %cst_92 : f32 to vector<256x8xf32>
    %79 = arith.cmpf ogt, %77, %78 : vector<256x8xf32>
    %cst_93 = arith.constant 1.000000e-01 : f32
    %80 = vector.broadcast %cst_93 : f32 to vector<256x8xf32>
    %81 = arith.mulf %80, %77 : vector<256x8xf32>
    %82 = arith.select %79, %77, %81 : vector<256x8xi1>, vector<256x8xf32>
    %cst_94 = arith.constant 0.000000e+00 : f32
    %83 = vector.broadcast %cst_94 : f32 to vector<1x1x18x8xf32>
    %cst_95 = arith.constant 0.000000e+00 : f32
    %84 = vector.broadcast %cst_95 : f32 to vector<1x16x1x8xf32>
    %c0_96 = arith.constant 0 : index
    %c0_97 = arith.constant 0 : index
    %c0_98 = arith.constant 0 : index
    %c0_99 = arith.constant 0 : index
    %85 = vector.load %arg10[%c0_96, %c0_97, %c0_98, %c0_99] : memref<1x18x18x8xf32, #tpu.memory_space<vmem>>, vector<1x1x18x8xf32>
    tpu.vector_store %arg10[%c0_96, %c0_97, %c0_98, %c0_99], %83 {strides = array<i32>} : memref<1x18x18x8xf32, #tpu.memory_space<vmem>>, vector<1x1x18x8xf32>,
    %c0_100 = arith.constant 0 : index
    %c17_101 = arith.constant 17 : index
    %c0_102 = arith.constant 0 : index
    %c0_103 = arith.constant 0 : index
    %86 = vector.load %arg10[%c0_100, %c17_101, %c0_102, %c0_103] : memref<1x18x18x8xf32, #tpu.memory_space<vmem>>, vector<1x1x18x8xf32>
    tpu.vector_store %arg10[%c0_100, %c17_101, %c0_102, %c0_103], %83 {strides = array<i32>} : memref<1x18x18x8xf32, #tpu.memory_space<vmem>>, vector<1x1x18x8xf32>,
    %c0_104 = arith.constant 0 : index
    %c1_105 = arith.constant 1 : index
    %c0_106 = arith.constant 0 : index
    %c0_107 = arith.constant 0 : index
    %87 = vector.load %arg10[%c0_104, %c1_105, %c0_106, %c0_107] : memref<1x18x18x8xf32, #tpu.memory_space<vmem>>, vector<1x16x1x8xf32>
    tpu.vector_store %arg10[%c0_104, %c1_105, %c0_106, %c0_107], %84 {strides = array<i32>} : memref<1x18x18x8xf32, #tpu.memory_space<vmem>>, vector<1x16x1x8xf32>,
    %c0_108 = arith.constant 0 : index
    %c1_109 = arith.constant 1 : index
    %c17_110 = arith.constant 17 : index
    %c0_111 = arith.constant 0 : index
    %88 = vector.load %arg10[%c0_108, %c1_109, %c17_110, %c0_111] : memref<1x18x18x8xf32, #tpu.memory_space<vmem>>, vector<1x16x1x8xf32>
    tpu.vector_store %arg10[%c0_108, %c1_109, %c17_110, %c0_111], %84 {strides = array<i32>} : memref<1x18x18x8xf32, #tpu.memory_space<vmem>>, vector<1x16x1x8xf32>,
    %89 = vector.shape_cast %82 : vector<256x8xf32> to vector<1x16x16x8xf32>
    %c0_112 = arith.constant 0 : index
    %c1_113 = arith.constant 1 : index
    %c1_114 = arith.constant 1 : index
    %c0_115 = arith.constant 0 : index
    %90 = vector.load %arg10[%c0_112, %c1_113, %c1_114, %c0_115] : memref<1x18x18x8xf32, #tpu.memory_space<vmem>>, vector<1x16x16x8xf32>
    tpu.vector_store %arg10[%c0_112, %c1_113, %c1_114, %c0_115], %89 {strides = array<i32>} : memref<1x18x18x8xf32, #tpu.memory_space<vmem>>, vector<1x16x16x8xf32>,
    %cst_116 = arith.constant 0.000000e+00 : f32
    %91 = vector.broadcast %cst_116 : f32 to vector<256x8xf32>
    %c0_117 = arith.constant 0 : index
    %c0_118 = arith.constant 0 : index
    %c0_119 = arith.constant 0 : index
    %c0_120 = arith.constant 0 : index
    %92 = vector.load %arg10[%c0_117, %c0_118, %c0_119, %c0_120] : memref<1x18x18x8xf32, #tpu.memory_space<vmem>>, vector<1x16x16x8xf32>
    %93 = vector.shape_cast %92 : vector<1x16x16x8xf32> to vector<256x8xf32>
    %94 = arith.truncf %93 : vector<256x8xf32> to vector<256x8xbf16>
    %c0_121 = arith.constant 0 : index
    %c0_122 = arith.constant 0 : index
    %c0_123 = arith.constant 0 : index
    %95 = vector.load %arg5[%c0_121, %c0_122, %c0_123] : memref<9x8x8xbf16, #tpu.memory_space<vmem>>, vector<1x8x8xbf16>
    %96 = vector.shape_cast %95 : vector<1x8x8xbf16> to vector<8x8xbf16>
    %cst_124 = arith.constant dense<0.000000e+00> : vector<256x8xf32>
    %97 = tpu.matmul %94, %96, %cst_124 {dimension_numbers = #tpu.dot_dimension_numbers<[1], [0], [0], [1], [0, 0, 1, 1], [], []>} : vector<256x8xbf16>, vector<8x8xbf16>, vector<256x8xf32> -> vector<256x8xf32>
    %98 = arith.addf %91, %97 : vector<256x8xf32>
    %c0_125 = arith.constant 0 : index
    %c0_126 = arith.constant 0 : index
    %c1_127 = arith.constant 1 : index
    %c0_128 = arith.constant 0 : index
    %99 = vector.load %arg10[%c0_125, %c0_126, %c1_127, %c0_128] : memref<1x18x18x8xf32, #tpu.memory_space<vmem>>, vector<1x16x16x8xf32>
    %100 = vector.shape_cast %99 : vector<1x16x16x8xf32> to vector<256x8xf32>
    %101 = arith.truncf %100 : vector<256x8xf32> to vector<256x8xbf16>
    %c1_129 = arith.constant 1 : index
    %c0_130 = arith.constant 0 : index
    %c0_131 = arith.constant 0 : index
    %102 = vector.load %arg5[%c1_129, %c0_130, %c0_131] : memref<9x8x8xbf16, #tpu.memory_space<vmem>>, vector<1x8x8xbf16>
    %103 = vector.shape_cast %102 : vector<1x8x8xbf16> to vector<8x8xbf16>
    %cst_132 = arith.constant dense<0.000000e+00> : vector<256x8xf32>
    %104 = tpu.matmul %101, %103, %cst_132 {dimension_numbers = #tpu.dot_dimension_numbers<[1], [0], [0], [1], [0, 0, 1, 1], [], []>} : vector<256x8xbf16>, vector<8x8xbf16>, vector<256x8xf32> -> vector<256x8xf32>
    %105 = arith.addf %98, %104 : vector<256x8xf32>
    %c0_133 = arith.constant 0 : index
    %c0_134 = arith.constant 0 : index
    %c2_135 = arith.constant 2 : index
    %c0_136 = arith.constant 0 : index
    %106 = vector.load %arg10[%c0_133, %c0_134, %c2_135, %c0_136] : memref<1x18x18x8xf32, #tpu.memory_space<vmem>>, vector<1x16x16x8xf32>
    %107 = vector.shape_cast %106 : vector<1x16x16x8xf32> to vector<256x8xf32>
    %108 = arith.truncf %107 : vector<256x8xf32> to vector<256x8xbf16>
    %c2_137 = arith.constant 2 : index
    %c0_138 = arith.constant 0 : index
    %c0_139 = arith.constant 0 : index
    %109 = vector.load %arg5[%c2_137, %c0_138, %c0_139] : memref<9x8x8xbf16, #tpu.memory_space<vmem>>, vector<1x8x8xbf16>
    %110 = vector.shape_cast %109 : vector<1x8x8xbf16> to vector<8x8xbf16>
    %cst_140 = arith.constant dense<0.000000e+00> : vector<256x8xf32>
    %111 = tpu.matmul %108, %110, %cst_140 {dimension_numbers = #tpu.dot_dimension_numbers<[1], [0], [0], [1], [0, 0, 1, 1], [], []>} : vector<256x8xbf16>, vector<8x8xbf16>, vector<256x8xf32> -> vector<256x8xf32>
    %112 = arith.addf %105, %111 : vector<256x8xf32>
    %c0_141 = arith.constant 0 : index
    %c1_142 = arith.constant 1 : index
    %c0_143 = arith.constant 0 : index
    %c0_144 = arith.constant 0 : index
    %113 = vector.load %arg10[%c0_141, %c1_142, %c0_143, %c0_144] : memref<1x18x18x8xf32, #tpu.memory_space<vmem>>, vector<1x16x16x8xf32>
    %114 = vector.shape_cast %113 : vector<1x16x16x8xf32> to vector<256x8xf32>
    %115 = arith.truncf %114 : vector<256x8xf32> to vector<256x8xbf16>
    %c3_145 = arith.constant 3 : index
    %c0_146 = arith.constant 0 : index
    %c0_147 = arith.constant 0 : index
    %116 = vector.load %arg5[%c3_145, %c0_146, %c0_147] : memref<9x8x8xbf16, #tpu.memory_space<vmem>>, vector<1x8x8xbf16>
    %117 = vector.shape_cast %116 : vector<1x8x8xbf16> to vector<8x8xbf16>
    %cst_148 = arith.constant dense<0.000000e+00> : vector<256x8xf32>
    %118 = tpu.matmul %115, %117, %cst_148 {dimension_numbers = #tpu.dot_dimension_numbers<[1], [0], [0], [1], [0, 0, 1, 1], [], []>} : vector<256x8xbf16>, vector<8x8xbf16>, vector<256x8xf32> -> vector<256x8xf32>
    %119 = arith.addf %112, %118 : vector<256x8xf32>
    %c0_149 = arith.constant 0 : index
    %c1_150 = arith.constant 1 : index
    %c1_151 = arith.constant 1 : index
    %c0_152 = arith.constant 0 : index
    %120 = vector.load %arg10[%c0_149, %c1_150, %c1_151, %c0_152] : memref<1x18x18x8xf32, #tpu.memory_space<vmem>>, vector<1x16x16x8xf32>
    %121 = vector.shape_cast %120 : vector<1x16x16x8xf32> to vector<256x8xf32>
    %122 = arith.truncf %121 : vector<256x8xf32> to vector<256x8xbf16>
    %c4_153 = arith.constant 4 : index
    %c0_154 = arith.constant 0 : index
    %c0_155 = arith.constant 0 : index
    %123 = vector.load %arg5[%c4_153, %c0_154, %c0_155] : memref<9x8x8xbf16, #tpu.memory_space<vmem>>, vector<1x8x8xbf16>
    %124 = vector.shape_cast %123 : vector<1x8x8xbf16> to vector<8x8xbf16>
    %cst_156 = arith.constant dense<0.000000e+00> : vector<256x8xf32>
    %125 = tpu.matmul %122, %124, %cst_156 {dimension_numbers = #tpu.dot_dimension_numbers<[1], [0], [0], [1], [0, 0, 1, 1], [], []>} : vector<256x8xbf16>, vector<8x8xbf16>, vector<256x8xf32> -> vector<256x8xf32>
    %126 = arith.addf %119, %125 : vector<256x8xf32>
    %c0_157 = arith.constant 0 : index
    %c1_158 = arith.constant 1 : index
    %c2_159 = arith.constant 2 : index
    %c0_160 = arith.constant 0 : index
    %127 = vector.load %arg10[%c0_157, %c1_158, %c2_159, %c0_160] : memref<1x18x18x8xf32, #tpu.memory_space<vmem>>, vector<1x16x16x8xf32>
    %128 = vector.shape_cast %127 : vector<1x16x16x8xf32> to vector<256x8xf32>
    %129 = arith.truncf %128 : vector<256x8xf32> to vector<256x8xbf16>
    %c5_161 = arith.constant 5 : index
    %c0_162 = arith.constant 0 : index
    %c0_163 = arith.constant 0 : index
    %130 = vector.load %arg5[%c5_161, %c0_162, %c0_163] : memref<9x8x8xbf16, #tpu.memory_space<vmem>>, vector<1x8x8xbf16>
    %131 = vector.shape_cast %130 : vector<1x8x8xbf16> to vector<8x8xbf16>
    %cst_164 = arith.constant dense<0.000000e+00> : vector<256x8xf32>
    %132 = tpu.matmul %129, %131, %cst_164 {dimension_numbers = #tpu.dot_dimension_numbers<[1], [0], [0], [1], [0, 0, 1, 1], [], []>} : vector<256x8xbf16>, vector<8x8xbf16>, vector<256x8xf32> -> vector<256x8xf32>
    %133 = arith.addf %126, %132 : vector<256x8xf32>
    %c0_165 = arith.constant 0 : index
    %c2_166 = arith.constant 2 : index
    %c0_167 = arith.constant 0 : index
    %c0_168 = arith.constant 0 : index
    %134 = vector.load %arg10[%c0_165, %c2_166, %c0_167, %c0_168] : memref<1x18x18x8xf32, #tpu.memory_space<vmem>>, vector<1x16x16x8xf32>
    %135 = vector.shape_cast %134 : vector<1x16x16x8xf32> to vector<256x8xf32>
    %136 = arith.truncf %135 : vector<256x8xf32> to vector<256x8xbf16>
    %c6_169 = arith.constant 6 : index
    %c0_170 = arith.constant 0 : index
    %c0_171 = arith.constant 0 : index
    %137 = vector.load %arg5[%c6_169, %c0_170, %c0_171] : memref<9x8x8xbf16, #tpu.memory_space<vmem>>, vector<1x8x8xbf16>
    %138 = vector.shape_cast %137 : vector<1x8x8xbf16> to vector<8x8xbf16>
    %cst_172 = arith.constant dense<0.000000e+00> : vector<256x8xf32>
    %139 = tpu.matmul %136, %138, %cst_172 {dimension_numbers = #tpu.dot_dimension_numbers<[1], [0], [0], [1], [0, 0, 1, 1], [], []>} : vector<256x8xbf16>, vector<8x8xbf16>, vector<256x8xf32> -> vector<256x8xf32>
    %140 = arith.addf %133, %139 : vector<256x8xf32>
    %c0_173 = arith.constant 0 : index
    %c2_174 = arith.constant 2 : index
    %c1_175 = arith.constant 1 : index
    %c0_176 = arith.constant 0 : index
    %141 = vector.load %arg10[%c0_173, %c2_174, %c1_175, %c0_176] : memref<1x18x18x8xf32, #tpu.memory_space<vmem>>, vector<1x16x16x8xf32>
    %142 = vector.shape_cast %141 : vector<1x16x16x8xf32> to vector<256x8xf32>
    %143 = arith.truncf %142 : vector<256x8xf32> to vector<256x8xbf16>
    %c7_177 = arith.constant 7 : index
    %c0_178 = arith.constant 0 : index
    %c0_179 = arith.constant 0 : index
    %144 = vector.load %arg5[%c7_177, %c0_178, %c0_179] : memref<9x8x8xbf16, #tpu.memory_space<vmem>>, vector<1x8x8xbf16>
    %145 = vector.shape_cast %144 : vector<1x8x8xbf16> to vector<8x8xbf16>
    %cst_180 = arith.constant dense<0.000000e+00> : vector<256x8xf32>
    %146 = tpu.matmul %143, %145, %cst_180 {dimension_numbers = #tpu.dot_dimension_numbers<[1], [0], [0], [1], [0, 0, 1, 1], [], []>} : vector<256x8xbf16>, vector<8x8xbf16>, vector<256x8xf32> -> vector<256x8xf32>
    %147 = arith.addf %140, %146 : vector<256x8xf32>
    %c0_181 = arith.constant 0 : index
    %c2_182 = arith.constant 2 : index
    %c2_183 = arith.constant 2 : index
    %c0_184 = arith.constant 0 : index
    %148 = vector.load %arg10[%c0_181, %c2_182, %c2_183, %c0_184] : memref<1x18x18x8xf32, #tpu.memory_space<vmem>>, vector<1x16x16x8xf32>
    %149 = vector.shape_cast %148 : vector<1x16x16x8xf32> to vector<256x8xf32>
    %150 = arith.truncf %149 : vector<256x8xf32> to vector<256x8xbf16>
    %c8_185 = arith.constant 8 : index
    %c0_186 = arith.constant 0 : index
    %c0_187 = arith.constant 0 : index
    %151 = vector.load %arg5[%c8_185, %c0_186, %c0_187] : memref<9x8x8xbf16, #tpu.memory_space<vmem>>, vector<1x8x8xbf16>
    %152 = vector.shape_cast %151 : vector<1x8x8xbf16> to vector<8x8xbf16>
    %cst_188 = arith.constant dense<0.000000e+00> : vector<256x8xf32>
    %153 = tpu.matmul %150, %152, %cst_188 {dimension_numbers = #tpu.dot_dimension_numbers<[1], [0], [0], [1], [0, 0, 1, 1], [], []>} : vector<256x8xbf16>, vector<8x8xbf16>, vector<256x8xf32> -> vector<256x8xf32>
    %154 = arith.addf %147, %153 : vector<256x8xf32>
    %c0_189 = arith.constant 0 : index
    %c0_190 = arith.constant 0 : index
    %155 = vector.load %arg6[%c0_189, %c0_190] : memref<1x8xf32, #tpu.memory_space<vmem>>, vector<1x8xf32>
    %156 = vector.broadcast %155 : vector<1x8xf32> to vector<256x8xf32>
    %157 = arith.mulf %154, %156 : vector<256x8xf32>
    %c0_191 = arith.constant 0 : index
    %c0_192 = arith.constant 0 : index
    %158 = vector.load %arg7[%c0_191, %c0_192] : memref<1x8xf32, #tpu.memory_space<vmem>>, vector<1x8xf32>
    %159 = vector.broadcast %158 : vector<1x8xf32> to vector<256x8xf32>
    %160 = arith.addf %157, %159 : vector<256x8xf32>
    %c0_193 = arith.constant 0 : index
    %c0_194 = arith.constant 0 : index
    %c0_195 = arith.constant 0 : index
    %c0_196 = arith.constant 0 : index
    %161 = vector.load %arg1[%c0_193, %c0_194, %c0_195, %c0_196] : memref<1x16x16x8xf32, #tpu.memory_space<vmem>>, vector<1x16x16x8xf32>
    %162 = vector.shape_cast %161 : vector<1x16x16x8xf32> to vector<256x8xf32>
    %163 = arith.addf %160, %162 : vector<256x8xf32>
    %cst_197 = arith.constant 0.000000e+00 : f32
    %164 = vector.broadcast %cst_197 : f32 to vector<256x8xf32>
    %165 = arith.cmpf ogt, %163, %164 : vector<256x8xf32>
    %cst_198 = arith.constant 1.000000e-01 : f32
    %166 = vector.broadcast %cst_198 : f32 to vector<256x8xf32>
    %167 = arith.mulf %166, %163 : vector<256x8xf32>
    %168 = arith.select %165, %163, %167 : vector<256x8xi1>, vector<256x8xf32>
    %169 = vector.shape_cast %168 : vector<256x8xf32> to vector<1x16x8x2x8xf32>
    %cst_199 = arith.constant dense<0xFF800000> : vector<1x16x8x8xf32>
    %170 = vector.multi_reduction <maximumf>, %169, %cst_199 [3] : vector<1x16x8x2x8xf32> to vector<1x16x8x8xf32>
    %171 = vector.shape_cast %170 : vector<1x16x8x8xf32> to vector<1x8x2x8x8xf32>
    %cst_200 = arith.constant dense<0xFF800000> : vector<1x8x8x8xf32>
    %172 = vector.multi_reduction <maximumf>, %171, %cst_200 [2] : vector<1x8x2x8x8xf32> to vector<1x8x8x8xf32>
    %c0_201 = arith.constant 0 : index
    %c0_202 = arith.constant 0 : index
    %c0_203 = arith.constant 0 : index
    %c0_204 = arith.constant 0 : index
    %173 = vector.load %arg8[%c0_201, %c0_202, %c0_203, %c0_204] : memref<1x8x8x8xf32, #tpu.memory_space<vmem>>, vector<1x8x8x8xf32>
    tpu.vector_store %arg8[%c0_201, %c0_202, %c0_203, %c0_204], %172 {strides = array<i32>} : memref<1x8x8x8xf32, #tpu.memory_space<vmem>>, vector<1x8x8x8xf32>,
    return
  }
  func.func @transform_0(%arg0: i32) -> (i32, i32, i32, i32) {
    %c0_i32 = arith.constant 0 : i32
    %c0_i32_0 = arith.constant 0 : i32
    %c0_i32_1 = arith.constant 0 : i32
    %c0_i32_2 = arith.constant 0 : i32
    return %arg0, %c0_i32, %c0_i32_0, %c0_i32_1 : i32, i32, i32, i32
  }
  func.func @transform_1(%arg0: i32) -> (i32, i32, i32) {
    %c0_i32 = arith.constant 0 : i32
    %c0_i32_0 = arith.constant 0 : i32
    %c0_i32_1 = arith.constant 0 : i32
    %c0_i32_2 = arith.constant 0 : i32
    return %c0_i32, %c0_i32_0, %c0_i32_1 : i32, i32, i32
  }
  func.func @transform_2(%arg0: i32) -> (i32, i32) {
    %c0_i32 = arith.constant 0 : i32
    %c0_i32_0 = arith.constant 0 : i32
    %c0_i32_1 = arith.constant 0 : i32
    return %c0_i32, %c0_i32_0 : i32, i32
  }
  func.func @transform_3(%arg0: i32) -> (i32, i32) {
    %c0_i32 = arith.constant 0 : i32
    %c0_i32_0 = arith.constant 0 : i32
    %c0_i32_1 = arith.constant 0 : i32
    return %c0_i32, %c0_i32_0 : i32, i32
  }
  func.func @transform_4(%arg0: i32) -> (i32, i32, i32) {
    %c0_i32 = arith.constant 0 : i32
    %c0_i32_0 = arith.constant 0 : i32
    %c0_i32_1 = arith.constant 0 : i32
    %c0_i32_2 = arith.constant 0 : i32
    return %c0_i32, %c0_i32_0, %c0_i32_1 : i32, i32, i32
  }
  func.func @transform_5(%arg0: i32) -> (i32, i32) {
    %c0_i32 = arith.constant 0 : i32
    %c0_i32_0 = arith.constant 0 : i32
    %c0_i32_1 = arith.constant 0 : i32
    return %c0_i32, %c0_i32_0 : i32, i32
  }
  func.func @transform_6(%arg0: i32) -> (i32, i32) {
    %c0_i32 = arith.constant 0 : i32
    %c0_i32_0 = arith.constant 0 : i32
    %c0_i32_1 = arith.constant 0 : i32
    return %c0_i32, %c0_i32_0 : i32, i32
  }
  func.func @transform_7(%arg0: i32) -> (i32, i32, i32, i32) {
    %c0_i32 = arith.constant 0 : i32
    %c0_i32_0 = arith.constant 0 : i32
    %c0_i32_1 = arith.constant 0 : i32
    %c0_i32_2 = arith.constant 0 : i32
    return %arg0, %c0_i32, %c0_i32_0, %c0_i32_1 : i32, i32, i32, i32
  }
}

</mosaic_0001>

<bundles_post_ra>
// kernel: tpu_custom_call.1
= control target key start
LH: loop header
LB: loop body
LE: loop exit
PB: predicated region body
PF: predicated region fallthrough
CT: control target
= control target key end

     0   :  { %12 = vsyncpa [#allocation5], 0  ;;  %s12077_s0 = inlined_call_operand.vmem [shape: f32[2,16,16,8], index: 0, kind: input, shape index: {}]   ;;  %s12078_s1 = inlined_call_operand.vmem [shape: bf16[9,8,8], index: 1, kind: input, shape index: {}]   ;;  %s12079_s2 = inlined_call_operand.vmem [shape: f32[1,8], index: 2, kind: input, shape index: {}]   ;;  %s12080_s3 = inlined_call_operand.vmem [shape: f32[1,8], index: 3, kind: input, shape index: {}]   ;;  %s12081_s4 = inlined_call_operand.vmem [shape: bf16[9,8,8], index: 4, kind: input, shape index: {}]   ;;  %s12082_s5 = inlined_call_operand.vmem [shape: f32[1,8], index: 5, kind: input, shape index: {}]   ;;  %s12083_s6 = inlined_call_operand.vmem [shape: f32[1,8], index: 6, kind: input, shape index: {}]   ;;  %s12084_s7 = inlined_call_operand.hbm [shape: f32[2,8,8,8], index: 7, kind: output, shape index: {}]  }
   0x1   :  { %14 = vsyncpa [#allocation5 + $0x1], 0  ;;  %s9971_s24 = smov 0   ;;  %s9973_s25 = smov 0  }
   0x2   :  { %s9975_s26 = smov 0   ;;  %s9977_s27 = smov 0  }
   0x3 LB: > { %s9992_s28 = sadd.s32 4294967295, %s9924_s27   ;;  %s8045_s29 = sadd.s32 4294967294, %s9924_s27   ;;  %s9924_s27 = sphi %s9977_s27, %s12090_s27   ;;  %s9920_s26 = sphi %s9975_s26, %s12089_s26   ;;  %s9916_s25 = sphi %s9973_s25, %s12088_s25   ;;  %s9912_s24 = sphi %s9971_s24, %s12087_s24  }
   0x4   : > { %s9996_s30 = sadd.s32 1, %s9924_s27   ;;  %s179_s8 = sadd.s32 1, %s9920_s26 }
   0x5   : > { %s176_s9 = ssub.s32 %s9924_s27, %s9996_s30  ;;  %p189_p0 = scmp.ne.s32.totalorder %s9920_s26, %s9916_s25 }
   0x6   : > { %p177_p1 = scmp.eq.s32.totalorder %s176_s9, 0  ;;  %p190_p2 = scmp.eq.s32.totalorder %s9992_s28, 1 }
   0x7   : > { %p195_p3 = scmp.ne.s32.totalorder %s9916_s25, %s9912_s24  ;;  %p196_p4 = scmp.eq.s32.totalorder %s8045_s29, 1 }
   0x8   : > { %s10007_s10 = scalar_select %p177_p1, %s9920_s26, %s179_s8  }
   0x9   : > { %p10009_p5 = por %p190_p2, %p189_p0  ;;  %p10013_p6 = por %p196_p4, %p195_p3 }
   0xa   : > { %p8048_p7 = scmp.ge.s32.totalorder %s9924_s27, 1  ;;  %p240_p8 = scmp.lt.s32.totalorder %s9924_s27, 3 }
   0xc   : > { %p241_p9 = pnand %p8048_p7, %p240_p8 }
   0xd   : > { %v8052_v0 = vld [vmem:[%s12078_s1 + $0x4] sm:$0xf] (!%p241_p9)  ;;  %vm532_vm0 = vcmask (!%p241_p9), 1043456   ;;  %vm278_vm1 = vcmask (!%p241_p9), 64512   ;;  %vm281_vm2 = vcmask (!%p241_p9), 58368   ;;  %v9926_v2 = vmov (!%p241_p9), 0.0  }
   0xe   : > { %244 = sbr.rel (%p241_p9) target bundleno = 1930 (0x78a), region = 48  ;;  %9797 = vmatprep.subr.msk.bf16.mxu0 (!%p241_p9), %vm532_vm0, %v8052_v0  ;;  %v534_v1 = vsel (!%p241_p9), %vm532_vm0, %v8052_v0, 0  ;;  %279 = vst.msk [vmem:[#allocation2] sm:$0xff] (!%p241_p9), %vm278_vm1, %v9926_v2  ;;  %280 = vst.msk [vmem:[#allocation2 + $0x8] sm:$0xff] (!%p241_p9), %vm278_vm1, %v9926_v2  ;;  %v10051_v3 = vld [vmem:[%s12078_s1] sm:$0xf] (!%p241_p9) }
   0xf   : > { %282 = vst.msk [vmem:[#allocation2 + $0x10] sm:$0x3] (!%p241_p9), %vm281_vm2, %v9926_v2  ;;  %286 = vst.msk [vmem:[#allocation2 + $0x1a8] sm:$0x3] (!%p241_p9), %vm281_vm2, %v9926_v2  ;;  %p272_p10 = scmp.lt.s32.totalorder (!%p241_p9), %s9992_s28, 1  ;;  %8674 = vmatpush3.bf16.msra.mxu0 (!%p241_p9), %v534_v1  ;;  %vm288_vm3 = vcmask (!%p241_p9), 57344  }
  0x10   : > { %284 = vst.msk [vmem:[#allocation2 + $0x198] sm:$0xff] (!%p241_p9), %vm278_vm1, %v9926_v2  ;;  %285 = vst.msk [vmem:[#allocation2 + $0x1a0] sm:$0xff] (!%p241_p9), %vm278_vm1, %v9926_v2  ;;  %9798 = vmatprep.subr.msk.bf16.mxu0 (!%p241_p9), %vm532_vm0, %v10051_v3  ;;  %v746_v33 = vsel (!%p241_p9), %vm532_vm0, %v10051_v3, 0  ;;  %v10251_v38 = vld [vmem:[%s12078_s1 + $0x8] sm:$0xf] (!%p241_p9)  ;;  %s269_s23 = sand.u32 (!%p241_p9), 1, %s9916_s25  }
  0x11   : > { %3142 = vst.msk [vmem:[#allocation3] sm:$0xff] (!%p241_p9), %vm278_vm1, %v9926_v2  ;;  %3143 = vst.msk [vmem:[#allocation3 + $0x8] sm:$0xff] (!%p241_p9), %vm278_vm1, %v9926_v2  ;;  %s8049_s29 = sshll.u32 (!%p241_p9), %s269_s23, 6  ;;  %s9928_s14 = smov (!%p241_p9), [#allocation4]  }
  0x12   : > { %3144 = vst.msk [vmem:[#allocation3 + $0x10] sm:$0x3] (!%p241_p9), %vm281_vm2, %v9926_v2  ;;  %3148 = vst.msk [vmem:[#allocation3 + $0x1a8] sm:$0x3] (!%p241_p9), %vm281_vm2, %v9926_v2  ;;  %s11345_s8 = scalar_lea.vmem (!%p241_p9), [#allocation4], %s8049_s29  ;;  %s9866_s15 = sshll.u32 (!%p241_p9), %s9928_s14, 4  ;;  %s9867_s15 = int_to_ptr.vmem [resolvable:$false] %s9866_s15 }
  0x13   : > { %3146 = vst.msk [vmem:[#allocation3 + $0x198] sm:$0xff] (!%p241_p9), %vm278_vm1, %v9926_v2  ;;  %3147 = vst.msk [vmem:[#allocation3 + $0x1a0] sm:$0xff] (!%p241_p9), %vm278_vm1, %v9926_v2  ;;  %s7983_s20 = sshll.u32 (!%p241_p9), %s11345_s8, 4  ;;  %s9868_s16 = scalar_lea.vmem (!%p241_p9), %s9867_s15, 2048  ;;  %s12028_s20 = int_to_ptr.vmem [resolvable:$true] %s7983_s20 }
  0x14   : > { %289 = vst.msk [vmem:[#allocation2 + $0x18] sm:$0x1] (!%p241_p9), %vm288_vm3, %v9926_v2  ;;  %290 = vst.msk [vmem:[#allocation2 + $0x30] sm:$0x1] (!%p241_p9), %vm288_vm3, %v9926_v2  ;;  %s9862_s13 = scalar_lea.vmem (!%p241_p9), %s12028_s20, 1024  ;;  %p9869_p0 = scmp.lt.s32.totalorder (!%p241_p9), %s12028_s20, %s9867_s15 }
  0x15   : > { %s10057_s17 = scalar_select %p272_p10, %s9992_s28, 1  ;;  %291 = vst.msk [vmem:[#allocation2 + $0x48] sm:$0x1] %vm288_vm3, %v9926_v2  ;;  %292 = vst.msk [vmem:[#allocation2 + $0x60] sm:$0x1] %vm288_vm3, %v9926_v2  ;;  %v434_v7 = vld [vmem:[#allocation2 + $0x1] sm:$0xff] }
  0x16   : > { %293 = vst.msk [vmem:[#allocation2 + $0x78] sm:$0x1] %vm288_vm3, %v9926_v2  ;;  %294 = vst.msk [vmem:[#allocation2 + $0x90] sm:$0x1] %vm288_vm3, %v9926_v2  ;;  %v435_v8 = vld [vmem:[#allocation2 + $0x9] sm:$0xff]  ;;  %p9863_p11 = scmp.ne.s32.totalorder %s12028_s20, %s9862_s13  ;;  %p9870_p1 = scmp.lt.s32.totalorder %s9868_s16, %s9862_s13 }
  0x17   : > { %295 = vst.msk [vmem:[#allocation2 + $0xa8] sm:$0x1] %vm288_vm3, %v9926_v2  ;;  %296 = vst.msk [vmem:[#allocation2 + $0xc0] sm:$0x1] %vm288_vm3, %v9926_v2  ;;  %s8365_s18 = sshll.u32 %s10057_s17, 8  ;;  %v466_v10 = vpack.c.bf16 %v435_v8, %v434_v7 }
  0x18   : > { %297 = vst.msk [vmem:[#allocation2 + $0xd8] sm:$0x1] %vm288_vm3, %v9926_v2  ;;  %298 = vst.msk [vmem:[#allocation2 + $0xf0] sm:$0x1] %vm288_vm3, %v9926_v2  ;;  %s10191_s21 = scalar_lea.vmem %s12077_s0, %s8365_s18  ;;  %p9864_p12 = pnand %p9863_p11, %p10009_p5 }
  0x19   : > { %299 = vst.msk [vmem:[#allocation2 + $0x108] sm:$0x1] %vm288_vm3, %v9926_v2  ;;  %300 = vst.msk [vmem:[#allocation2 + $0x120] sm:$0x1] %vm288_vm3, %v9926_v2  ;;  %v321_v4 = vld [vmem:[%s10191_s21] sm:$0xff]  ;;  %v322_v5 = vld [vmem:[%s10191_s21 + $0x8] sm:$0xff]  ;;  %8675 = vmatprep.mubr.msk.bf16.mxu0 %vm278_vm1, %v466_v10  ;;  %p9871_p2 = por %p9870_p1, %p9869_p0 }
  0x1a   : > { %301 = vst.msk [vmem:[#allocation2 + $0x138] sm:$0x1] %vm288_vm3, %v9926_v2  ;;  %302 = vst.msk [vmem:[#allocation2 + $0x150] sm:$0x1] %vm288_vm3, %v9926_v2  ;;  %v323_v6 = vld [vmem:[%s10191_s21 + $0x10] sm:$0xff]  ;;  %v324_v9 = vld [vmem:[%s10191_s21 + $0x18] sm:$0xff]  ;;  %p9865_p13 = pneg %p9864_p12 }
  0x1b   : > { %303 = vst.msk [vmem:[#allocation2 + $0x168] sm:$0x1] %vm288_vm3, %v9926_v2  ;;  %304 = vst.msk [vmem:[#allocation2 + $0x180] sm:$0x1] %vm288_vm3, %v9926_v2  ;;  %v325_v11 = vld [vmem:[%s10191_s21 + $0x20] sm:$0xff]  ;;  %v326_v12 = vld [vmem:[%s10191_s21 + $0x28] sm:$0xff] }
  0x1c   : > { %305 = vst.msk [vmem:[#allocation2 + $0x29] sm:$0x1] %vm288_vm3, %v9926_v2  ;;  %306 = vst.msk [vmem:[#allocation2 + $0x41] sm:$0x1] %vm288_vm3, %v9926_v2  ;;  %v327_v13 = vld [vmem:[%s10191_s21 + $0x30] sm:$0xff]  ;;  %v328_v14 = vld [vmem:[%s10191_s21 + $0x38] sm:$0xff]  ;;  %p9872_p3 = pnand %p9871_p2, %p9865_p13 }
  0x1d   : > { %307 = vst.msk [vmem:[#allocation2 + $0x59] sm:$0x1] %vm288_vm3, %v9926_v2  ;;  %308 = vst.msk [vmem:[#allocation2 + $0x71] sm:$0x1] %vm288_vm3, %v9926_v2  ;;  %v329_v15 = vld [vmem:[%s10191_s21 + $0x40] sm:$0xff]  ;;  %v330_v16 = vld [vmem:[%s10191_s21 + $0x48] sm:$0xff] }
  0x1e   : > { %309 = vst.msk [vmem:[#allocation2 + $0x89] sm:$0x1] %vm288_vm3, %v9926_v2  ;;  %310 = vst.msk [vmem:[#allocation2 + $0xa1] sm:$0x1] %vm288_vm3, %v9926_v2  ;;  %v331_v17 = vld [vmem:[%s10191_s21 + $0x50] sm:$0xff]  ;;  %v332_v18 = vld [vmem:[%s10191_s21 + $0x58] sm:$0xff] }
  0x1f   : > { %311 = vst.msk [vmem:[#allocation2 + $0xb9] sm:$0x1] %vm288_vm3, %v9926_v2  ;;  %312 = vst.msk [vmem:[#allocation2 + $0xd1] sm:$0x1] %vm288_vm3, %v9926_v2  ;;  %v333_v19 = vld [vmem:[%s10191_s21 + $0x60] sm:$0xff]  ;;  %v334_v20 = vld [vmem:[%s10191_s21 + $0x68] sm:$0xff] }
  0x20   : > { %313 = vst.msk [vmem:[#allocation2 + $0xe9] sm:$0x1] %vm288_vm3, %v9926_v2  ;;  %314 = vst.msk [vmem:[#allocation2 + $0x101] sm:$0x1] %vm288_vm3, %v9926_v2  ;;  %v335_v21 = vld [vmem:[%s10191_s21 + $0x70] sm:$0xff]  ;;  %v336_v22 = vld [vmem:[%s10191_s21 + $0x78] sm:$0xff] }
  0x21   : > { %315 = vst.msk [vmem:[#allocation2 + $0x119] sm:$0x1] %vm288_vm3, %v9926_v2  ;;  %316 = vst.msk [vmem:[#allocation2 + $0x131] sm:$0x1] %vm288_vm3, %v9926_v2  ;;  %v337_v23 = vld [vmem:[%s10191_s21 + $0x80] sm:$0xff]  ;;  %v338_v24 = vld [vmem:[%s10191_s21 + $0x88] sm:$0xff] }
  0x22   : > { %317 = vst.msk [vmem:[#allocation2 + $0x149] sm:$0x1] %vm288_vm3, %v9926_v2  ;;  %318 = vst.msk [vmem:[#allocation2 + $0x161] sm:$0x1] %vm288_vm3, %v9926_v2  ;;  %v339_v25 = vld [vmem:[%s10191_s21 + $0x90] sm:$0xff]  ;;  %v340_v26 = vld [vmem:[%s10191_s21 + $0x98] sm:$0xff] }
  0x23   : > { %319 = vst.msk [vmem:[#allocation2 + $0x179] sm:$0x1] %vm288_vm3, %v9926_v2  ;;  %320 = vst.msk [vmem:[#allocation2 + $0x191] sm:$0x1] %vm288_vm3, %v9926_v2  ;;  %v341_v27 = vld [vmem:[%s10191_s21 + $0xa0] sm:$0xff]  ;;  %v342_v28 = vld [vmem:[%s10191_s21 + $0xa8] sm:$0xff] }
  0x24   : > { %3150 = vst.msk [vmem:[#allocation3 + $0x18] sm:$0x1] %vm288_vm3, %v9926_v2  ;;  %3151 = vst.msk [vmem:[#allocation3 + $0x30] sm:$0x1] %vm288_vm3, %v9926_v2  ;;  %v343_v35 = vld [vmem:[%s10191_s21 + $0xb0] sm:$0xff]  ;;  %v344_v36 = vld [vmem:[%s10191_s21 + $0xb8] sm:$0xff] }
  0x25   : > { %3152 = vst.msk [vmem:[#allocation3 + $0x48] sm:$0x1] %vm288_vm3, %v9926_v2  ;;  %3153 = vst.msk [vmem:[#allocation3 + $0x60] sm:$0x1] %vm288_vm3, %v9926_v2  ;;  %v345_v45 = vld [vmem:[%s10191_s21 + $0xc0] sm:$0xff]  ;;  %v346_v46 = vld [vmem:[%s10191_s21 + $0xc8] sm:$0xff] }
  0x26   : > { %3154 = vst.msk [vmem:[#allocation3 + $0x78] sm:$0x1] %vm288_vm3, %v9926_v2  ;;  %3155 = vst.msk [vmem:[#allocation3 + $0x90] sm:$0x1] %vm288_vm3, %v9926_v2  ;;  %v347_v47 = vld [vmem:[%s10191_s21 + $0xd0] sm:$0xff]  ;;  %v348_v48 = vld [vmem:[%s10191_s21 + $0xd8] sm:$0xff] }
  0x27   : > { %3156 = vst.msk [vmem:[#allocation3 + $0xa8] sm:$0x1] %vm288_vm3, %v9926_v2  ;;  %3157 = vst.msk [vmem:[#allocation3 + $0xc0] sm:$0x1] %vm288_vm3, %v9926_v2  ;;  %v349_v49 = vld [vmem:[%s10191_s21 + $0xe0] sm:$0xff]  ;;  %v350_v50 = vld [vmem:[%s10191_s21 + $0xe8] sm:$0xff] }
  0x28   : > { %3158 = vst.msk [vmem:[#allocation3 + $0xd8] sm:$0x1] %vm288_vm3, %v9926_v2  ;;  %3159 = vst.msk [vmem:[#allocation3 + $0xf0] sm:$0x1] %vm288_vm3, %v9926_v2 }
  0x29   : > { %3160 = vst.msk [vmem:[#allocation3 + $0x108] sm:$0x1] %vm288_vm3, %v9926_v2  ;;  %3161 = vst.msk [vmem:[#allocation3 + $0x120] sm:$0x1] %vm288_vm3, %v9926_v2 }
  0x2a   : > { %3162 = vst.msk [vmem:[#allocation3 + $0x138] sm:$0x1] %vm288_vm3, %v9926_v2  ;;  %3163 = vst.msk [vmem:[#allocation3 + $0x150] sm:$0x1] %vm288_vm3, %v9926_v2 }
  0x2b   : > { %3164 = vst.msk [vmem:[#allocation3 + $0x168] sm:$0x1] %vm288_vm3, %v9926_v2  ;;  %3165 = vst.msk [vmem:[#allocation3 + $0x180] sm:$0x1] %vm288_vm3, %v9926_v2 }
  0x2c   : > { %3166 = vst.msk [vmem:[#allocation3 + $0x29] sm:$0x1] %vm288_vm3, %v9926_v2  ;;  %3167 = vst.msk [vmem:[#allocation3 + $0x41] sm:$0x1] %vm288_vm3, %v9926_v2 }
  0x2d   : > { %3168 = vst.msk [vmem:[#allocation3 + $0x59] sm:$0x1] %vm288_vm3, %v9926_v2  ;;  %3169 = vst.msk [vmem:[#allocation3 + $0x71] sm:$0x1] %vm288_vm3, %v9926_v2 }
  0x2e   : > { %3170 = vst.msk [vmem:[#allocation3 + $0x89] sm:$0x1] %vm288_vm3, %v9926_v2  ;;  %3171 = vst.msk [vmem:[#allocation3 + $0xa1] sm:$0x1] %vm288_vm3, %v9926_v2 }
  0x2f   : > { %3172 = vst.msk [vmem:[#allocation3 + $0xb9] sm:$0x1] %vm288_vm3, %v9926_v2  ;;  %3173 = vst.msk [vmem:[#allocation3 + $0xd1] sm:$0x1] %vm288_vm3, %v9926_v2 }
  0x30   : > { %3174 = vst.msk [vmem:[#allocation3 + $0xe9] sm:$0x1] %vm288_vm3, %v9926_v2  ;;  %3175 = vst.msk [vmem:[#allocation3 + $0x101] sm:$0x1] %vm288_vm3, %v9926_v2 }
  0x31   : > { %3176 = vst.msk [vmem:[#allocation3 + $0x119] sm:$0x1] %vm288_vm3, %v9926_v2  ;;  %3177 = vst.msk [vmem:[#allocation3 + $0x131] sm:$0x1] %vm288_vm3, %v9926_v2 }
  0x32   : > { %3178 = vst.msk [vmem:[#allocation3 + $0x149] sm:$0x1] %vm288_vm3, %v9926_v2  ;;  %3179 = vst.msk [vmem:[#allocation3 + $0x161] sm:$0x1] %vm288_vm3, %v9926_v2 }
  0x33   : > { %3180 = vst.msk [vmem:[#allocation3 + $0x179] sm:$0x1] %vm288_vm3, %v9926_v2  ;;  %3181 = vst.msk [vmem:[#allocation3 + $0x191] sm:$0x1] %vm288_vm3, %v9926_v2 }
  0x34   : > { %353 = vst.msk [vmem:[#allocation2 + $0x19] sm:$0xff] %vm278_vm1, %v321_v4  ;;  %354 = vst.msk [vmem:[#allocation2 + $0x21] sm:$0xff] %vm278_vm1, %v322_v5 }
  0x35   : > { %355 = vst.msk [vmem:[#allocation2 + $0x31] sm:$0xff] %vm278_vm1, %v323_v6  ;;  %356 = vst.msk [vmem:[#allocation2 + $0x39] sm:$0xff] %vm278_vm1, %v324_v9 }
  0x36   : > { %357 = vst.msk [vmem:[#allocation2 + $0x49] sm:$0xff] %vm278_vm1, %v325_v11  ;;  %358 = vst.msk [vmem:[#allocation2 + $0x51] sm:$0xff] %vm278_vm1, %v326_v12 }
  0x37   : > { %359 = vst.msk [vmem:[#allocation2 + $0x61] sm:$0xff] %vm278_vm1, %v327_v13  ;;  %360 = vst.msk [vmem:[#allocation2 + $0x69] sm:$0xff] %vm278_vm1, %v328_v14 }
  0x38   : > { %361 = vst.msk [vmem:[#allocation2 + $0x79] sm:$0xff] %vm278_vm1, %v329_v15  ;;  %362 = vst.msk [vmem:[#allocation2 + $0x81] sm:$0xff] %vm278_vm1, %v330_v16 }
  0x39   : > { %363 = vst.msk [vmem:[#allocation2 + $0x91] sm:$0xff] %vm278_vm1, %v331_v17  ;;  %364 = vst.msk [vmem:[#allocation2 + $0x99] sm:$0xff] %vm278_vm1, %v332_v18 }
  0x3a   : > { %365 = vst.msk [vmem:[#allocation2 + $0xa9] sm:$0xff] %vm278_vm1, %v333_v19  ;;  %366 = vst.msk [vmem:[#allocation2 + $0xb1] sm:$0xff] %vm278_vm1, %v334_v20  ;;  %v385_v19 = vld [vmem:[#allocation2] sm:$0xff]  ;;  %v386_v20 = vld [vmem:[#allocation2 + $0x8] sm:$0xff] }
  0x3b   : > { %367 = vst.msk [vmem:[#allocation2 + $0xc1] sm:$0xff] %vm278_vm1, %v335_v21  ;;  %368 = vst.msk [vmem:[#allocation2 + $0xc9] sm:$0xff] %vm278_vm1, %v336_v22  ;;  %v436_v29 = vld [vmem:[#allocation2 + $0x19] sm:$0xff]  ;;  %v437_v30 = vld [vmem:[#allocation2 + $0x21] sm:$0xff]  ;;  %v417_v22 = vpack.c.bf16 %v386_v20, %v385_v19 }
  0x3c   : > { %369 = vst.msk [vmem:[#allocation2 + $0xd9] sm:$0xff] %vm278_vm1, %v337_v23  ;;  %370 = vst.msk [vmem:[#allocation2 + $0xe1] sm:$0xff] %vm278_vm1, %v338_v24  ;;  %v438_v31 = vld [vmem:[#allocation2 + $0x31] sm:$0xff]  ;;  %v10238_v32 = vpack.c.bf16 %v437_v30, %v436_v29  ;;  %v439_v34 = vld [vmem:[#allocation2 + $0x39] sm:$0xff]  ;;  %v1008_v29 = vsel %vm532_vm0, %v10251_v38, 0 }
  0x3d   : > { %371 = vst.msk [vmem:[#allocation2 + $0xf1] sm:$0xff] %vm278_vm1, %v339_v25  ;;  %372 = vst.msk [vmem:[#allocation2 + $0xf9] sm:$0xff] %vm278_vm1, %v340_v26  ;;  %v10244_v37 = vpack.c.bf16 %v439_v34, %v438_v31  ;;  %v440_v39 = vld [vmem:[#allocation2 + $0x49] sm:$0xff]  ;;  %v441_v40 = vld [vmem:[#allocation2 + $0x51] sm:$0xff] }
  0x3e   : > { %373 = vst.msk [vmem:[#allocation2 + $0x109] sm:$0xff] %vm278_vm1, %v341_v27  ;;  %374 = vst.msk [vmem:[#allocation2 + $0x111] sm:$0xff] %vm278_vm1, %v342_v28  ;;  %8676 = vmatmul.mubr.msk.bf16.vlgmr.msra.gmra.mrb[0].mxu0 %vm278_vm1, %v10238_v32  ;;  %v442_v41 = vld [vmem:[#allocation2 + $0x61] sm:$0xff]  ;;  %v443_v42 = vld [vmem:[#allocation2 + $0x69] sm:$0xff]  ;;  %v10259_v43 = vpack.c.bf16 %v441_v40, %v440_v39 }
  0x3f   : > { %375 = vst.msk [vmem:[#allocation2 + $0x121] sm:$0xff] %vm278_vm1, %v343_v35  ;;  %376 = vst.msk [vmem:[#allocation2 + $0x129] sm:$0xff] %vm278_vm1, %v344_v36  ;;  %8708 = vmatpush3.bf16.msra.mxu0 %v746_v33  ;;  %8679 = vmatprep.mubr.msk.bf16.mxu0 %vm278_vm1, %v10244_v37  ;;  %v10261_v44 = vpack.c.bf16 %v443_v42, %v442_v41  ;;  %v444_v51 = vld [vmem:[#allocation2 + $0x79] sm:$0xff]  ;;  %v445_v52 = vld [vmem:[#allocation2 + $0x81] sm:$0xff] }
  0x40   : > { %9799 = vmatprep.subr.msk.bf16.mxu0 %vm532_vm0, %v10251_v38  ;;  %377 = vst.msk [vmem:[#allocation2 + $0x139] sm:$0xff] %vm278_vm1, %v345_v45  ;;  %378 = vst.msk [vmem:[#allocation2 + $0x141] sm:$0xff] %vm278_vm1, %v346_v46  ;;  %v446_v53 = vld [vmem:[#allocation2 + $0x91] sm:$0xff]  ;;  %v447_v54 = vld [vmem:[#allocation2 + $0x99] sm:$0xff]  ;;  %v10279_v55 = vpack.c.bf16 %v445_v52, %v444_v51 }
  0x41   : > { %379 = vst.msk [vmem:[#allocation2 + $0x151] sm:$0xff] %vm278_vm1, %v347_v47  ;;  %380 = vst.msk [vmem:[#allocation2 + $0x159] sm:$0xff] %vm278_vm1, %v348_v48  ;;  %v10281_v56 = vpack.c.bf16 %v447_v54, %v446_v53  ;;  %v448_v57 = vld [vmem:[#allocation2 + $0xa9] sm:$0xff]  ;;  %v449_v58 = vld [vmem:[#allocation2 + $0xb1] sm:$0xff] }
  0x42   : > { %381 = vst.msk [vmem:[#allocation2 + $0x169] sm:$0xff] %vm278_vm1, %v349_v49  ;;  %382 = vst.msk [vmem:[#allocation2 + $0x171] sm:$0xff] %vm278_vm1, %v350_v50  ;;  %v450_v59 = vld [vmem:[#allocation2 + $0xc1] sm:$0xff]  ;;  %v451_v60 = vld [vmem:[#allocation2 + $0xc9] sm:$0xff]  ;;  %v10287_v61 = vpack.c.bf16 %v449_v58, %v448_v57 }
  0x43   : > { %v10289_v62 = vpack.c.bf16 %v451_v60, %v450_v59  ;;  %v452_v63 = vld [vmem:[#allocation2 + $0xd9] sm:$0xff]  ;;  %v453_v0 = vld [vmem:[#allocation2 + $0xe1] sm:$0xff]  ;;  %v389_v25 = vld [vmem:[#allocation2 + $0x30] sm:$0xff] }
  0x44   : > { %v454_v1 = vld [vmem:[#allocation2 + $0xf1] sm:$0xff]  ;;  %v455_v2 = vld [vmem:[#allocation2 + $0xf9] sm:$0xff]  ;;  %v10295_v3 = vpack.c.bf16 %v453_v0, %v452_v63  ;;  %v10333_v30 = vld [vmem:[%s12078_s1 + $0xc] sm:$0xf] }
  0x45   : > { %v10297_v4 = vpack.c.bf16 %v455_v2, %v454_v1  ;;  %v456_v5 = vld [vmem:[#allocation2 + $0x109] sm:$0xff]  ;;  %v457_v6 = vld [vmem:[#allocation2 + $0x111] sm:$0xff]  ;;  %v388_v24 = vld [vmem:[#allocation2 + $0x20] sm:$0xff] }
  0x46   : > { %8680 = vmatmul.mubr.msk.bf16.gmra.mrb[4].mxu0 %vm278_vm1, %v10259_v43  ;;  %v458_v7 = vld [vmem:[#allocation2 + $0x121] sm:$0xff]  ;;  %v459_v8 = vld [vmem:[#allocation2 + $0x129] sm:$0xff]  ;;  %v10303_v9 = vpack.c.bf16 %v457_v6, %v456_v5  ;;  %v387_v23 = vld [vmem:[#allocation2 + $0x18] sm:$0xff] }
  0x47   : > { %8683 = vmatprep.mubr.msk.bf16.mxu0 %vm278_vm1, %v10261_v44  ;;  %v10305_v10 = vpack.c.bf16 %v459_v8, %v458_v7  ;;  %v460_v11 = vld [vmem:[#allocation2 + $0x139] sm:$0xff]  ;;  %v461_v12 = vld [vmem:[#allocation2 + $0x141] sm:$0xff]  ;;  %v10324_v27 = vpack.c.bf16 %v388_v24, %v387_v23  ;;  %v392_v33 = vld [vmem:[#allocation2 + $0x50] sm:$0xff] }
  0x48   : > { %v462_v13 = vld [vmem:[#allocation2 + $0x151] sm:$0xff]  ;;  %v463_v14 = vld [vmem:[#allocation2 + $0x159] sm:$0xff]  ;;  %v10311_v15 = vpack.c.bf16 %v461_v12, %v460_v11  ;;  %v391_v31 = vld [vmem:[#allocation2 + $0x48] sm:$0xff] }
  0x49   : > { %v10313_v16 = vpack.c.bf16 %v463_v14, %v462_v13  ;;  %v464_v17 = vld [vmem:[#allocation2 + $0x169] sm:$0xff]  ;;  %v465_v18 = vld [vmem:[#allocation2 + $0x171] sm:$0xff]  ;;  %v393_v34 = vld [vmem:[#allocation2 + $0x60] sm:$0xff]  ;;  %v10341_v36 = vpack.c.bf16 %v392_v33, %v391_v31 }
  0x4a   : > { %v10319_v21 = vpack.c.bf16 %v465_v18, %v464_v17  ;;  %v390_v26 = vld [vmem:[#allocation2 + $0x38] sm:$0xff]  ;;  %v394_v35 = vld [vmem:[#allocation2 + $0x68] sm:$0xff]  ;;  %v396_v40 = vld [vmem:[#allocation2 + $0x80] sm:$0xff] }
  0x4b   : > { %v10326_v28 = vpack.c.bf16 %v390_v26, %v389_v25  ;;  %v10343_v38 = vpack.c.bf16 %v394_v35, %v393_v34  ;;  %v395_v39 = vld [vmem:[#allocation2 + $0x78] sm:$0xff]  ;;  %v397_v41 = vld [vmem:[#allocation2 + $0x90] sm:$0xff]  ;;  %v399_v47 = vld [vmem:[#allocation2 + $0xa8] sm:$0xff] }
  0x4c   : > { %v398_v42 = vld [vmem:[#allocation2 + $0x98] sm:$0xff]  ;;  %v10349_v45 = vpack.c.bf16 %v396_v40, %v395_v39  ;;  %v400_v48 = vld [vmem:[#allocation2 + $0xb0] sm:$0xff]  ;;  %v401_v49 = vld [vmem:[#allocation2 + $0xc0] sm:$0xff]  ;;  %v1302_v39 = vsel %vm532_vm0, %v10333_v30, 0 }
  0x4d   : > { %v10351_v46 = vpack.c.bf16 %v398_v42, %v397_v41  ;;  %v402_v50 = vld [vmem:[#allocation2 + $0xc8] sm:$0xff]  ;;  %v10357_v51 = vpack.c.bf16 %v400_v48, %v399_v47  ;;  %v403_v53 = vld [vmem:[#allocation2 + $0xd8] sm:$0xff]  ;;  %v404_v54 = vld [vmem:[#allocation2 + $0xe0] sm:$0xff] }
  0x4e   : > { %8684 = vmatmul.mubr.msk.bf16.gmra.mrb[8].mxu0 %vm278_vm1, %v10279_v55  ;;  %v10359_v52 = vpack.c.bf16 %v402_v50, %v401_v49  ;;  %v405_v57 = vld [vmem:[#allocation2 + $0xf0] sm:$0xff]  ;;  %v406_v58 = vld [vmem:[#allocation2 + $0xf8] sm:$0xff]  ;;  %v10365_v59 = vpack.c.bf16 %v404_v54, %v403_v53  ;;  %v407_v63 = vld [vmem:[#allocation2 + $0x108] sm:$0xff] }
  0x4f   : > { %8687 = vmatprep.mubr.msk.bf16.mxu0 %vm278_vm1, %v10281_v56  ;;  %v10367_v60 = vpack.c.bf16 %v406_v58, %v405_v57  ;;  %v408_v0 = vld [vmem:[#allocation2 + $0x110] sm:$0xff]  ;;  %v409_v1 = vld [vmem:[#allocation2 + $0x120] sm:$0xff]  ;;  %v410_v2 = vld [vmem:[#allocation2 + $0x128] sm:$0xff] }
  0x50   : > { %v10373_v5 = vpack.c.bf16 %v408_v0, %v407_v63  ;;  %v10375_v6 = vpack.c.bf16 %v410_v2, %v409_v1  ;;  %v411_v7 = vld [vmem:[#allocation2 + $0x138] sm:$0xff]  ;;  %v412_v8 = vld [vmem:[#allocation2 + $0x140] sm:$0xff]  ;;  %v413_v11 = vld [vmem:[#allocation2 + $0x150] sm:$0xff] }
  0x51   : > { %v414_v12 = vld [vmem:[#allocation2 + $0x158] sm:$0xff]  ;;  %v10381_v13 = vpack.c.bf16 %v412_v8, %v411_v7  ;;  %v351_v17 = vld [vmem:[%s10191_s21 + $0xf0] sm:$0xff]  ;;  %v415_v19 = vld [vmem:[#allocation2 + $0x168] sm:$0xff] }
  0x52   : > { %v10383_v14 = vpack.c.bf16 %v414_v12, %v413_v11  ;;  %v352_v18 = vld [vmem:[%s10191_s21 + $0xf8] sm:$0xff]  ;;  %383 = vst.msk [vmem:[#allocation2 + $0x181] sm:$0xff] %vm278_vm1, %v351_v17  ;;  %v416_v20 = vld [vmem:[#allocation2 + $0x170] sm:$0xff]  ;;  %v917_v47 = vld [vmem:[#allocation2 + $0x62] sm:$0xff] }
  0x53   : > { %384 = vst.msk [vmem:[#allocation2 + $0x189] sm:$0xff] %vm278_vm1, %v352_v18  ;;  %v910_v23 = vld [vmem:[#allocation2 + $0xa] sm:$0xff]  ;;  %v10393_v24 = vpack.c.bf16 %v416_v20, %v415_v19  ;;  %v911_v26 = vld [vmem:[#allocation2 + $0x1a] sm:$0xff]  ;;  %v913_v31 = vld [vmem:[#allocation2 + $0x32] sm:$0xff] }
  0x54   : > { %v914_v33 = vld [vmem:[#allocation2 + $0x3a] sm:$0xff]  ;;  %v8119_v40 = vld [vmem:[%s12078_s1 + $0x10] sm:$0xf]  ;;  %v920_v53 = vld [vmem:[#allocation2 + $0x82] sm:$0xff] }
  0x55   : > { %v10400_v35 = vpack.c.bf16 %v914_v33, %v913_v31  ;;  %v915_v41 = vld [vmem:[#allocation2 + $0x4a] sm:$0xff]  ;;  %v916_v42 = vld [vmem:[#allocation2 + $0x52] sm:$0xff]  ;;  %v919_v50 = vld [vmem:[#allocation2 + $0x7a] sm:$0xff] }
  0x56   : > { %8688 = vmatmul.mubr.msk.bf16.gmra.mrb[12].mxu0 %vm278_vm1, %v10287_v61  ;;  %v918_v48 = vld [vmem:[#allocation2 + $0x6a] sm:$0xff]  ;;  %v10412_v49 = vpack.c.bf16 %v916_v42, %v915_v41  ;;  %v921_v54 = vld [vmem:[#allocation2 + $0x92] sm:$0xff]  ;;  %v922_v57 = vld [vmem:[#allocation2 + $0x9a] sm:$0xff]  ;;  %v10420_v58 = vpack.c.bf16 %v920_v53, %v919_v50 }
  0x57   : > { %8691 = vmatprep.mubr.msk.bf16.mxu0 %vm278_vm1, %v10289_v62  ;;  %v10422_v63 = vpack.c.bf16 %v922_v57, %v921_v54  ;;  %v923_v0 = vld [vmem:[#allocation2 + $0xaa] sm:$0xff]  ;;  %v924_v1 = vld [vmem:[#allocation2 + $0xb2] sm:$0xff]  ;;  %v925_v2 = vld [vmem:[#allocation2 + $0xc2] sm:$0xff] }
  0x58   : > { %v926_v7 = vld [vmem:[#allocation2 + $0xca] sm:$0xff]  ;;  %v10428_v8 = vpack.c.bf16 %v924_v1, %v923_v0  ;;  %v927_v12 = vld [vmem:[#allocation2 + $0xda] sm:$0xff]  ;;  %v928_v17 = vld [vmem:[#allocation2 + $0xe2] sm:$0xff]  ;;  %v1596_v0 = vsel %vm532_vm0, %v8119_v40, 0 }
  0x59   : > { %v10430_v11 = vpack.c.bf16 %v926_v7, %v925_v2  ;;  %v929_v18 = vld [vmem:[#allocation2 + $0xf2] sm:$0xff]  ;;  %v930_v19 = vld [vmem:[#allocation2 + $0xfa] sm:$0xff]  ;;  %v10436_v20 = vpack.c.bf16 %v928_v17, %v927_v12  ;;  %v936_v41 = vld [vmem:[#allocation2 + $0x142] sm:$0xff] }
  0x5a   : > { %v937_v42 = vld [vmem:[#allocation2 + $0x152] sm:$0xff]  ;;  %v939_v53 = vld [vmem:[#allocation2 + $0x16a] sm:$0xff] }
  0x5b   : > { %v940_v54 = vld [vmem:[#allocation2 + $0x172] sm:$0xff] }
  0x5c   : > { %v10460_v57 = vpack.c.bf16 %v940_v54, %v939_v53  ;;  %v8136_v1 = vld [vmem:[%s12078_s1 + $0x14] sm:$0xf]  ;;  %v8153_v12 = vld [vmem:[%s12078_s1 + $0x18] sm:$0xf]  ;;  %v2398_v53 = vld [vmem:[#allocation2 + $0x109] sm:$0xff] }
  0x5d   : > { %v1890_v7 = vsel %vm532_vm0, %v8136_v1, 0  ;;  %v2391_v17 = vld [vmem:[#allocation2 + $0xb1] sm:$0xff] }
  0x5e   : > { %8692 = vmatmul.mubr.msk.bf16.gmra.mrb[16].mxu0 %vm278_vm1, %v10295_v3  ;;  %v2399_v54 = vld [vmem:[#allocation2 + $0x111] sm:$0xff] }
  0x5f   : > { %8695 = vmatprep.mubr.msk.bf16.mxu0 %vm278_vm1, %v10297_v4 }
  0x66   : > { %8696 = vmatmul.mubr.msk.bf16.gmra.mrb[20].mxu0 %vm278_vm1, %v10303_v9 }
  0x67   : > { %8699 = vmatprep.mubr.msk.bf16.mxu0 %vm278_vm1, %v10305_v10 }
  0x6e   : > { %8700 = vmatmul.mubr.msk.bf16.gmra.mrb[24].mxu0 %vm278_vm1, %v10311_v15 }
  0x6f   : > { %8703 = vmatprep.mubr.msk.bf16.mxu0 %vm278_vm1, %v10313_v16 }
  0x76   : > { %8704 = vmatmul.mubr.msk.bf16.gmra.mrb[28].mxu0 %vm278_vm1, %v10319_v21 }
  0x77   : > { %8709 = vmatprep.mubr.msk.bf16.mxu0 %vm278_vm1, %v417_v22  ;;  %v909_v22 = vld [vmem:[#allocation2 + $0x2] sm:$0xff] }
  0x78   : > { %v941_v25 = vpack.c.bf16 %v910_v23, %v909_v22  ;;  %v10438_v22 = vpack.c.bf16 %v930_v19, %v929_v18  ;;  %v931_v23 = vld [vmem:[#allocation2 + $0x10a] sm:$0xff]  ;;  %v2392_v18 = vld [vmem:[#allocation2 + $0xc1] sm:$0xff] }
  0x79   : > { %v2393_v19 = vld [vmem:[#allocation2 + $0xc9] sm:$0xff] }
  0x7e   : > { %8710 = vmatmul.mubr.msk.bf16.vlgmr.msra.gmra.mrb[0].mxu0 %vm278_vm1, %v10324_v27 }
  0x7f   : > { %8742 = vmatpush3.bf16.msra.mxu0 %v1008_v29  ;;  %8713 = vmatprep.mubr.msk.bf16.mxu0 %vm278_vm1, %v10326_v28  ;;  %v912_v29 = vld [vmem:[#allocation2 + $0x22] sm:$0xff] }
  0x80   : > { %9800 = vmatprep.subr.msk.bf16.mxu0 %vm532_vm0, %v10333_v30  ;;  %v10398_v34 = vpack.c.bf16 %v912_v29, %v911_v26  ;;  %v10414_v30 = vpack.c.bf16 %v918_v48, %v917_v47  ;;  %v933_v26 = vld [vmem:[#allocation2 + $0x122] sm:$0xff]  ;;  %v934_v29 = vld [vmem:[#allocation2 + $0x12a] sm:$0xff]  ;;  %v938_v47 = vld [vmem:[#allocation2 + $0x15a] sm:$0xff] }
  0x81   : > { %v10446_v33 = vpack.c.bf16 %v934_v29, %v933_v26  ;;  %v10454_v50 = vpack.c.bf16 %v938_v47, %v937_v42  ;;  %v2394_v26 = vld [vmem:[#allocation2 + $0xd9] sm:$0xff]  ;;  %v2395_v29 = vld [vmem:[#allocation2 + $0xe1] sm:$0xff] }
  0x82   : > { %v2419_v42 = vpack.c.bf16 %v2395_v29, %v2394_v26 }
  0x86   : > { %8714 = vmatmul.mubr.msk.bf16.gmra.mrb[4].mxu0 %vm278_vm1, %v10341_v36 }
  0x87   : > { %8717 = vmatprep.mubr.msk.bf16.mxu0 %vm278_vm1, %v10343_v38 }
  0x8e   : > { %8718 = vmatmul.mubr.msk.bf16.gmra.mrb[8].mxu0 %vm278_vm1, %v10349_v45 }
  0x8f   : > { %8721 = vmatprep.mubr.msk.bf16.mxu0 %vm278_vm1, %v10351_v46 }
  0x96   : > { %8722 = vmatmul.mubr.msk.bf16.gmra.mrb[12].mxu0 %vm278_vm1, %v10357_v51 }
  0x97   : > { %8725 = vmatprep.mubr.msk.bf16.mxu0 %vm278_vm1, %v10359_v52 }
  0x9e   : > { %8726 = vmatmul.mubr.msk.bf16.gmra.mrb[16].mxu0 %vm278_vm1, %v10365_v59 }
  0x9f   : > { %8729 = vmatprep.mubr.msk.bf16.mxu0 %vm278_vm1, %v10367_v60 }
  0xa6   : > { %8730 = vmatmul.mubr.msk.bf16.gmra.mrb[20].mxu0 %vm278_vm1, %v10373_v5 }
  0xa7   : > { %8733 = vmatprep.mubr.msk.bf16.mxu0 %vm278_vm1, %v10375_v6 }
  0xae   : > { %8734 = vmatmul.mubr.msk.bf16.gmra.mrb[24].mxu0 %vm278_vm1, %v10381_v13 }
  0xaf   : > { %8737 = vmatprep.mubr.msk.bf16.mxu0 %vm278_vm1, %v10383_v14 }
  0xb6   : > { %8738 = vmatmul.mubr.msk.bf16.gmra.mrb[28].mxu0 %vm278_vm1, %v10393_v24 }
  0xb7   : > { %8743 = vmatprep.mubr.msk.bf16.mxu0 %vm278_vm1, %v941_v25  ;;  %v932_v25 = vld [vmem:[#allocation2 + $0x112] sm:$0xff] }
  0xb8   : > { %v10444_v31 = vpack.c.bf16 %v932_v25, %v931_v23  ;;  %v2418_v25 = vpack.c.bf16 %v2393_v19, %v2392_v18 }
  0xbe   : > { %8744 = vmatmul.mubr.msk.bf16.vlgmr.msra.gmra.mrb[0].mxu0 %vm278_vm1, %v10398_v34 }
  0xbf   : > { %8776 = vmatpush3.bf16.msra.mxu0 %v1302_v39  ;;  %8747 = vmatprep.mubr.msk.bf16.mxu0 %vm278_vm1, %v10400_v35  ;;  %v935_v39 = vld [vmem:[#allocation2 + $0x13a] sm:$0xff] }
  0xc0   : > { %9801 = vmatprep.subr.msk.bf16.mxu0 %vm532_vm0, %v8119_v40  ;;  %v10452_v48 = vpack.c.bf16 %v936_v41, %v935_v39  ;;  %v1234_v40 = vld [vmem:[#allocation2 + $0x188] sm:$0xff]  ;;  %v2396_v39 = vld [vmem:[#allocation2 + $0xf1] sm:$0xff]  ;;  %v2397_v41 = vld [vmem:[#allocation2 + $0xf9] sm:$0xff] }
  0xc1   : > { %v2420_v47 = vpack.c.bf16 %v2397_v41, %v2396_v39 }
  0xc6   : > { %8748 = vmatmul.mubr.msk.bf16.gmra.mrb[4].mxu0 %vm278_vm1, %v10412_v49 }
  0xc7   : > { %8751 = vmatprep.mubr.msk.bf16.mxu0 %vm278_vm1, %v10414_v30 }
  0xce   : > { %8752 = vmatmul.mubr.msk.bf16.gmra.mrb[8].mxu0 %vm278_vm1, %v10420_v58 }
  0xcf   : > { %8755 = vmatprep.mubr.msk.bf16.mxu0 %vm278_vm1, %v10422_v63 }
  0xd6   : > { %8756 = vmatmul.mubr.msk.bf16.gmra.mrb[12].mxu0 %vm278_vm1, %v10428_v8 }
  0xd7   : > { %8759 = vmatprep.mubr.msk.bf16.mxu0 %vm278_vm1, %v10430_v11 }
  0xde   : > { %8760 = vmatmul.mubr.msk.bf16.gmra.mrb[16].mxu0 %vm278_vm1, %v10436_v20 }
  0xdf   : > { %8763 = vmatprep.mubr.msk.bf16.mxu0 %vm278_vm1, %v10438_v22 }
  0xe6   : > { %8764 = vmatmul.mubr.msk.bf16.gmra.mrb[20].mxu0 %vm278_vm1, %v10444_v31 }
  0xe7   : > { %8767 = vmatprep.mubr.msk.bf16.mxu0 %vm278_vm1, %v10446_v33 }
  0xee   : > { %8768 = vmatmul.mubr.msk.bf16.gmra.mrb[24].mxu0 %vm278_vm1, %v10452_v48 }
  0xef   : > { %8771 = vmatprep.mubr.msk.bf16.mxu0 %vm278_vm1, %v10454_v50 }
  0xf6   : > { %8772 = vmatmul.mubr.msk.bf16.gmra.mrb[28].mxu0 %vm278_vm1, %v10460_v57 }
  0xf7   : > { %8777 = vmatprep.mubr.msk.bf16.mxu0 %vm278_vm1, %v10324_v27  ;;  %v1233_v27 = vld [vmem:[#allocation2 + $0x180] sm:$0xff] }
  0xf8   : > { %v10499_v2 = vpack.c.bf16 %v1234_v40, %v1233_v27  ;;  %v2421_v27 = vpack.c.bf16 %v2399_v54, %v2398_v53 }
  0xfe   : > { %8778 = vmatmul.mubr.msk.bf16.vlgmr.msra.gmra.mrb[0].mxu0 %vm278_vm1, %v10326_v28 }
  0xff   : > { %8810 = vmatpush3.bf16.msra.mxu0 %v1596_v0  ;;  %8781 = vmatprep.mubr.msk.bf16.mxu0 %vm278_vm1, %v10341_v36  ;;  %v2400_v0 = vld [vmem:[#allocation2 + $0x121] sm:$0xff] }
 0x100   : > { %9802 = vmatprep.subr.msk.bf16.mxu0 %vm532_vm0, %v8136_v1  ;;  %v2401_v1 = vld [vmem:[#allocation2 + $0x129] sm:$0xff] }
 0x101   : > { %v2422_v40 = vpack.c.bf16 %v2401_v1, %v2400_v0 }
 0x106   : > { %8782 = vmatmul.mubr.msk.bf16.gmra.mrb[4].mxu0 %vm278_vm1, %v10343_v38 }
 0x107   : > { %8785 = vmatprep.mubr.msk.bf16.mxu0 %vm278_vm1, %v10349_v45 }
 0x10e   : > { %8786 = vmatmul.mubr.msk.bf16.gmra.mrb[8].mxu0 %vm278_vm1, %v10351_v46 }
 0x10f   : > { %8789 = vmatprep.mubr.msk.bf16.mxu0 %vm278_vm1, %v10357_v51 }
 0x116   : > { %8790 = vmatmul.mubr.msk.bf16.gmra.mrb[12].mxu0 %vm278_vm1, %v10359_v52 }
 0x117   : > { %8793 = vmatprep.mubr.msk.bf16.mxu0 %vm278_vm1, %v10365_v59 }
 0x11e   : > { %8794 = vmatmul.mubr.msk.bf16.gmra.mrb[16].mxu0 %vm278_vm1, %v10367_v60 }
 0x11f   : > { %8797 = vmatprep.mubr.msk.bf16.mxu0 %vm278_vm1, %v10373_v5 }
 0x126   : > { %8798 = vmatmul.mubr.msk.bf16.gmra.mrb[20].mxu0 %vm278_vm1, %v10375_v6 }
 0x127   : > { %8801 = vmatprep.mubr.msk.bf16.mxu0 %vm278_vm1, %v10381_v13 }
 0x12e   : > { %8802 = vmatmul.mubr.msk.bf16.gmra.mrb[24].mxu0 %vm278_vm1, %v10383_v14 }
 0x12f   : > { %8805 = vmatprep.mubr.msk.bf16.mxu0 %vm278_vm1, %v10393_v24 }
 0x136   : > { %8806 = vmatmul.mubr.msk.bf16.gmra.mrb[28].mxu0 %vm278_vm1, %v10499_v2 }
 0x137   : > { %8811 = vmatprep.mubr.msk.bf16.mxu0 %vm278_vm1, %v10238_v32  ;;  %v1527_v32 = vld [vmem:[#allocation2 + $0x181] sm:$0xff] }
 0x13e   : > { %8812 = vmatmul.mubr.msk.bf16.vlgmr.msra.gmra.mrb[0].mxu0 %vm278_vm1, %v10244_v37  ;;  %v1528_v37 = vld [vmem:[#allocation2 + $0x189] sm:$0xff] }
 0x13f   : > { %8844 = vmatpush3.bf16.msra.mxu0 %v1890_v7  ;;  %8815 = vmatprep.mubr.msk.bf16.mxu0 %vm278_vm1, %v10259_v43  ;;  %v10538_v43 = vpack.c.bf16 %v1528_v37, %v1527_v32  ;;  %v2403_v7 = vld [vmem:[#allocation2 + $0x141] sm:$0xff]  ;;  %v2405_v32 = vld [vmem:[#allocation2 + $0x159] sm:$0xff] }
 0x140   : > { %9803 = vmatprep.subr.msk.bf16.mxu0 %vm532_vm0, %v8153_v12 }
 0x146   : > { %8816 = vmatmul.mubr.msk.bf16.gmra.mrb[4].mxu0 %vm278_vm1, %v10261_v44  ;;  %v2185_v44 = vsel %vm532_vm0, %v8153_v12, 0  ;;  %v2404_v12 = vld [vmem:[#allocation2 + $0x151] sm:$0xff] }
 0x147   : > { %8819 = vmatprep.mubr.msk.bf16.mxu0 %vm278_vm1, %v10279_v55  ;;  %v8170_v55 = vld [vmem:[%s12078_s1 + $0x1c] sm:$0xf] }
 0x14e   : > { %8820 = vmatmul.mubr.msk.bf16.gmra.mrb[8].mxu0 %vm278_vm1, %v10281_v56  ;;  %v1821_v56 = vld [vmem:[#allocation2 + $0x182] sm:$0xff] }
 0x14f   : > { %8823 = vmatprep.mubr.msk.bf16.mxu0 %vm278_vm1, %v10287_v61  ;;  %v1822_v61 = vld [vmem:[#allocation2 + $0x18a] sm:$0xff] }
 0x156   : > { %8824 = vmatmul.mubr.msk.bf16.gmra.mrb[12].mxu0 %vm278_vm1, %v10289_v62  ;;  %v10577_v62 = vpack.c.bf16 %v1822_v61, %v1821_v56  ;;  %v2407_v56 = vld [vmem:[#allocation2 + $0x171] sm:$0xff] }
 0x157   : > { %8827 = vmatprep.mubr.msk.bf16.mxu0 %vm278_vm1, %v10295_v3  ;;  %v2479_v3 = vsel %vm532_vm0, %v8170_v55, 0 }
 0x15e   : > { %8828 = vmatmul.mubr.msk.bf16.gmra.mrb[16].mxu0 %vm278_vm1, %v10297_v4  ;;  %v8187_v4 = vld [vmem:[%s12078_s1 + $0x20] sm:$0xf] }
 0x15f   : > { %8831 = vmatprep.mubr.msk.bf16.mxu0 %vm278_vm1, %v10303_v9  ;;  %v2116_v9 = vld [vmem:[#allocation2 + $0x198] sm:$0xff] }
 0x166   : > { %8832 = vmatmul.mubr.msk.bf16.gmra.mrb[20].mxu0 %vm278_vm1, %v10305_v10  ;;  %v2117_v10 = vld [vmem:[#allocation2 + $0x1a0] sm:$0xff] }
 0x167   : > { %8835 = vmatprep.mubr.msk.bf16.mxu0 %vm278_vm1, %v10311_v15  ;;  %v2380_v15 = vld [vmem:[#allocation2 + $0x31] sm:$0xff] }
 0x16e   : > { %8836 = vmatmul.mubr.msk.bf16.gmra.mrb[24].mxu0 %vm278_vm1, %v10313_v16  ;;  %v2381_v16 = vld [vmem:[#allocation2 + $0x39] sm:$0xff] }
 0x16f   : > { %8839 = vmatprep.mubr.msk.bf16.mxu0 %vm278_vm1, %v10319_v21  ;;  %v2133_v21 = vpack.c.bf16 %v2117_v10, %v2116_v9 }
 0x176   : > { %8840 = vmatmul.mubr.msk.bf16.gmra.mrb[28].mxu0 %vm278_vm1, %v10538_v43 }
 0x177   : > { %8845 = vmatprep.mubr.msk.bf16.mxu0 %vm278_vm1, %v10398_v34  ;;  %v2390_v34 = vld [vmem:[#allocation2 + $0xa9] sm:$0xff] }
 0x178   : > { %v2417_v23 = vpack.c.bf16 %v2391_v17, %v2390_v34 }
 0x17e   : > { %8846 = vmatmul.mubr.msk.bf16.vlgmr.msra.gmra.mrb[0].mxu0 %vm278_vm1, %v10400_v35 }
 0x17f   : > { %8878 = vmatpush3.bf16.msra.mxu0 %v2185_v44  ;;  %8849 = vmatprep.mubr.msk.bf16.mxu0 %vm278_vm1, %v10412_v49  ;;  %v2424_v44 = vpack.c.bf16 %v2405_v32, %v2404_v12 }
 0x180   : > { %9804 = vmatprep.subr.msk.bf16.mxu0 %vm532_vm0, %v8170_v55  ;;  %v2406_v55 = vld [vmem:[#allocation2 + $0x169] sm:$0xff] }
 0x181   : > { %v2425_v61 = vpack.c.bf16 %v2407_v56, %v2406_v55 }
 0x186   : > { %8850 = vmatmul.mubr.msk.bf16.gmra.mrb[4].mxu0 %vm278_vm1, %v10414_v30 }
 0x187   : > { %8853 = vmatprep.mubr.msk.bf16.mxu0 %vm278_vm1, %v10420_v58 }
 0x18e   : > { %8854 = vmatmul.mubr.msk.bf16.gmra.mrb[8].mxu0 %vm278_vm1, %v10422_v63 }
 0x18f   : > { %8857 = vmatprep.mubr.msk.bf16.mxu0 %vm278_vm1, %v10428_v8 }
 0x196   : > { %8858 = vmatmul.mubr.msk.bf16.gmra.mrb[12].mxu0 %vm278_vm1, %v10430_v11 }
 0x197   : > { %8861 = vmatprep.mubr.msk.bf16.mxu0 %vm278_vm1, %v10436_v20 }
 0x19e   : > { %8862 = vmatmul.mubr.msk.bf16.gmra.mrb[16].mxu0 %vm278_vm1, %v10438_v22 }
 0x19f   : > { %8865 = vmatprep.mubr.msk.bf16.mxu0 %vm278_vm1, %v10444_v31 }
 0x1a6   : > { %8866 = vmatmul.mubr.msk.bf16.gmra.mrb[20].mxu0 %vm278_vm1, %v10446_v33 }
 0x1a7   : > { %8869 = vmatprep.mubr.msk.bf16.mxu0 %vm278_vm1, %v10452_v48 }
 0x1ae   : > { %8870 = vmatmul.mubr.msk.bf16.gmra.mrb[24].mxu0 %vm278_vm1, %v10454_v50 }
 0x1af   : > { %8873 = vmatprep.mubr.msk.bf16.mxu0 %vm278_vm1, %v10460_v57 }
 0x1b6   : > { %8874 = vmatmul.mubr.msk.bf16.gmra.mrb[28].mxu0 %vm278_vm1, %v10577_v62 }
 0x1b7   : > { %8879 = vmatprep.mubr.msk.bf16.mxu0 %vm278_vm1, %v10326_v28  ;;  %v2412_v28 = vpack.c.bf16 %v2381_v16, %v2380_v15 }
 0x1be   : > { %8880 = vmatmul.mubr.msk.bf16.vlgmr.msra.gmra.mrb[0].mxu0 %vm278_vm1, %v10341_v36  ;;  %v2382_v36 = vld [vmem:[#allocation2 + $0x49] sm:$0xff] }
 0x1bf   : > { %8912 = vmatpush3.bf16.msra.mxu0 %v2479_v3  ;;  %8883 = vmatprep.mubr.msk.bf16.mxu0 %vm278_vm1, %v10343_v38  ;;  %v2383_v38 = vld [vmem:[#allocation2 + $0x51] sm:$0xff]  ;;  %v2410_v3 = vld [vmem:[#allocation2 + $0x199] sm:$0xff] }
 0x1c0   : > { %9805 = vmatprep.subr.msk.bf16.mxu0 %vm532_vm0, %v8187_v4 }
 0x1c6   : > { %8884 = vmatmul.mubr.msk.bf16.gmra.mrb[4].mxu0 %vm278_vm1, %v10349_v45  ;;  %v2384_v45 = vld [vmem:[#allocation2 + $0x61] sm:$0xff] }
 0x1c7   : > { %8887 = vmatprep.mubr.msk.bf16.mxu0 %vm278_vm1, %v10351_v46  ;;  %v2385_v46 = vld [vmem:[#allocation2 + $0x69] sm:$0xff] }
 0x1ce   : > { %8888 = vmatmul.mubr.msk.bf16.gmra.mrb[8].mxu0 %vm278_vm1, %v10357_v51  ;;  %v2413_v51 = vpack.c.bf16 %v2383_v38, %v2382_v36 }
 0x1cf   : > { %8891 = vmatprep.mubr.msk.bf16.mxu0 %vm278_vm1, %v10359_v52  ;;  %v2414_v52 = vpack.c.bf16 %v2385_v46, %v2384_v45 }
 0x1d6   : > { %8892 = vmatmul.mubr.msk.bf16.gmra.mrb[12].mxu0 %vm278_vm1, %v10365_v59  ;;  %v2773_v59 = vsel %vm532_vm0, %v8187_v4, 0  ;;  %v2411_v4 = vld [vmem:[#allocation2 + $0x1a1] sm:$0xff] }
 0x1d7   : > { %8895 = vmatprep.mubr.msk.bf16.mxu0 %vm278_vm1, %v10367_v60  ;;  %v2386_v60 = vld [vmem:[#allocation2 + $0x79] sm:$0xff]  ;;  %v2427_v9 = vpack.c.bf16 %v2411_v4, %v2410_v3 }
 0x1de   : > { %8896 = vmatmul.mubr.msk.bf16.gmra.mrb[16].mxu0 %vm278_vm1, %v10373_v5  ;;  %v2387_v5 = vld [vmem:[#allocation2 + $0x81] sm:$0xff] }
 0x1df   : > { %8899 = vmatprep.mubr.msk.bf16.mxu0 %vm278_vm1, %v10375_v6  ;;  %v2388_v6 = vld [vmem:[#allocation2 + $0x91] sm:$0xff] }
 0x1e6   : > { %8900 = vmatmul.mubr.msk.bf16.gmra.mrb[20].mxu0 %vm278_vm1, %v10381_v13  ;;  %v2389_v13 = vld [vmem:[#allocation2 + $0x99] sm:$0xff] }
 0x1e7   : > { %8903 = vmatprep.mubr.msk.bf16.mxu0 %vm278_vm1, %v10383_v14  ;;  %v2415_v14 = vpack.c.bf16 %v2387_v5, %v2386_v60 }
 0x1ee   : > { %8904 = vmatmul.mubr.msk.bf16.gmra.mrb[24].mxu0 %vm278_vm1, %v10393_v24  ;;  %v2416_v24 = vpack.c.bf16 %v2389_v13, %v2388_v6 }
 0x1ef   : > { %8907 = vmatprep.mubr.msk.bf16.mxu0 %vm278_vm1, %v10499_v2  ;;  %v2402_v2 = vld [vmem:[#allocation2 + $0x139] sm:$0xff] }
 0x1f0   : > { %v2423_v37 = vpack.c.bf16 %v2403_v7, %v2402_v2 }
 0x1f6   : > { %8908 = vmatmul.mubr.msk.bf16.gmra.mrb[28].mxu0 %vm278_vm1, %v2133_v21 }
 0x1f7   : > { %8913 = vmatprep.mubr.msk.bf16.mxu0 %vm278_vm1, %v2412_v28 }
 0x1fe   : > { %8914 = vmatmul.mubr.msk.bf16.vlgmr.msra.gmra.mrb[0].mxu0 %vm278_vm1, %v2413_v51 }
 0x1ff   : > { %8946 = vmatpush3.bf16.msra.mxu0 %v2773_v59  ;;  %8917 = vmatprep.mubr.msk.bf16.mxu0 %vm278_vm1, %v2414_v52 }
 0x206   : > { %8918 = vmatmul.mubr.msk.bf16.gmra.mrb[4].mxu0 %vm278_vm1, %v2415_v14 }
 0x207   : > { %8921 = vmatprep.mubr.msk.bf16.mxu0 %vm278_vm1, %v2416_v24 }
 0x20e   : > { %8922 = vmatmul.mubr.msk.bf16.gmra.mrb[8].mxu0 %vm278_vm1, %v2417_v23 }
 0x20f   : > { %8925 = vmatprep.mubr.msk.bf16.mxu0 %vm278_vm1, %v2418_v25 }
 0x216   : > { %8926 = vmatmul.mubr.msk.bf16.gmra.mrb[12].mxu0 %vm278_vm1, %v2419_v42 }
 0x217   : > { %8929 = vmatprep.mubr.msk.bf16.mxu0 %vm278_vm1, %v2420_v47 }
 0x21e   : > { %8930 = vmatmul.mubr.msk.bf16.gmra.mrb[16].mxu0 %vm278_vm1, %v2421_v27 }
 0x21f   : > { %8933 = vmatprep.mubr.msk.bf16.mxu0 %vm278_vm1, %v2422_v40 }
 0x226   : > { %8934 = vmatmul.mubr.msk.bf16.gmra.mrb[20].mxu0 %vm278_vm1, %v2423_v37 }
 0x227   : > { %8937 = vmatprep.mubr.msk.bf16.mxu0 %vm278_vm1, %v2424_v44 }
 0x22e   : > { %8938 = vmatmul.mubr.msk.bf16.gmra.mrb[24].mxu0 %vm278_vm1, %v2425_v61 }
 0x22f   : > { %8941 = vmatprep.mubr.msk.bf16.mxu0 %vm278_vm1, %v10538_v43 }
 0x236   : > { %8942 = vmatmul.mubr.msk.bf16.gmra.mrb[28].mxu0 %vm278_vm1, %v2427_v9 }
 0x237   : > { %8947 = vmatprep.mubr.msk.bf16.mxu0 %vm278_vm1, %v10400_v35  ;;  %v2704_v35 = vld [vmem:[#allocation2 + $0x19a] sm:$0xff] }
 0x23e   : > { %8948 = vmatmul.mubr.msk.bf16.vlgmr.msra.gmra.mrb[0].mxu0 %vm278_vm1, %v10412_v49  ;;  %v2705_v49 = vld [vmem:[#allocation2 + $0x1a2] sm:$0xff] }
 0x23f   : > { %8951 = vmatprep.mubr.msk.bf16.mxu0 %vm278_vm1, %v10414_v30  ;;  %v2721_v30 = vpack.c.bf16 %v2705_v49, %v2704_v35 }
 0x246   : > { %8952 = vmatmul.mubr.msk.bf16.gmra.mrb[4].mxu0 %vm278_vm1, %v10420_v58  ;;  %v8206_v58 = vld [vmem:[%s12081_s4 + $0x4] sm:$0xf] }
 0x247   : > { %8955 = vmatprep.mubr.msk.bf16.mxu0 %vm278_vm1, %v10422_v63  ;;  %9806 = vmatprep.subr.msk.bf16.mxu1 %vm532_vm0, %v8206_v58  ;;  %v3362_v63 = vsel %vm532_vm0, %v8206_v58, 0 }
 0x248   : > { %8980 = vmatpush3.bf16.msra.mxu1 %v3362_v63  ;;  %v10728_v63 = vld [vmem:[%s12081_s4 + $0x8] sm:$0xf] }
 0x24e   : > { %8956 = vmatmul.mubr.msk.bf16.gmra.mrb[8].mxu0 %vm278_vm1, %v10428_v8  ;;  %v3263_v8 = vld [vmem:[#allocation3 + $0x1] sm:$0xff] }
 0x24f   : > { %8959 = vmatprep.mubr.msk.bf16.mxu0 %vm278_vm1, %v10430_v11  ;;  %v3264_v11 = vld [vmem:[#allocation3 + $0x9] sm:$0xff] }
 0x256   : > { %8960 = vmatmul.mubr.msk.bf16.gmra.mrb[12].mxu0 %vm278_vm1, %v10436_v20  ;;  %v3295_v20 = vpack.c.bf16 %v3264_v11, %v3263_v8 }
 0x257   : > { %8963 = vmatprep.mubr.msk.bf16.mxu0 %vm278_vm1, %v10438_v22  ;;  %v10675_v22 = vld [vmem:[%s12081_s4] sm:$0xf] }
 0x258   : > { %8981 = vmatprep.mubr.msk.bf16.mxu1 %vm278_vm1, %v3295_v20  ;;  %9807 = vmatprep.subr.msk.bf16.mxu1 %vm532_vm0, %v10675_v22  ;;  %v3574_v9 = vsel %vm532_vm0, %v10675_v22, 0 }
 0x25e   : > { %8964 = vmatmul.mubr.msk.bf16.gmra.mrb[16].mxu0 %vm278_vm1, %v10444_v31  ;;  %v10682_v31 = vld [vmem:[%s12079_s2] ss:$0 sm:$0xff] }
 0x25f   : > { %8967 = vmatprep.mubr.msk.bf16.mxu0 %vm278_vm1, %v10446_v33 }
 0x266   : > { %8968 = vmatmul.mubr.msk.bf16.gmra.mrb[20].mxu0 %vm278_vm1, %v10452_v48  ;;  %v10687_v48 = vld [vmem:[%s12080_s3] ss:$0 sm:$0xff] }
 0x267   : > { %8971 = vmatprep.mubr.msk.bf16.mxu0 %vm278_vm1, %v10454_v50 }
 0x26e   : > { %8972 = vmatmul.mubr.msk.bf16.gmra.mrb[24].mxu0 %vm278_vm1, %v10460_v57 }
 0x26f   : > { %8975 = vmatprep.mubr.msk.bf16.mxu0 %vm278_vm1, %v10577_v62 }
 0x276   : > { %8976 = vmatmul.mubr.msk.bf16.gmra.mrb[28].mxu0 %vm278_vm1, %v2721_v30 }
 0x311   : > { %v8949_v33 = vpop.f32.mrb[0].mxu0 }
 0x312   : > { %v2977_v50 = vmul.f32 %v8949_v33, %v10682_v31  ;;  %v2809_v57 = vpop.f32.mrb[1].mxu0 }
 0x313   : > { %v2975_v43 = vmul.f32 %v10682_v31, %v2809_v57  ;;  %v8950_v62 = vpop.f32.mrb[2].mxu0 }
 0x314   : > { %v3016_v10 = vadd.f32 %v10687_v48, %v2977_v50  ;;  %v2978_v15 = vmul.f32 %v8950_v62, %v10682_v31  ;;  %v2812_v16 = vpop.f32.mrb[3].mxu0 }
 0x315   : > { %v3014_v21 = vadd.f32 %v10687_v48, %v2975_v43  ;;  %v2976_v28 = vmul.f32 %v10682_v31, %v2812_v16 }
 0x316   : > { %vm3048_vm4 = vcmp.gt.f32.partialorder %v3016_v10, 0.0  ;;  %v3080_v36 = vmul.f32 0.1, %v3016_v10  ;;  %v3017_v38 = vadd.f32 %v10687_v48, %v2978_v15 }
 0x317   : > { %vm3046_vm5 = vcmp.gt.f32.partialorder %v3014_v21, 0.0  ;;  %v3078_v45 = vmul.f32 0.1, %v3014_v21  ;;  %v3015_v46 = vadd.f32 %v10687_v48, %v2976_v28 }
 0x318   : > { %v3112_v51 = vsel %vm3048_vm4, %v3016_v10, %v3080_v36  ;;  %vm3049_vm6 = vcmp.gt.f32.partialorder %v3017_v38, 0.0  ;;  %v3081_v52 = vmul.f32 0.1, %v3017_v38 }
 0x319   : > { %3184 = vst.msk [vmem:[#allocation3 + $0x31] sm:$0xff] %vm278_vm1, %v3112_v51  ;;  %v3110_v59 = vsel %vm3046_vm5, %v3014_v21, %v3078_v45  ;;  %vm3047_vm7 = vcmp.gt.f32.partialorder %v3015_v46, 0.0  ;;  %v3079_v60 = vmul.f32 0.1, %v3015_v46  ;;  %v8953_v5 = vpop.f32.mrb[4].mxu0 }
 0x31a   : > { %3182 = vst.msk [vmem:[#allocation3 + $0x19] sm:$0xff] %vm278_vm1, %v3110_v59  ;;  %v3113_v6 = vsel %vm3049_vm6, %v3017_v38, %v3081_v52  ;;  %v2981_v13 = vmul.f32 %v8953_v5, %v10682_v31  ;;  %v2825_v14 = vpop.f32.mrb[5].mxu0 }
 0x31b   : > { %3185 = vst.msk [vmem:[#allocation3 + $0x39] sm:$0xff] %vm278_vm1, %v3113_v6  ;;  %v3111_v24 = vsel %vm3047_vm7, %v3015_v46, %v3079_v60  ;;  %v2979_v34 = vmul.f32 %v10682_v31, %v2825_v14  ;;  %v8954_v17 = vpop.f32.mrb[6].mxu0 }
 0x31c   : > { %3183 = vst.msk [vmem:[#allocation3 + $0x21] sm:$0xff] %vm278_vm1, %v3111_v24  ;;  %v3020_v18 = vadd.f32 %v10687_v48, %v2981_v13  ;;  %v2982_v19 = vmul.f32 %v8954_v17, %v10682_v31  ;;  %v2828_v23 = vpop.f32.mrb[7].mxu0 }
 0x31d   : > { %v3018_v25 = vadd.f32 %v10687_v48, %v2979_v34  ;;  %v2980_v26 = vmul.f32 %v10682_v31, %v2828_v23 }
 0x31e   : > { %vm3052_vm8 = vcmp.gt.f32.partialorder %v3020_v18, 0.0  ;;  %v3084_v29 = vmul.f32 0.1, %v3020_v18  ;;  %v3021_v39 = vadd.f32 %v10687_v48, %v2982_v19 }
 0x31f   : > { %vm3050_vm9 = vcmp.gt.f32.partialorder %v3018_v25, 0.0  ;;  %v3082_v41 = vmul.f32 0.1, %v3018_v25  ;;  %v3019_v42 = vadd.f32 %v10687_v48, %v2980_v26 }
 0x320   : > { %v3116_v47 = vsel %vm3052_vm8, %v3020_v18, %v3084_v29  ;;  %vm3053_vm10 = vcmp.gt.f32.partialorder %v3021_v39, 0.0  ;;  %v3085_v53 = vmul.f32 0.1, %v3021_v39  ;;  %v3267_v35 = vld [vmem:[#allocation3 + $0x31] sm:$0xff] }
 0x321   : > { %3188 = vst.msk [vmem:[#allocation3 + $0x61] sm:$0xff] %vm278_vm1, %v3116_v47  ;;  %v3114_v54 = vsel %vm3050_vm9, %v3018_v25, %v3082_v41  ;;  %vm3051_vm11 = vcmp.gt.f32.partialorder %v3019_v42, 0.0  ;;  %v3083_v0 = vmul.f32 0.1, %v3019_v42  ;;  %v8957_v1 = vpop.f32.mrb[8].mxu0  ;;  %v3265_v44 = vld [vmem:[#allocation3 + $0x19] sm:$0xff] }
 0x322   : > { %3186 = vst.msk [vmem:[#allocation3 + $0x49] sm:$0xff] %vm278_vm1, %v3114_v54  ;;  %v3117_v27 = vsel %vm3053_vm10, %v3021_v39, %v3085_v53  ;;  %v2985_v40 = vmul.f32 %v8957_v1, %v10682_v31  ;;  %v2841_v2 = vpop.f32.mrb[9].mxu0  ;;  %v3268_v7 = vld [vmem:[#allocation3 + $0x39] sm:$0xff] }
 0x323   : > { %3189 = vst.msk [vmem:[#allocation3 + $0x69] sm:$0xff] %vm278_vm1, %v3117_v27  ;;  %v3115_v12 = vsel %vm3051_vm11, %v3019_v42, %v3083_v0  ;;  %v2983_v32 = vmul.f32 %v10682_v31, %v2841_v2  ;;  %v8958_v37 = vpop.f32.mrb[10].mxu0  ;;  %v3266_v55 = vld [vmem:[#allocation3 + $0x21] sm:$0xff]  ;;  %v10723_v58 = vpack.c.bf16 %v3268_v7, %v3267_v35 }
 0x324   : > { %3187 = vst.msk [vmem:[#allocation3 + $0x51] sm:$0xff] %vm278_vm1, %v3115_v12  ;;  %v3024_v56 = vadd.f32 %v10687_v48, %v2985_v40  ;;  %v2986_v61 = vmul.f32 %v8958_v37, %v10682_v31  ;;  %v2844_v3 = vpop.f32.mrb[11].mxu0  ;;  %v10717_v4 = vpack.c.bf16 %v3266_v55, %v3265_v44 }
 0x325   : > { %v3022_v49 = vadd.f32 %v10687_v48, %v2983_v32  ;;  %v2984_v30 = vmul.f32 %v10682_v31, %v2844_v3 }
 0x326   : > { %vm3056_vm12 = vcmp.gt.f32.partialorder %v3024_v56, 0.0  ;;  %v3088_v8 = vmul.f32 0.1, %v3024_v56  ;;  %v3025_v11 = vadd.f32 %v10687_v48, %v2986_v61  ;;  %8982 = vmatmul.mubr.msk.bf16.vlgmr.msra.gmra.mrb[0].mxu1 %vm278_vm1, %v10717_v4 }
 0x327   : > { %vm3054_vm13 = vcmp.gt.f32.partialorder %v3022_v49, 0.0  ;;  %v3086_v20 = vmul.f32 0.1, %v3022_v49  ;;  %v3023_v22 = vadd.f32 %v10687_v48, %v2984_v30  ;;  %9014 = vmatpush3.bf16.msra.mxu1 %v3574_v9  ;;  %8985 = vmatprep.mubr.msk.bf16.mxu1 %vm278_vm1, %v10723_v58 }
 0x328   : > { %v3120_v33 = vsel %vm3056_vm12, %v3024_v56, %v3088_v8  ;;  %vm3057_vm14 = vcmp.gt.f32.partialorder %v3025_v11, 0.0  ;;  %v3089_v50 = vmul.f32 0.1, %v3025_v11  ;;  %9808 = vmatprep.subr.msk.bf16.mxu1 %vm532_vm0, %v10728_v63  ;;  %v3271_v5 = vld [vmem:[#allocation3 + $0x61] sm:$0xff] }
 0x329   : > { %3192 = vst.msk [vmem:[#allocation3 + $0x91] sm:$0xff] %vm278_vm1, %v3120_v33  ;;  %v3118_v57 = vsel %vm3054_vm13, %v3022_v49, %v3086_v20  ;;  %vm3055_vm15 = vcmp.gt.f32.partialorder %v3023_v22, 0.0  ;;  %v3087_v43 = vmul.f32 0.1, %v3023_v22  ;;  %v8961_v62 = vpop.f32.mrb[12].mxu0  ;;  %v3269_v45 = vld [vmem:[#allocation3 + $0x49] sm:$0xff] }
 0x32a   : > { %3190 = vst.msk [vmem:[#allocation3 + $0x79] sm:$0xff] %vm278_vm1, %v3118_v57  ;;  %v3121_v10 = vsel %vm3057_vm14, %v3025_v11, %v3089_v50  ;;  %v2989_v15 = vmul.f32 %v8961_v62, %v10682_v31  ;;  %v2857_v16 = vpop.f32.mrb[13].mxu0  ;;  %v3272_v21 = vld [vmem:[#allocation3 + $0x69] sm:$0xff] }
 0x32b   : > { %3193 = vst.msk [vmem:[#allocation3 + $0x99] sm:$0xff] %vm278_vm1, %v3121_v10  ;;  %v3119_v28 = vsel %vm3055_vm15, %v3023_v22, %v3087_v43  ;;  %v2987_v36 = vmul.f32 %v10682_v31, %v2857_v16  ;;  %v8962_v38 = vpop.f32.mrb[14].mxu0  ;;  %v3270_v46 = vld [vmem:[#allocation3 + $0x51] sm:$0xff]  ;;  %v10750_v14 = vpack.c.bf16 %v3272_v21, %v3271_v5 }
 0x32c   : > { %3191 = vst.msk [vmem:[#allocation3 + $0x81] sm:$0xff] %vm278_vm1, %v3119_v28  ;;  %v3028_v51 = vadd.f32 %v10687_v48, %v2989_v15  ;;  %v2990_v52 = vmul.f32 %v8962_v38, %v10682_v31  ;;  %v2860_v59 = vpop.f32.mrb[15].mxu0  ;;  %v10746_v60 = vpack.c.bf16 %v3270_v46, %v3269_v45 }
 0x32d   : > { %v3026_v6 = vadd.f32 %v10687_v48, %v2987_v36  ;;  %v2988_v13 = vmul.f32 %v10682_v31, %v2860_v59 }
 0x32e   : > { %vm3060_vm3 = vcmp.gt.f32.partialorder %v3028_v51, 0.0  ;;  %v3092_v24 = vmul.f32 0.1, %v3028_v51  ;;  %v3029_v34 = vadd.f32 %v10687_v48, %v2990_v52  ;;  %8986 = vmatmul.mubr.msk.bf16.gmra.mrb[4].mxu1 %vm278_vm1, %v10746_v60 }
 0x32f   : > { %vm3058_vm4 = vcmp.gt.f32.partialorder %v3026_v6, 0.0  ;;  %v3090_v17 = vmul.f32 0.1, %v3026_v6  ;;  %v3027_v18 = vadd.f32 %v10687_v48, %v2988_v13  ;;  %8989 = vmatprep.mubr.msk.bf16.mxu1 %vm278_vm1, %v10750_v14 }
 0x330   : > { %v3124_v19 = vsel %vm3060_vm3, %v3028_v51, %v3092_v24  ;;  %vm3061_vm5 = vcmp.gt.f32.partialorder %v3029_v34, 0.0  ;;  %v3093_v23 = vmul.f32 0.1, %v3029_v34  ;;  %v3275_v32 = vld [vmem:[#allocation3 + $0x91] sm:$0xff] }
 0x331   : > { %3196 = vst.msk [vmem:[#allocation3 + $0xc1] sm:$0xff] %vm278_vm1, %v3124_v19  ;;  %v3122_v25 = vsel %vm3058_vm4, %v3026_v6, %v3090_v17  ;;  %vm3059_vm6 = vcmp.gt.f32.partialorder %v3027_v18, 0.0  ;;  %v3091_v26 = vmul.f32 0.1, %v3027_v18  ;;  %v8965_v29 = vpop.f32.mrb[16].mxu0  ;;  %v3273_v1 = vld [vmem:[#allocation3 + $0x79] sm:$0xff] }
 0x332   : > { %3194 = vst.msk [vmem:[#allocation3 + $0xa9] sm:$0xff] %vm278_vm1, %v3122_v25  ;;  %v3125_v39 = vsel %vm3061_vm5, %v3029_v34, %v3093_v23  ;;  %v2993_v41 = vmul.f32 %v8965_v29, %v10682_v31  ;;  %v2873_v42 = vpop.f32.mrb[17].mxu0  ;;  %v3276_v47 = vld [vmem:[#allocation3 + $0x99] sm:$0xff] }
 0x333   : > { %3197 = vst.msk [vmem:[#allocation3 + $0xc9] sm:$0xff] %vm278_vm1, %v3125_v39  ;;  %v3123_v53 = vsel %vm3059_vm6, %v3027_v18, %v3091_v26  ;;  %v2991_v54 = vmul.f32 %v10682_v31, %v2873_v42  ;;  %v8966_v0 = vpop.f32.mrb[18].mxu0  ;;  %v3274_v27 = vld [vmem:[#allocation3 + $0x81] sm:$0xff]  ;;  %v10770_v55 = vpack.c.bf16 %v3276_v47, %v3275_v32 }
 0x334   : > { %3195 = vst.msk [vmem:[#allocation3 + $0xb1] sm:$0xff] %vm278_vm1, %v3123_v53  ;;  %v3032_v40 = vadd.f32 %v10687_v48, %v2993_v41  ;;  %v2994_v2 = vmul.f32 %v8966_v0, %v10682_v31  ;;  %v2876_v7 = vpop.f32.mrb[19].mxu0  ;;  %v10766_v12 = vpack.c.bf16 %v3274_v27, %v3273_v1 }
 0x335   : > { %v3030_v37 = vadd.f32 %v10687_v48, %v2991_v54  ;;  %v2992_v44 = vmul.f32 %v10682_v31, %v2876_v7 }
 0x336   : > { %vm3064_vm7 = vcmp.gt.f32.partialorder %v3032_v40, 0.0  ;;  %v3096_v56 = vmul.f32 0.1, %v3032_v40  ;;  %v3033_v61 = vadd.f32 %v10687_v48, %v2994_v2  ;;  %8990 = vmatmul.mubr.msk.bf16.gmra.mrb[8].mxu1 %vm278_vm1, %v10766_v12 }
 0x337   : > { %vm3062_vm8 = vcmp.gt.f32.partialorder %v3030_v37, 0.0  ;;  %v3094_v3 = vmul.f32 0.1, %v3030_v37  ;;  %v3031_v9 = vadd.f32 %v10687_v48, %v2992_v44  ;;  %8993 = vmatprep.mubr.msk.bf16.mxu1 %vm278_vm1, %v10770_v55 }
 0x338   : > { %v3128_v35 = vsel %vm3064_vm7, %v3032_v40, %v3096_v56  ;;  %vm3065_vm9 = vcmp.gt.f32.partialorder %v3033_v61, 0.0  ;;  %v3097_v49 = vmul.f32 0.1, %v3033_v61  ;;  %v3279_v38 = vld [vmem:[#allocation3 + $0xc1] sm:$0xff] }
 0x339   : > { %3200 = vst.msk [vmem:[#allocation3 + $0xf1] sm:$0xff] %vm278_vm1, %v3128_v35  ;;  %v3126_v30 = vsel %vm3062_vm8, %v3030_v37, %v3094_v3  ;;  %vm3063_vm10 = vcmp.gt.f32.partialorder %v3031_v9, 0.0  ;;  %v3095_v8 = vmul.f32 0.1, %v3031_v9  ;;  %v8969_v11 = vpop.f32.mrb[20].mxu0  ;;  %v3277_v10 = vld [vmem:[#allocation3 + $0xa9] sm:$0xff] }
 0x33a   : > { %3198 = vst.msk [vmem:[#allocation3 + $0xd9] sm:$0xff] %vm278_vm1, %v3126_v30  ;;  %v3129_v20 = vsel %vm3065_vm9, %v3033_v61, %v3097_v49  ;;  %v2997_v22 = vmul.f32 %v8969_v11, %v10682_v31  ;;  %v2889_v33 = vpop.f32.mrb[21].mxu0  ;;  %v3280_v50 = vld [vmem:[#allocation3 + $0xc9] sm:$0xff] }
 0x33b   : > { %3201 = vst.msk [vmem:[#allocation3 + $0xf9] sm:$0xff] %vm278_vm1, %v3129_v20  ;;  %v3127_v57 = vsel %vm3063_vm10, %v3031_v9, %v3095_v8  ;;  %v2995_v43 = vmul.f32 %v10682_v31, %v2889_v33  ;;  %v8970_v62 = vpop.f32.mrb[22].mxu0  ;;  %v3278_v15 = vld [vmem:[#allocation3 + $0xb1] sm:$0xff]  ;;  %v10790_v51 = vpack.c.bf16 %v3280_v50, %v3279_v38 }
 0x33c   : > { %3199 = vst.msk [vmem:[#allocation3 + $0xe1] sm:$0xff] %vm278_vm1, %v3127_v57  ;;  %v3036_v16 = vadd.f32 %v10687_v48, %v2997_v22  ;;  %v2998_v21 = vmul.f32 %v8970_v62, %v10682_v31  ;;  %v2892_v28 = vpop.f32.mrb[23].mxu0  ;;  %v10786_v36 = vpack.c.bf16 %v3278_v15, %v3277_v10 }
 0x33d   : > { %v3034_v45 = vadd.f32 %v10687_v48, %v2995_v43  ;;  %v2996_v46 = vmul.f32 %v10682_v31, %v2892_v28 }
 0x33e   : > { %vm3068_vm11 = vcmp.gt.f32.partialorder %v3036_v16, 0.0  ;;  %v3100_v52 = vmul.f32 0.1, %v3036_v16  ;;  %v3037_v59 = vadd.f32 %v10687_v48, %v2998_v21  ;;  %8994 = vmatmul.mubr.msk.bf16.gmra.mrb[12].mxu1 %vm278_vm1, %v10786_v36 }
 0x33f   : > { %vm3066_vm12 = vcmp.gt.f32.partialorder %v3034_v45, 0.0  ;;  %v3098_v5 = vmul.f32 0.1, %v3034_v45  ;;  %v3035_v6 = vadd.f32 %v10687_v48, %v2996_v46  ;;  %8997 = vmatprep.mubr.msk.bf16.mxu1 %vm278_vm1, %v10790_v51 }
 0x340   : > { %v3132_v13 = vsel %vm3068_vm11, %v3036_v16, %v3100_v52  ;;  %vm3069_vm13 = vcmp.gt.f32.partialorder %v3037_v59, 0.0  ;;  %v3101_v24 = vmul.f32 0.1, %v3037_v59  ;;  %v3283_v27 = vld [vmem:[#allocation3 + $0xf1] sm:$0xff] }
 0x341   : > { %3204 = vst.msk [vmem:[#allocation3 + $0x121] sm:$0xff] %vm278_vm1, %v3132_v13  ;;  %v3130_v34 = vsel %vm3066_vm12, %v3034_v45, %v3098_v5  ;;  %vm3067_vm14 = vcmp.gt.f32.partialorder %v3035_v6, 0.0  ;;  %v3099_v17 = vmul.f32 0.1, %v3035_v6  ;;  %v8973_v18 = vpop.f32.mrb[24].mxu0  ;;  %v3281_v42 = vld [vmem:[#allocation3 + $0xd9] sm:$0xff] }
 0x342   : > { %3202 = vst.msk [vmem:[#allocation3 + $0x109] sm:$0xff] %vm278_vm1, %v3130_v34  ;;  %v3133_v19 = vsel %vm3069_vm13, %v3037_v59, %v3101_v24  ;;  %v3001_v23 = vmul.f32 %v8973_v18, %v10682_v31  ;;  %v2905_v25 = vpop.f32.mrb[25].mxu0  ;;  %v3284_v26 = vld [vmem:[#allocation3 + $0xf9] sm:$0xff]  ;;  %vm7890_vm13 = vcmask 1041409  }
 0x343   : > { %3205 = vst.msk [vmem:[#allocation3 + $0x129] sm:$0xff] %vm278_vm1, %v3133_v19  ;;  %v3131_v29 = vsel %vm3067_vm14, %v3035_v6, %v3099_v17  ;;  %v2999_v39 = vmul.f32 %v10682_v31, %v2905_v25  ;;  %v8974_v41 = vpop.f32.mrb[26].mxu0  ;;  %v3282_v47 = vld [vmem:[#allocation3 + $0xe1] sm:$0xff]  ;;  %v10810_v7 = vpack.c.bf16 %v3284_v26, %v3283_v27  ;;  %v3216_v27 = vld [vmem:[#allocation3 + $0x18] sm:$0xff]  ;;  %vm7892_vm14 = vcmask 1042434  }
 0x344   : > { %3203 = vst.msk [vmem:[#allocation3 + $0x111] sm:$0xff] %vm278_vm1, %v3131_v29  ;;  %v3040_v53 = vadd.f32 %v10687_v48, %v3001_v23  ;;  %v3002_v54 = vmul.f32 %v8974_v41, %v10682_v31  ;;  %v2908_v0 = vpop.f32.mrb[27].mxu0  ;;  %v10806_v1 = vpack.c.bf16 %v3282_v47, %v3281_v42  ;;  %v3214_v29 = vld [vmem:[#allocation3] sm:$0xff] }
 0x345   : > { %v3038_v40 = vadd.f32 %v10687_v48, %v2999_v39  ;;  %v3000_v2 = vmul.f32 %v10682_v31, %v2908_v0  ;;  %v3215_v39 = vld [vmem:[#allocation3 + $0x8] sm:$0xff]  ;;  %v3219_v0 = vld [vmem:[#allocation3 + $0x38] sm:$0xff] }
 0x346   : > { %vm3072_vm15 = vcmp.gt.f32.partialorder %v3040_v53, 0.0  ;;  %v3104_v32 = vmul.f32 0.1, %v3040_v53  ;;  %v3041_v37 = vadd.f32 %v10687_v48, %v3002_v54  ;;  %8998 = vmatmul.mubr.msk.bf16.gmra.mrb[16].mxu1 %vm278_vm1, %v10806_v1  ;;  %v3246_v47 = vpack.c.bf16 %v3215_v39, %v3214_v29  ;;  %v3217_v54 = vld [vmem:[#allocation3 + $0x20] sm:$0xff]  ;;  %v3738_v39 = vld [vmem:[#allocation3 + $0xa] sm:$0xff] }
 0x347   : > { %vm3070_vm3 = vcmp.gt.f32.partialorder %v3038_v40, 0.0  ;;  %v3102_v44 = vmul.f32 0.1, %v3038_v40  ;;  %v3039_v56 = vadd.f32 %v10687_v48, %v3000_v2  ;;  %9001 = vmatprep.mubr.msk.bf16.mxu1 %vm278_vm1, %v10810_v7  ;;  %v3836_v2 = vsel %vm532_vm0, %v10728_v63, 0  ;;  %v3223_v63 = vld [vmem:[#allocation3 + $0x68] sm:$0xff] }
 0x348   : > { %v3136_v61 = vsel %vm3072_vm15, %v3040_v53, %v3104_v32  ;;  %vm3073_vm4 = vcmp.gt.f32.partialorder %v3041_v37, 0.0  ;;  %v3105_v3 = vmul.f32 0.1, %v3041_v37  ;;  %v3287_v21 = vld [vmem:[#allocation3 + $0x121] sm:$0xff]  ;;  %v3218_v32 = vld [vmem:[#allocation3 + $0x30] sm:$0xff]  ;;  %vm7894_vm15 = vcmask 1043459  }
 0x349   : > { %3208 = vst.msk [vmem:[#allocation3 + $0x151] sm:$0xff] %vm278_vm1, %v3136_v61  ;;  %v3134_v9 = vsel %vm3070_vm3, %v3038_v40, %v3102_v44  ;;  %vm3071_vm5 = vcmp.gt.f32.partialorder %v3039_v56, 0.0  ;;  %v3103_v35 = vmul.f32 0.1, %v3039_v56  ;;  %v8977_v49 = vpop.f32.mrb[28].mxu0  ;;  %v3285_v57 = vld [vmem:[#allocation3 + $0x109] sm:$0xff]  ;;  %v10855_v40 = vpack.c.bf16 %v3217_v54, %v3216_v27 }
 0x34a   : > { %3206 = vst.msk [vmem:[#allocation3 + $0x139] sm:$0xff] %vm278_vm1, %v3134_v9  ;;  %v3137_v30 = vsel %vm3073_vm4, %v3041_v37, %v3105_v3  ;;  %v3005_v8 = vmul.f32 %v8977_v49, %v10682_v31  ;;  %v2921_v11 = vpop.f32.mrb[29].mxu0  ;;  %v3288_v20 = vld [vmem:[#allocation3 + $0x129] sm:$0xff]  ;;  %v10859_v37 = vpack.c.bf16 %v3219_v0, %v3218_v32  ;;  %v10864_v44 = vld [vmem:[%s12081_s4 + $0xc] sm:$0xf]  ;;  %v3222_v9 = vld [vmem:[#allocation3 + $0x60] sm:$0xff] }
 0x34b   : > { %3209 = vst.msk [vmem:[#allocation3 + $0x159] sm:$0xff] %vm278_vm1, %v3137_v30  ;;  %v3135_v22 = vsel %vm3071_vm5, %v3039_v56, %v3103_v35  ;;  %v3003_v33 = vmul.f32 %v10682_v31, %v2921_v11  ;;  %v8978_v50 = vpop.f32.mrb[30].mxu0  ;;  %v3286_v43 = vld [vmem:[#allocation3 + $0x111] sm:$0xff]  ;;  %v10830_v45 = vpack.c.bf16 %v3288_v20, %v3287_v21  ;;  %v3220_v61 = vld [vmem:[#allocation3 + $0x48] sm:$0xff]  ;;  %v10874_v35 = vpack.c.bf16 %v3223_v63, %v3222_v9  ;;  %v3225_v49 = vld [vmem:[#allocation3 + $0x80] sm:$0xff] }
 0x34c   : > { %3207 = vst.msk [vmem:[#allocation3 + $0x141] sm:$0xff] %vm278_vm1, %v3135_v22  ;;  %v3044_v62 = vadd.f32 %v10687_v48, %v3005_v8  ;;  %v3006_v10 = vmul.f32 %v8978_v50, %v10682_v31  ;;  %v2924_v15 = vpop.f32.mrb[31].mxu0  ;;  %v10826_v16 = vpack.c.bf16 %v3286_v43, %v3285_v57  ;;  %v3221_v56 = vld [vmem:[#allocation3 + $0x50] sm:$0xff]  ;;  %v3227_v30 = vld [vmem:[#allocation3 + $0x98] sm:$0xff]  ;;  %v3231_v50 = vld [vmem:[#allocation3 + $0xc8] sm:$0xff]  ;;  %v4130_v63 = vsel %vm532_vm0, %v10864_v44, 0 }
 0x34d   : > { %v3042_v28 = vadd.f32 %v10687_v48, %v3003_v33  ;;  %v3004_v38 = vmul.f32 %v10682_v31, %v2924_v15  ;;  %v10872_v3 = vpack.c.bf16 %v3221_v56, %v3220_v61  ;;  %v3224_v8 = vld [vmem:[#allocation3 + $0x78] sm:$0xff]  ;;  %v3226_v20 = vld [vmem:[#allocation3 + $0x90] sm:$0xff]  ;;  %v3228_v57 = vld [vmem:[#allocation3 + $0xa8] sm:$0xff]  ;;  %vm7896_vm3 = vcmask 1044484  }
 0x34e   : > { %vm3076_vm6 = vcmp.gt.f32.partialorder %v3044_v62, 0.0  ;;  %v3108_v46 = vmul.f32 0.1, %v3044_v62  ;;  %v3045_v52 = vadd.f32 %v10687_v48, %v3006_v10  ;;  %9002 = vmatmul.mubr.msk.bf16.gmra.mrb[20].mxu1 %vm278_vm1, %v10826_v16  ;;  %v10880_v11 = vpack.c.bf16 %v3225_v49, %v3224_v8  ;;  %v3229_v33 = vld [vmem:[#allocation3 + $0xb0] sm:$0xff]  ;;  %v3233_v15 = vld [vmem:[#allocation3 + $0xe0] sm:$0xff]  ;;  %v3235_v21 = vld [vmem:[#allocation3 + $0xf8] sm:$0xff] }
 0x34f   : > { %vm3074_vm7 = vcmp.gt.f32.partialorder %v3042_v28, 0.0  ;;  %v3106_v59 = vmul.f32 0.1, %v3042_v28  ;;  %v3043_v5 = vadd.f32 %v10687_v48, %v3004_v38  ;;  %9005 = vmatprep.mubr.msk.bf16.mxu1 %vm278_vm1, %v10830_v45  ;;  %v10882_v22 = vpack.c.bf16 %v3227_v30, %v3226_v20  ;;  %v3737_v29 = vld [vmem:[#allocation3 + $0x2] sm:$0xff]  ;;  %v3739_v0 = vld [vmem:[#allocation3 + $0x1a] sm:$0xff]  ;;  %v3743_v49 = vld [vmem:[#allocation3 + $0x4a] sm:$0xff] }
 0x350   : > { %v3140_v6 = vsel %vm3076_vm6, %v3044_v62, %v3108_v46  ;;  %vm3077_vm8 = vcmp.gt.f32.partialorder %v3045_v52, 0.0  ;;  %v3109_v13 = vmul.f32 0.1, %v3045_v52  ;;  %v3291_v25 = vld [vmem:[#allocation3 + $0x151] sm:$0xff]  ;;  %v10888_v43 = vpack.c.bf16 %v3229_v33, %v3228_v57  ;;  %v3230_v62 = vld [vmem:[#allocation3 + $0xc0] sm:$0xff] }
 0x351   : > { %3212 = vst.msk [vmem:[#allocation3 + $0x181] sm:$0xff] %vm278_vm1, %v3140_v6  ;;  %v3138_v31 = vsel %vm3074_vm7, %v3042_v28, %v3106_v59  ;;  %vm3075_vm9 = vcmp.gt.f32.partialorder %v3043_v5, 0.0  ;;  %v3107_v24 = vmul.f32 0.1, %v3043_v5  ;;  %v3289_v19 = vld [vmem:[#allocation3 + $0x139] sm:$0xff]  ;;  %v10890_v10 = vpack.c.bf16 %v3231_v50, %v3230_v62  ;;  %v3234_v46 = vld [vmem:[#allocation3 + $0xf0] sm:$0xff] }
 0x352   : > { %3210 = vst.msk [vmem:[#allocation3 + $0x169] sm:$0xff] %vm278_vm1, %v3138_v31  ;;  %v3141_v34 = vsel %vm3077_vm8, %v3045_v52, %v3109_v13  ;;  %v3292_v17 = vld [vmem:[#allocation3 + $0x159] sm:$0xff]  ;;  %v10898_v52 = vpack.c.bf16 %v3235_v21, %v3234_v46  ;;  %v3237_v59 = vld [vmem:[#allocation3 + $0x110] sm:$0xff]  ;;  %v3236_v6 = vld [vmem:[#allocation3 + $0x108] sm:$0xff]  ;;  %vm7898_vm4 = vcmask 1045509   ;;  %vm7900_vm6 = vcmask 1046534  }
 0x353   : > { %3213 = vst.msk [vmem:[#allocation3 + $0x189] sm:$0xff] %vm278_vm1, %v3141_v34  ;;  %v3139_v18 = vsel %vm3075_vm9, %v3043_v5, %v3107_v24  ;;  %v3290_v48 = vld [vmem:[#allocation3 + $0x141] sm:$0xff]  ;;  %v10844_v26 = vpack.c.bf16 %v3292_v17, %v3291_v25  ;;  %v3232_v28 = vld [vmem:[#allocation3 + $0xd8] sm:$0xff]  ;;  %v10904_v13 = vpack.c.bf16 %v3237_v59, %v3236_v6  ;;  %v3746_v20 = vld [vmem:[#allocation3 + $0x6a] sm:$0xff]  ;;  %vm7902_vm7 = vcmask 1047559  }
 0x354   : > { %3211 = vst.msk [vmem:[#allocation3 + $0x171] sm:$0xff] %vm278_vm1, %v3139_v18  ;;  %v10842_v23 = vpack.c.bf16 %v3290_v48, %v3289_v19  ;;  %v10896_v38 = vpack.c.bf16 %v3233_v15, %v3232_v28  ;;  %v3239_v5 = vld [vmem:[#allocation3 + $0x128] sm:$0xff]  ;;  %v3238_v31 = vld [vmem:[#allocation3 + $0x120] sm:$0xff]  ;;  %v3243_v17 = vld [vmem:[#allocation3 + $0x158] sm:$0xff] }
 0x355   : > { %v10906_v24 = vpack.c.bf16 %v3239_v5, %v3238_v31  ;;  %v3241_v34 = vld [vmem:[#allocation3 + $0x140] sm:$0xff]  ;;  %v3240_v18 = vld [vmem:[#allocation3 + $0x138] sm:$0xff]  ;;  %v3242_v48 = vld [vmem:[#allocation3 + $0x150] sm:$0xff] }
 0x356   : > { %9006 = vmatmul.mubr.msk.bf16.gmra.mrb[24].mxu1 %vm278_vm1, %v10842_v23  ;;  %v10912_v19 = vpack.c.bf16 %v3241_v34, %v3240_v18  ;;  %v10914_v25 = vpack.c.bf16 %v3243_v17, %v3242_v48  ;;  %v3740_v27 = vld [vmem:[#allocation3 + $0x22] sm:$0xff]  ;;  %v3742_v32 = vld [vmem:[#allocation3 + $0x3a] sm:$0xff]  ;;  %v3744_v30 = vld [vmem:[#allocation3 + $0x52] sm:$0xff] }
 0x357   : > { %9009 = vmatprep.mubr.msk.bf16.mxu1 %vm278_vm1, %v10844_v26  ;;  %v10925_v56 = vpack.c.bf16 %v3740_v27, %v3739_v0  ;;  %v8273_v9 = vld [vmem:[%s12081_s4 + $0x10] sm:$0xf]  ;;  %v3749_v62 = vld [vmem:[#allocation3 + $0x92] sm:$0xff]  ;;  %v3751_v46 = vld [vmem:[#allocation3 + $0xaa] sm:$0xff] }
 0x358   : > { %v3745_v8 = vld [vmem:[#allocation3 + $0x62] sm:$0xff]  ;;  %v3747_v50 = vld [vmem:[#allocation3 + $0x7a] sm:$0xff]  ;;  %v3752_v59 = vld [vmem:[#allocation3 + $0xb2] sm:$0xff] }
 0x359   : > { %v3293_v41 = vld [vmem:[#allocation3 + $0x169] sm:$0xff]  ;;  %v10941_v33 = vpack.c.bf16 %v3746_v20, %v3745_v8  ;;  %v3750_v15 = vld [vmem:[#allocation3 + $0x9a] sm:$0xff]  ;;  %v10955_v31 = vpack.c.bf16 %v3752_v59, %v3751_v46  ;;  %v3757_v48 = vld [vmem:[#allocation3 + $0xf2] sm:$0xff]  ;;  %v4424_v46 = vsel %vm532_vm0, %v8273_v9, 0 }
 0x35a   : > { %v3748_v57 = vld [vmem:[#allocation3 + $0x82] sm:$0xff]  ;;  %v10949_v28 = vpack.c.bf16 %v3750_v15, %v3749_v62  ;;  %v3754_v6 = vld [vmem:[#allocation3 + $0xca] sm:$0xff]  ;;  %v3755_v17 = vld [vmem:[#allocation3 + $0xda] sm:$0xff] }
 0x35b   : > { %v3294_v42 = vld [vmem:[#allocation3 + $0x171] sm:$0xff]  ;;  %v10947_v21 = vpack.c.bf16 %v3748_v57, %v3747_v50  ;;  %v3753_v5 = vld [vmem:[#allocation3 + $0xc2] sm:$0xff]  ;;  %v3766_v8 = vld [vmem:[#allocation3 + $0x15a] sm:$0xff] }
 0x35c   : > { %v10850_v53 = vpack.c.bf16 %v3294_v42, %v3293_v41  ;;  %v3245_v41 = vld [vmem:[#allocation3 + $0x170] sm:$0xff]  ;;  %v3244_v42 = vld [vmem:[#allocation3 + $0x168] sm:$0xff]  ;;  %v10957_v34 = vpack.c.bf16 %v3754_v6, %v3753_v5  ;;  %v8290_v59 = vld [vmem:[%s12081_s4 + $0x14] sm:$0xf] }
 0x35d   : > { %v10920_v54 = vpack.c.bf16 %v3245_v41, %v3244_v42  ;;  %v3756_v18 = vld [vmem:[#allocation3 + $0xe2] sm:$0xff]  ;;  %v3759_v42 = vld [vmem:[#allocation3 + $0x10a] sm:$0xff]  ;;  %v3768_v62 = vld [vmem:[#allocation3 + $0x172] sm:$0xff]  ;;  %v4718_v6 = vsel %vm532_vm0, %v8290_v59, 0 }
 0x35e   : > { %9010 = vmatmul.mubr.msk.bf16.gmra.mrb[28].mxu1 %vm278_vm1, %v10850_v53  ;;  %v3761_v0 = vld [vmem:[#allocation3 + $0x122] sm:$0xff]  ;;  %v3762_v27 = vld [vmem:[#allocation3 + $0x12a] sm:$0xff] }
 0x35f   : > { %9015 = vmatprep.mubr.msk.bf16.mxu1 %vm278_vm1, %v3246_v47  ;;  %v3769_v47 = vpack.c.bf16 %v3738_v39, %v3737_v29  ;;  %v3758_v29 = vld [vmem:[#allocation3 + $0xfa] sm:$0xff]  ;;  %v10963_v39 = vpack.c.bf16 %v3756_v18, %v3755_v17  ;;  %v3767_v57 = vld [vmem:[#allocation3 + $0x16a] sm:$0xff] }
 0x360   : > { %v10965_v41 = vpack.c.bf16 %v3758_v29, %v3757_v48  ;;  %v10987_v15 = vpack.c.bf16 %v3768_v62, %v3767_v57  ;;  %v8307_v17 = vld [vmem:[%s12081_s4 + $0x18] sm:$0xf]  ;;  %v8341_v18 = vld [vmem:[%s12081_s4 + $0x20] sm:$0xf]  ;;  %v5217_v48 = vld [vmem:[#allocation3 + $0x99] sm:$0xff] }
 0x361   : > { %v5214_v29 = vld [vmem:[#allocation3 + $0x79] sm:$0xff] }
 0x366   : > { %9016 = vmatmul.mubr.msk.bf16.vlgmr.msra.gmra.mrb[0].mxu1 %vm278_vm1, %v10855_v40 }
 0x367   : > { %9048 = vmatpush3.bf16.msra.mxu1 %v3836_v2  ;;  %9019 = vmatprep.mubr.msk.bf16.mxu1 %vm278_vm1, %v10859_v37  ;;  %v3741_v2 = vld [vmem:[#allocation3 + $0x32] sm:$0xff] }
 0x368   : > { %9809 = vmatprep.subr.msk.bf16.mxu1 %vm532_vm0, %v10864_v44  ;;  %v10929_v61 = vpack.c.bf16 %v3742_v32, %v3741_v2  ;;  %v10939_v44 = vpack.c.bf16 %v3744_v30, %v3743_v49  ;;  %v10973_v32 = vpack.c.bf16 %v3762_v27, %v3761_v0  ;;  %v3764_v49 = vld [vmem:[#allocation3 + $0x142] sm:$0xff]  ;;  %v3765_v30 = vld [vmem:[#allocation3 + $0x152] sm:$0xff] }
 0x369   : > { %v10981_v50 = vpack.c.bf16 %v3766_v8, %v3765_v30  ;;  %v5219_v27 = vld [vmem:[#allocation3 + $0xb1] sm:$0xff]  ;;  %v5220_v8 = vld [vmem:[#allocation3 + $0xc1] sm:$0xff] }
 0x36e   : > { %9020 = vmatmul.mubr.msk.bf16.gmra.mrb[4].mxu1 %vm278_vm1, %v10872_v3 }
 0x36f   : > { %9023 = vmatprep.mubr.msk.bf16.mxu1 %vm278_vm1, %v10874_v35 }
 0x376   : > { %9024 = vmatmul.mubr.msk.bf16.gmra.mrb[8].mxu1 %vm278_vm1, %v10880_v11 }
 0x377   : > { %9027 = vmatprep.mubr.msk.bf16.mxu1 %vm278_vm1, %v10882_v22 }
 0x37e   : > { %9028 = vmatmul.mubr.msk.bf16.gmra.mrb[12].mxu1 %vm278_vm1, %v10888_v43 }
 0x37f   : > { %9031 = vmatprep.mubr.msk.bf16.mxu1 %vm278_vm1, %v10890_v10 }
 0x386   : > { %9032 = vmatmul.mubr.msk.bf16.gmra.mrb[16].mxu1 %vm278_vm1, %v10896_v38 }
 0x387   : > { %9035 = vmatprep.mubr.msk.bf16.mxu1 %vm278_vm1, %v10898_v52 }
 0x38e   : > { %9036 = vmatmul.mubr.msk.bf16.gmra.mrb[20].mxu1 %vm278_vm1, %v10904_v13 }
 0x38f   : > { %9039 = vmatprep.mubr.msk.bf16.mxu1 %vm278_vm1, %v10906_v24 }
 0x396   : > { %9040 = vmatmul.mubr.msk.bf16.gmra.mrb[24].mxu1 %vm278_vm1, %v10912_v19 }
 0x397   : > { %9043 = vmatprep.mubr.msk.bf16.mxu1 %vm278_vm1, %v10914_v25 }
 0x39e   : > { %9044 = vmatmul.mubr.msk.bf16.gmra.mrb[28].mxu1 %vm278_vm1, %v10920_v54 }
 0x39f   : > { %9049 = vmatprep.mubr.msk.bf16.mxu1 %vm278_vm1, %v3769_v47  ;;  %v3760_v47 = vld [vmem:[#allocation3 + $0x112] sm:$0xff] }
 0x3a0   : > { %v10971_v2 = vpack.c.bf16 %v3760_v47, %v3759_v42  ;;  %v5216_v47 = vld [vmem:[#allocation3 + $0x91] sm:$0xff] }
 0x3a1   : > { %v5244_v0 = vpack.c.bf16 %v5217_v48, %v5216_v47 }
 0x3a6   : > { %9050 = vmatmul.mubr.msk.bf16.vlgmr.msra.gmra.mrb[0].mxu1 %vm278_vm1, %v10925_v56 }
 0x3a7   : > { %9082 = vmatpush3.bf16.msra.mxu1 %v4130_v63  ;;  %9053 = vmatprep.mubr.msk.bf16.mxu1 %vm278_vm1, %v10929_v61  ;;  %v3763_v63 = vld [vmem:[#allocation3 + $0x13a] sm:$0xff] }
 0x3a8   : > { %9810 = vmatprep.subr.msk.bf16.mxu1 %vm532_vm0, %v8273_v9  ;;  %v10979_v20 = vpack.c.bf16 %v3764_v49, %v3763_v63  ;;  %v4061_v9 = vld [vmem:[#allocation3 + $0x180] sm:$0xff]  ;;  %v5221_v63 = vld [vmem:[#allocation3 + $0xc9] sm:$0xff] }
 0x3a9   : > { %v5218_v49 = vld [vmem:[#allocation3 + $0xa9] sm:$0xff]  ;;  %v5246_v57 = vpack.c.bf16 %v5221_v63, %v5220_v8 }
 0x3aa   : > { %v5245_v30 = vpack.c.bf16 %v5219_v27, %v5218_v49 }
 0x3ae   : > { %9054 = vmatmul.mubr.msk.bf16.gmra.mrb[4].mxu1 %vm278_vm1, %v10939_v44 }
 0x3af   : > { %9057 = vmatprep.mubr.msk.bf16.mxu1 %vm278_vm1, %v10941_v33 }
 0x3b6   : > { %9058 = vmatmul.mubr.msk.bf16.gmra.mrb[8].mxu1 %vm278_vm1, %v10947_v21 }
 0x3b7   : > { %9061 = vmatprep.mubr.msk.bf16.mxu1 %vm278_vm1, %v10949_v28 }
 0x3be   : > { %9062 = vmatmul.mubr.msk.bf16.gmra.mrb[12].mxu1 %vm278_vm1, %v10955_v31 }
 0x3bf   : > { %9065 = vmatprep.mubr.msk.bf16.mxu1 %vm278_vm1, %v10957_v34 }
 0x3c6   : > { %9066 = vmatmul.mubr.msk.bf16.gmra.mrb[16].mxu1 %vm278_vm1, %v10963_v39 }
 0x3c7   : > { %9069 = vmatprep.mubr.msk.bf16.mxu1 %vm278_vm1, %v10965_v41 }
 0x3ce   : > { %9070 = vmatmul.mubr.msk.bf16.gmra.mrb[20].mxu1 %vm278_vm1, %v10971_v2 }
 0x3cf   : > { %9073 = vmatprep.mubr.msk.bf16.mxu1 %vm278_vm1, %v10973_v32 }
 0x3d6   : > { %9074 = vmatmul.mubr.msk.bf16.gmra.mrb[24].mxu1 %vm278_vm1, %v10979_v20 }
 0x3d7   : > { %9077 = vmatprep.mubr.msk.bf16.mxu1 %vm278_vm1, %v10981_v50 }
 0x3de   : > { %9078 = vmatmul.mubr.msk.bf16.gmra.mrb[28].mxu1 %vm278_vm1, %v10987_v15 }
 0x3df   : > { %9083 = vmatprep.mubr.msk.bf16.mxu1 %vm278_vm1, %v10855_v40  ;;  %v4062_v40 = vld [vmem:[#allocation3 + $0x188] sm:$0xff] }
 0x3e0   : > { %v11026_v5 = vpack.c.bf16 %v4062_v40, %v4061_v9  ;;  %v5877_v40 = vld [vmem:[%s10191_s21 + $0x18] sm:$0xff] }
 0x3e6   : > { %9084 = vmatmul.mubr.msk.bf16.vlgmr.msra.gmra.mrb[0].mxu1 %vm278_vm1, %v10859_v37 }
 0x3e7   : > { %9116 = vmatpush3.bf16.msra.mxu1 %v4424_v46  ;;  %9087 = vmatprep.mubr.msk.bf16.mxu1 %vm278_vm1, %v10872_v3 }
 0x3e8   : > { %9811 = vmatprep.subr.msk.bf16.mxu1 %vm532_vm0, %v8290_v59 }
 0x3ee   : > { %9088 = vmatmul.mubr.msk.bf16.gmra.mrb[4].mxu1 %vm278_vm1, %v10874_v35 }
 0x3ef   : > { %9091 = vmatprep.mubr.msk.bf16.mxu1 %vm278_vm1, %v10880_v11 }
 0x3f6   : > { %9092 = vmatmul.mubr.msk.bf16.gmra.mrb[8].mxu1 %vm278_vm1, %v10882_v22 }
 0x3f7   : > { %9095 = vmatprep.mubr.msk.bf16.mxu1 %vm278_vm1, %v10888_v43 }
 0x3fe   : > { %9096 = vmatmul.mubr.msk.bf16.gmra.mrb[12].mxu1 %vm278_vm1, %v10890_v10 }
 0x3ff   : > { %9099 = vmatprep.mubr.msk.bf16.mxu1 %vm278_vm1, %v10896_v38 }
 0x406   : > { %9100 = vmatmul.mubr.msk.bf16.gmra.mrb[16].mxu1 %vm278_vm1, %v10898_v52 }
 0x407   : > { %9103 = vmatprep.mubr.msk.bf16.mxu1 %vm278_vm1, %v10904_v13 }
 0x40e   : > { %9104 = vmatmul.mubr.msk.bf16.gmra.mrb[20].mxu1 %vm278_vm1, %v10906_v24 }
 0x40f   : > { %9107 = vmatprep.mubr.msk.bf16.mxu1 %vm278_vm1, %v10912_v19 }
 0x416   : > { %9108 = vmatmul.mubr.msk.bf16.gmra.mrb[24].mxu1 %vm278_vm1, %v10914_v25 }
 0x417   : > { %9111 = vmatprep.mubr.msk.bf16.mxu1 %vm278_vm1, %v10920_v54 }
 0x41e   : > { %9112 = vmatmul.mubr.msk.bf16.gmra.mrb[28].mxu1 %vm278_vm1, %v11026_v5 }
 0x41f   : > { %9117 = vmatprep.mubr.msk.bf16.mxu1 %vm278_vm1, %v10717_v4  ;;  %v4356_v4 = vld [vmem:[#allocation3 + $0x189] sm:$0xff] }
 0x426   : > { %9118 = vmatmul.mubr.msk.bf16.vlgmr.msra.gmra.mrb[0].mxu1 %vm278_vm1, %v10723_v58  ;;  %v4355_v58 = vld [vmem:[#allocation3 + $0x181] sm:$0xff] }
 0x427   : > { %9150 = vmatpush3.bf16.msra.mxu1 %v4718_v6  ;;  %9121 = vmatprep.mubr.msk.bf16.mxu1 %vm278_vm1, %v10746_v60  ;;  %v11065_v60 = vpack.c.bf16 %v4356_v4, %v4355_v58 }
 0x428   : > { %9812 = vmatprep.subr.msk.bf16.mxu1 %vm532_vm0, %v8307_v17 }
 0x42e   : > { %9122 = vmatmul.mubr.msk.bf16.gmra.mrb[4].mxu1 %vm278_vm1, %v10750_v14  ;;  %v5013_v14 = vsel %vm532_vm0, %v8307_v17, 0  ;;  %v5875_v17 = vld [vmem:[%s10191_s21 + $0x8] sm:$0xff] }
 0x42f   : > { %9125 = vmatprep.mubr.msk.bf16.mxu1 %vm278_vm1, %v10766_v12  ;;  %v8324_v12 = vld [vmem:[%s12081_s4 + $0x1c] sm:$0xf] }
 0x436   : > { %9126 = vmatmul.mubr.msk.bf16.gmra.mrb[8].mxu1 %vm278_vm1, %v10770_v55  ;;  %v4649_v55 = vld [vmem:[#allocation3 + $0x182] sm:$0xff] }
 0x437   : > { %9129 = vmatprep.mubr.msk.bf16.mxu1 %vm278_vm1, %v10786_v36  ;;  %v4650_v36 = vld [vmem:[#allocation3 + $0x18a] sm:$0xff] }
 0x43e   : > { %9130 = vmatmul.mubr.msk.bf16.gmra.mrb[12].mxu1 %vm278_vm1, %v10790_v51  ;;  %v11104_v51 = vpack.c.bf16 %v4650_v36, %v4649_v55 }
 0x43f   : > { %9133 = vmatprep.mubr.msk.bf16.mxu1 %vm278_vm1, %v10806_v1 }
 0x446   : > { %9134 = vmatmul.mubr.msk.bf16.gmra.mrb[16].mxu1 %vm278_vm1, %v10810_v7 }
 0x447   : > { %9137 = vmatprep.mubr.msk.bf16.mxu1 %vm278_vm1, %v10826_v16 }
 0x44e   : > { %9138 = vmatmul.mubr.msk.bf16.gmra.mrb[20].mxu1 %vm278_vm1, %v10830_v45 }
 0x44f   : > { %9141 = vmatprep.mubr.msk.bf16.mxu1 %vm278_vm1, %v10842_v23 }
 0x456   : > { %9142 = vmatmul.mubr.msk.bf16.gmra.mrb[24].mxu1 %vm278_vm1, %v10844_v26 }
 0x457   : > { %9145 = vmatprep.mubr.msk.bf16.mxu1 %vm278_vm1, %v10850_v53 }
 0x45e   : > { %9146 = vmatmul.mubr.msk.bf16.gmra.mrb[28].mxu1 %vm278_vm1, %v11065_v60 }
 0x45f   : > { %9151 = vmatprep.mubr.msk.bf16.mxu1 %vm278_vm1, %v10925_v56  ;;  %v5307_v56 = vsel %vm532_vm0, %v8324_v12, 0 }
 0x466   : > { %9152 = vmatmul.mubr.msk.bf16.vlgmr.msra.gmra.mrb[0].mxu1 %vm278_vm1, %v10929_v61 }
 0x467   : > { %9184 = vmatpush3.bf16.msra.mxu1 %v5013_v14  ;;  %9155 = vmatprep.mubr.msk.bf16.mxu1 %vm278_vm1, %v10939_v44 }
 0x468   : > { %9813 = vmatprep.subr.msk.bf16.mxu1 %vm532_vm0, %v8324_v12 }
 0x46e   : > { %9156 = vmatmul.mubr.msk.bf16.gmra.mrb[4].mxu1 %vm278_vm1, %v10941_v33 }
 0x46f   : > { %9159 = vmatprep.mubr.msk.bf16.mxu1 %vm278_vm1, %v10947_v21 }
 0x476   : > { %9160 = vmatmul.mubr.msk.bf16.gmra.mrb[8].mxu1 %vm278_vm1, %v10949_v28 }
 0x477   : > { %9163 = vmatprep.mubr.msk.bf16.mxu1 %vm278_vm1, %v10955_v31 }
 0x47e   : > { %9164 = vmatmul.mubr.msk.bf16.gmra.mrb[12].mxu1 %vm278_vm1, %v10957_v34 }
 0x47f   : > { %9167 = vmatprep.mubr.msk.bf16.mxu1 %vm278_vm1, %v10963_v39 }
 0x486   : > { %9168 = vmatmul.mubr.msk.bf16.gmra.mrb[16].mxu1 %vm278_vm1, %v10965_v41 }
 0x487   : > { %9171 = vmatprep.mubr.msk.bf16.mxu1 %vm278_vm1, %v10971_v2 }
 0x48e   : > { %9172 = vmatmul.mubr.msk.bf16.gmra.mrb[20].mxu1 %vm278_vm1, %v10973_v32 }
 0x48f   : > { %9175 = vmatprep.mubr.msk.bf16.mxu1 %vm278_vm1, %v10979_v20 }
 0x496   : > { %9176 = vmatmul.mubr.msk.bf16.gmra.mrb[24].mxu1 %vm278_vm1, %v10981_v50 }
 0x497   : > { %9179 = vmatprep.mubr.msk.bf16.mxu1 %vm278_vm1, %v10987_v15 }
 0x49e   : > { %9180 = vmatmul.mubr.msk.bf16.gmra.mrb[28].mxu1 %vm278_vm1, %v11104_v51 }
 0x49f   : > { %9185 = vmatprep.mubr.msk.bf16.mxu1 %vm278_vm1, %v10859_v37  ;;  %v4944_v37 = vld [vmem:[#allocation3 + $0x198] sm:$0xff] }
 0x4a6   : > { %9186 = vmatmul.mubr.msk.bf16.vlgmr.msra.gmra.mrb[0].mxu1 %vm278_vm1, %v10872_v3  ;;  %v4945_v3 = vld [vmem:[#allocation3 + $0x1a0] sm:$0xff] }
 0x4a7   : > { %9218 = vmatpush3.bf16.msra.mxu1 %v5307_v56  ;;  %9189 = vmatprep.mubr.msk.bf16.mxu1 %vm278_vm1, %v10874_v35  ;;  %v4961_v35 = vpack.c.bf16 %v4945_v3, %v4944_v37 }
 0x4a8   : > { %9814 = vmatprep.subr.msk.bf16.mxu1 %vm532_vm0, %v8341_v18 }
 0x4ae   : > { %9190 = vmatmul.mubr.msk.bf16.gmra.mrb[4].mxu1 %vm278_vm1, %v10880_v11  ;;  %v5209_v11 = vld [vmem:[#allocation3 + $0x39] sm:$0xff] }
 0x4af   : > { %9193 = vmatprep.mubr.msk.bf16.mxu1 %vm278_vm1, %v10882_v22  ;;  %v5208_v22 = vld [vmem:[#allocation3 + $0x31] sm:$0xff] }
 0x4b6   : > { %9194 = vmatmul.mubr.msk.bf16.gmra.mrb[8].mxu1 %vm278_vm1, %v10888_v43  ;;  %v5240_v43 = vpack.c.bf16 %v5209_v11, %v5208_v22 }
 0x4b7   : > { %9197 = vmatprep.mubr.msk.bf16.mxu1 %vm278_vm1, %v10890_v10  ;;  %v5211_v10 = vld [vmem:[#allocation3 + $0x51] sm:$0xff] }
 0x4be   : > { %9198 = vmatmul.mubr.msk.bf16.gmra.mrb[12].mxu1 %vm278_vm1, %v10896_v38  ;;  %v5213_v38 = vld [vmem:[#allocation3 + $0x69] sm:$0xff] }
 0x4bf   : > { %9201 = vmatprep.mubr.msk.bf16.mxu1 %vm278_vm1, %v10898_v52  ;;  %v5210_v52 = vld [vmem:[#allocation3 + $0x49] sm:$0xff] }
 0x4c6   : > { %9202 = vmatmul.mubr.msk.bf16.gmra.mrb[16].mxu1 %vm278_vm1, %v10904_v13  ;;  %v5241_v13 = vpack.c.bf16 %v5211_v10, %v5210_v52 }
 0x4c7   : > { %9205 = vmatprep.mubr.msk.bf16.mxu1 %vm278_vm1, %v10906_v24  ;;  %v5601_v24 = vsel %vm532_vm0, %v8341_v18, 0 }
 0x4ce   : > { %9206 = vmatmul.mubr.msk.bf16.gmra.mrb[20].mxu1 %vm278_vm1, %v10912_v19  ;;  %v5212_v19 = vld [vmem:[#allocation3 + $0x61] sm:$0xff] }
 0x4cf   : > { %9209 = vmatprep.mubr.msk.bf16.mxu1 %vm278_vm1, %v10914_v25  ;;  %v5242_v25 = vpack.c.bf16 %v5213_v38, %v5212_v19 }
 0x4d6   : > { %9210 = vmatmul.mubr.msk.bf16.gmra.mrb[24].mxu1 %vm278_vm1, %v10920_v54  ;;  %v5215_v54 = vld [vmem:[#allocation3 + $0x81] sm:$0xff] }
 0x4d7   : > { %9213 = vmatprep.mubr.msk.bf16.mxu1 %vm278_vm1, %v11026_v5  ;;  %v5243_v42 = vpack.c.bf16 %v5215_v54, %v5214_v29 }
 0x4de   : > { %9214 = vmatmul.mubr.msk.bf16.gmra.mrb[28].mxu1 %vm278_vm1, %v4961_v35 }
 0x4df   : > { %9219 = vmatprep.mubr.msk.bf16.mxu1 %vm278_vm1, %v5240_v43 }
 0x4e6   : > { %9220 = vmatmul.mubr.msk.bf16.vlgmr.msra.gmra.mrb[0].mxu1 %vm278_vm1, %v5241_v13 }
 0x4e7   : > { %9252 = vmatpush3.bf16.msra.mxu1 %v5601_v24  ;;  %9223 = vmatprep.mubr.msk.bf16.mxu1 %vm278_vm1, %v5242_v25 }
 0x4ee   : > { %9224 = vmatmul.mubr.msk.bf16.gmra.mrb[4].mxu1 %vm278_vm1, %v5243_v42 }
 0x4ef   : > { %9227 = vmatprep.mubr.msk.bf16.mxu1 %vm278_vm1, %v5244_v0 }
 0x4f6   : > { %9228 = vmatmul.mubr.msk.bf16.gmra.mrb[8].mxu1 %vm278_vm1, %v5245_v30 }
 0x4f7   : > { %9231 = vmatprep.mubr.msk.bf16.mxu1 %vm278_vm1, %v5246_v57 }
 0x4fe   : > { %9232 = vmatmul.mubr.msk.bf16.gmra.mrb[12].mxu1 %vm278_vm1, %v10806_v1  ;;  %v5238_v1 = vld [vmem:[#allocation3 + $0x199] sm:$0xff] }
 0x4ff   : > { %9235 = vmatprep.mubr.msk.bf16.mxu1 %vm278_vm1, %v10810_v7  ;;  %v5239_v7 = vld [vmem:[#allocation3 + $0x1a1] sm:$0xff] }
 0x500   : > { %v5255_v62 = vpack.c.bf16 %v5239_v7, %v5238_v1 }
 0x506   : > { %9236 = vmatmul.mubr.msk.bf16.gmra.mrb[16].mxu1 %vm278_vm1, %v10826_v16  ;;  %v5532_v16 = vld [vmem:[#allocation3 + $0x19a] sm:$0xff] }
 0x507   : > { %9239 = vmatprep.mubr.msk.bf16.mxu1 %vm278_vm1, %v10830_v45  ;;  %v5533_v45 = vld [vmem:[#allocation3 + $0x1a2] sm:$0xff] }
 0x50e   : > { %9240 = vmatmul.mubr.msk.bf16.gmra.mrb[20].mxu1 %vm278_vm1, %v10842_v23  ;;  %v5549_v23 = vpack.c.bf16 %v5533_v45, %v5532_v16 }
 0x50f   : > { %9243 = vmatprep.mubr.msk.bf16.mxu1 %vm278_vm1, %v10844_v26  ;;  %v11203_v26 = vld [vmem:[%s12082_s5] ss:$0 sm:$0xff] }
 0x516   : > { %9244 = vmatmul.mubr.msk.bf16.gmra.mrb[24].mxu1 %vm278_vm1, %v10850_v53  ;;  %v9927_v53 = vmov 1983009808  }
 0x517   : > { %9247 = vmatprep.mubr.msk.bf16.mxu1 %vm278_vm1, %v11065_v60 }
 0x51e   : > { %9248 = vmatmul.mubr.msk.bf16.gmra.mrb[28].mxu1 %vm278_vm1, %v5255_v62 }
 0x51f   : > { %9253 = vmatprep.mubr.msk.bf16.mxu1 %vm278_vm1, %v10929_v61  ;;  %v6068_v61 = vunpack.c.l.s4 %v9927_v53 }
 0x526   : > { %9254 = vmatmul.mubr.msk.bf16.vlgmr.msra.gmra.mrb[0].mxu1 %vm278_vm1, %v10939_v44  ;;  %v6070_v44 = vlaneseq }
 0x527   : > { %9257 = vmatprep.mubr.msk.bf16.mxu1 %vm278_vm1, %v10941_v33 }
 0x52e   : > { %9258 = vmatmul.mubr.msk.bf16.gmra.mrb[4].mxu1 %vm278_vm1, %v10947_v21  ;;  %v11208_v21 = vld [vmem:[%s12083_s6] ss:$0 sm:$0xff] }
 0x52f   : > { %9261 = vmatprep.mubr.msk.bf16.mxu1 %vm278_vm1, %v10949_v28 }
 0x536   : > { %9262 = vmatmul.mubr.msk.bf16.gmra.mrb[8].mxu1 %vm278_vm1, %v10955_v31 }
 0x537   : > { %9265 = vmatprep.mubr.msk.bf16.mxu1 %vm278_vm1, %v10957_v34  ;;  %v5876_v34 = vld [vmem:[%s10191_s21 + $0x10] sm:$0xff] }
 0x53e   : > { %9266 = vmatmul.mubr.msk.bf16.gmra.mrb[12].mxu1 %vm278_vm1, %v10963_v39  ;;  %v6069_v39 = vunpack.c.0.s8 %v6068_v61 }
 0x53f   : > { %9269 = vmatprep.mubr.msk.bf16.mxu1 %vm278_vm1, %v10965_v41  ;;  %v6071_v41 = vshrl.u32 %v6070_v44, 7 }
 0x541   : > { %v11221_v4 = vsub.s32 %v6069_v39, %v6071_v41 }
 0x546   : > { %9270 = vmatmul.mubr.msk.bf16.gmra.mrb[16].mxu1 %vm278_vm1, %v10971_v2 }
 0x547   : > { %9273 = vmatprep.mubr.msk.bf16.mxu1 %vm278_vm1, %v10973_v32 }
 0x54e   : > { %9274 = vmatmul.mubr.msk.bf16.gmra.mrb[20].mxu1 %vm278_vm1, %v10979_v20 }
 0x54f   : > { %9277 = vmatprep.mubr.msk.bf16.mxu1 %vm278_vm1, %v10981_v50  ;;  %v5874_v50 = vld [vmem:[%s10191_s21] sm:$0xff] }
 0x556   : > { %9278 = vmatmul.mubr.msk.bf16.gmra.mrb[24].mxu1 %vm278_vm1, %v10987_v15 }
 0x557   : > { %9281 = vmatprep.mubr.msk.bf16.mxu1 %vm278_vm1, %v11104_v51 }
 0x55e   : > { %9282 = vmatmul.mubr.msk.bf16.gmra.mrb[28].mxu1 %vm278_vm1, %v5549_v23 }
 0x5f9   : > { %v9255_v33 = vpop.f32.mrb[0].mxu1 }
 0x5fa   : > { %v5805_v28 = vmul.f32 %v9255_v33, %v11203_v26  ;;  %v5637_v31 = vpop.f32.mrb[1].mxu1 }
 0x5fb   : > { %v5803_v2 = vmul.f32 %v11203_v26, %v5637_v31  ;;  %v9256_v32 = vpop.f32.mrb[2].mxu1 }
 0x5fc   : > { %v5844_v20 = vadd.f32 %v11208_v21, %v5805_v28  ;;  %v5806_v15 = vmul.f32 %v9256_v32, %v11203_v26  ;;  %v5640_v46 = vpop.f32.mrb[3].mxu1 }
 0x5fd   : > { %v5842_v59 = vadd.f32 %v11208_v21, %v5803_v2  ;;  %v5804_v9 = vmul.f32 %v11203_v26, %v5640_v46 }
 0x5fe   : > { %v5908_v5 = vadd.f32 %v5876_v34, %v5844_v20  ;;  %v5845_v6 = vadd.f32 %v11208_v21, %v5806_v15 }
 0x5ff   : > { %v5906_v58 = vadd.f32 %v5874_v50, %v5842_v59  ;;  %v5843_v60 = vadd.f32 %v11208_v21, %v5804_v9 }
 0x600   : > { %vm5940_vm0 = vcmp.gt.f32.partialorder %v5908_v5, 0.0  ;;  %v5972_v14 = vmul.f32 0.1, %v5908_v5  ;;  %v5909_v12 = vadd.f32 %v5877_v40, %v5845_v6 }
 0x601   : > { %vm5938_vm10 = vcmp.gt.f32.partialorder %v5906_v58, 0.0  ;;  %v5970_v55 = vmul.f32 0.1, %v5906_v58  ;;  %v11224_v36 = vadd.f32 %v5875_v17, %v5843_v60  ;;  %v9259_v51 = vpop.f32.mrb[4].mxu1 }
 0x602   : > { %v6004_v56 = vsel %vm5940_vm0, %v5908_v5, %v5972_v14  ;;  %vm5941_vm11 = vcmp.gt.f32.partialorder %v5909_v12, 0.0  ;;  %v5973_v18 = vmul.f32 0.1, %v5909_v12  ;;  %v11226_v37 = vpop.f32.mrb[5].mxu1  ;;  %v11230_v22 = vmul.f32 %v9259_v51, %v11203_v26 }
 0x603   : > { %v6100_v3 = vcombine.high %v6004_v56, %v6004_v56  ;;  %v6107_v35 = vrot.slane %v6004_v56, %v11221_v4  ;;  %v6002_v11 = vsel %vm5938_vm10, %v5906_v58, %v5970_v55  ;;  %v11232_v43 = vpop.f32.mrb[6].mxu1  ;;  %v11238_v13 = vmul.f32 0.1, %v11224_v36 }
 0x604   : > { %v6066_v10 = vcombine.high %v6002_v11, %v6002_v11  ;;  %v6073_v38 = vrot.slane %v6002_v11, %v11221_v4  ;;  %v11235_v52 = vsel %vm5941_vm11, %v5909_v12, %v5973_v18  ;;  %v11240_v24 = vpop.f32.mrb[7].mxu1  ;;  %vm5939_vm12 = vcmp.gt.f32.partialorder %v11224_v36, 0.0 }
 0x605   : > { %v6114_v19 = vrot.slane %v6100_v3, %v11221_v4  ;;  %v6115_v25 = vcombine.high %v6107_v35, %v6107_v35  ;;  %v6794_v54 = vsel %vm281_vm2, %v6107_v35, -inf  ;;  %v6117_v48 = vcombine.high %v11235_v52, %v11235_v52 }
 0x606   : > { %v6795_v29 = vrot.slane %v6794_v54, 4  ;;  %v6080_v42 = vrot.slane %v6066_v10, %v11221_v4  ;;  %v6081_v47 = vcombine.high %v6073_v38, %v6073_v38  ;;  %v6738_v0 = vsel %vm281_vm2, %v6073_v38, -inf }
 0x607   : > { %v6116_v27 = vcombine.high %v6114_v19, %v6114_v19  ;;  %v6801_v63 = vsel %vm281_vm2, %v6115_v25, -inf  ;;  %v6808_v49 = vsel %vm281_vm2, %v6114_v19, -inf  ;;  %v6739_v30 = vrot.slane %v6738_v0, 4 }
 0x608   : > { %v6796_v8 = vmax.f32 %v6794_v54, %v6795_v29  ;;  %v6802_v57 = vrot.slane %v6801_v63, 4  ;;  %v6809_v1 = vrot.slane %v6808_v49, 4  ;;  %v6082_v7 = vcombine.high %v6080_v42, %v6080_v42 }
 0x609   : > { %v6815_v62 = vsel %vm281_vm2, %v6116_v27, -inf  ;;  %v6740_v16 = vmax.f32 %v6738_v0, %v6739_v30  ;;  %v6745_v45 = vsel %vm281_vm2, %v6081_v47, -inf  ;;  %v6752_v23 = vsel %vm281_vm2, %v6080_v42, -inf  ;;  %v11253_v53 = vpop.f32.mrb[8].mxu1 }
 0x60a   : > { %v6797_v61 = vrot.slane %v6796_v8, 2  ;;  %v6803_v44 = vmax.f32 %v6801_v63, %v6802_v57  ;;  %v6810_v33 = vmax.f32 %v6808_v49, %v6809_v1  ;;  %v6816_v28 = vrot.slane %v6815_v62, 4  ;;  %v11255_v31 = vpop.f32.mrb[9].mxu1 }
 0x60b   : > { %v6741_v34 = vrot.slane %v6740_v16, 2  ;;  %v6746_v39 = vrot.slane %v6745_v45, 4  ;;  %v6753_v41 = vrot.slane %v6752_v23, 4  ;;  %v6759_v2 = vsel %vm281_vm2, %v6082_v7, -inf  ;;  %v11259_v32 = vpop.f32.mrb[10].mxu1 }
 0x60c   : > { %v6798_v20 = vmax.f32 %v6796_v8, %v6797_v61  ;;  %v6804_v50 = vrot.slane %v6803_v44, 2  ;;  %v6811_v15 = vrot.slane %v6810_v33, 2  ;;  %v6817_v46 = vmax.f32 %v6815_v62, %v6816_v28  ;;  %v11261_v59 = vpop.f32.mrb[11].mxu1 }
 0x60d   : > { %v6742_v40 = vmax.f32 %v6740_v16, %v6741_v34  ;;  %v6747_v9 = vmax.f32 %v6745_v45, %v6746_v39  ;;  %v6754_v5 = vmax.f32 %v6752_v23, %v6753_v41  ;;  %v6760_v6 = vrot.slane %v6759_v2, 4 }
 0x60e   : > { %v6799_v17 = vrot.slane %v6798_v20, 1  ;;  %v6805_v58 = vmax.f32 %v6803_v44, %v6804_v50  ;;  %v6812_v60 = vmax.f32 %v6810_v33, %v6811_v15  ;;  %v6818_v14 = vrot.slane %v6817_v46, 2 }
 0x60f   : > { %v6743_v12 = vrot.slane %v6742_v40, 1  ;;  %v6748_v55 = vrot.slane %v6747_v9, 2  ;;  %v6755_v51 = vrot.slane %v6754_v5, 2  ;;  %v6761_v56 = vmax.f32 %v6759_v2, %v6760_v6 }
 0x610   : > { %v6800_v18 = vmax.f32 %v6798_v20, %v6799_v17  ;;  %v6806_v3 = vrot.slane %v6805_v58, 1  ;;  %v6813_v35 = vrot.slane %v6812_v60, 1  ;;  %v6819_v11 = vmax.f32 %v6817_v46, %v6818_v14 }
 0x611   : > { %v6744_v10 = vmax.f32 %v6742_v40, %v6743_v12  ;;  %v6749_v38 = vmax.f32 %v6747_v9, %v6748_v55  ;;  %v6756_v19 = vmax.f32 %v6754_v5, %v6755_v51  ;;  %v6762_v25 = vrot.slane %v6761_v56, 2  ;;  %v11263_v54 = vpop.f32.mrb[12].mxu1 }
 0x612   : > { %v6807_v29 = vmax.f32 %v6805_v58, %v6806_v3  ;;  %v6814_v42 = vmax.f32 %v6812_v60, %v6813_v35  ;;  %v6820_v47 = vrot.slane %v6819_v11, 1  ;;  %v7635_v0 = vsel %vm278_vm1, %v6800_v18, -inf  ;;  %v11266_v27 = vpop.f32.mrb[13].mxu1  ;;  %v5880_v60 = vld [vmem:[%s10191_s21 + $0x30] sm:$0xff] }
 0x613   : > { %v6750_v63 = vrot.slane %v6749_v38, 1  ;;  %v6757_v49 = vrot.slane %v6756_v19, 1  ;;  %v6763_v30 = vmax.f32 %v6761_v56, %v6762_v25  ;;  %v7634_v8 = vsel %vm278_vm1, %v6744_v10, -inf  ;;  %v11269_v57 = vpop.f32.mrb[14].mxu1 }
 0x614   : > { %v6821_v1 = vmax.f32 %v6819_v11, %v6820_v47  ;;  %v7638_v7 = vsel %vm278_vm1, %v6807_v29, -inf  ;;  %v7641_v62 = vsel %vm278_vm1, %v6814_v42, -inf  ;;  %v7636_v16 = vmax.f32 %v7634_v8, %v7635_v0  ;;  %v11288_v15 = vpop.f32.mrb[15].mxu1 }
 0x615   : > { %v6751_v45 = vmax.f32 %v6749_v38, %v6750_v63  ;;  %v6758_v23 = vmax.f32 %v6756_v19, %v6757_v49  ;;  %v6764_v61 = vrot.slane %v6763_v30, 1  ;;  %v6124_v44 = vrot.slane %v11235_v52, %v11221_v4 }
 0x616   : > { %v7644_v33 = vsel %vm278_vm1, %v6821_v1, -inf  ;;  %v6131_v28 = vrot.slane %v6117_v48, %v11221_v4  ;;  %v6003_v34 = vsel %vm5939_vm12, %v11224_v36, %v11238_v13  ;;  %v5848_v39 = vadd.f32 %v11208_v21, %v11230_v22 }
 0x617   : > { %v6765_v41 = vmax.f32 %v6763_v30, %v6764_v61  ;;  %v7637_v2 = vsel %vm278_vm1, %v6751_v45, -inf  ;;  %v7640_v20 = vsel %vm278_vm1, %v6758_v23, -inf  ;;  %v6132_v50 = vcombine.high %v6124_v44, %v6124_v44 }
 0x618   : > { %v7639_v46 = vmax.f32 %v7637_v2, %v7638_v7  ;;  %v7642_v52 = vmax.f32 %v7640_v20, %v7641_v62  ;;  %v6133_v48 = vcombine.high %v6131_v28, %v6131_v28  ;;  %v6822_v40 = vsel %vm281_vm2, %v6124_v44, -inf }
 0x619   : > { %v7643_v9 = vsel %vm278_vm1, %v6765_v41, -inf  ;;  %v6823_v36 = vrot.slane %v6822_v40, 4  ;;  %v6829_v13 = vsel %vm281_vm2, %v6132_v50, -inf  ;;  %v6836_v22 = vsel %vm281_vm2, %v6131_v28, -inf }
 0x61a   : > { %v7645_v5 = vmax.f32 %v7643_v9, %v7644_v33  ;;  %v7891_v6 = vsel %vm7890_vm13, %v7639_v46, %v7636_v16  ;;  %v6830_v17 = vrot.slane %v6829_v13, 4  ;;  %v6837_v58 = vrot.slane %v6836_v22, 4 }
 0x61b   : > { %v7893_v14 = vsel %vm7892_vm14, %v7642_v52, %v7891_v6  ;;  %v6824_v12 = vmax.f32 %v6822_v40, %v6823_v36  ;;  %v6843_v55 = vsel %vm281_vm2, %v6133_v48, -inf  ;;  %v6083_v51 = vcombine.high %v6003_v34, %v6003_v34 }
 0x61c   : > { %v6831_v56 = vmax.f32 %v6829_v13, %v6830_v17  ;;  %v6838_v18 = vmax.f32 %v6836_v22, %v6837_v58  ;;  %v6844_v3 = vrot.slane %v6843_v55, 4  ;;  %v6090_v35 = vrot.slane %v6003_v34, %v11221_v4 }
 0x61d   : > { %v6825_v11 = vrot.slane %v6824_v12, 2  ;;  %v6097_v10 = vrot.slane %v6083_v51, %v11221_v4  ;;  %v11301_v38 = vsel %vm7894_vm15, %v7645_v5, %v7893_v14  ;;  %v5912_v19 = vadd.f32 %v5880_v60, %v5848_v39 }
 0x61e   : > { %v6832_v25 = vrot.slane %v6831_v56, 2  ;;  %v6839_v29 = vrot.slane %v6838_v18, 2  ;;  %v6845_v42 = vmax.f32 %v6843_v55, %v6844_v3  ;;  %v6098_v47 = vcombine.high %v6090_v35, %v6090_v35 }
 0x61f   : > { %v6826_v0 = vmax.f32 %v6824_v12, %v6825_v11  ;;  %v6099_v63 = vcombine.high %v6097_v10, %v6097_v10  ;;  %v6766_v49 = vsel %vm281_vm2, %v6090_v35, -inf  ;;  %v6780_v30 = vsel %vm281_vm2, %v6097_v10, -inf  ;;  %v5878_v10 = vld [vmem:[%s10191_s21 + $0x20] sm:$0xff] }
 0x620   : > { %v6833_v8 = vmax.f32 %v6831_v56, %v6832_v25  ;;  %v6840_v1 = vmax.f32 %v6838_v18, %v6839_v29  ;;  %v6846_v7 = vrot.slane %v6845_v42, 2  ;;  %v6767_v62 = vrot.slane %v6766_v49, 4  ;;  %v11313_v18 = vpop.f32.mrb[16].mxu1 }
 0x621   : > { %v6827_v16 = vrot.slane %v6826_v0, 1  ;;  %v6773_v45 = vsel %vm281_vm2, %v6098_v47, -inf  ;;  %v6781_v23 = vrot.slane %v6780_v30, 4  ;;  %v6787_v61 = vsel %vm281_vm2, %v6099_v63, -inf }
 0x622   : > { %v6834_v44 = vrot.slane %v6833_v8, 1  ;;  %v6841_v33 = vrot.slane %v6840_v1, 1  ;;  %v6847_v28 = vmax.f32 %v6845_v42, %v6846_v7  ;;  %v6768_v34 = vmax.f32 %v6766_v49, %v6767_v62 }
 0x623   : > { %v6828_v39 = vmax.f32 %v6826_v0, %v6827_v16  ;;  %v6774_v41 = vrot.slane %v6773_v45, 4  ;;  %v6782_v2 = vmax.f32 %v6780_v30, %v6781_v23  ;;  %v6788_v20 = vrot.slane %v6787_v61, 4 }
 0x624   : > { %v6835_v50 = vmax.f32 %v6833_v8, %v6834_v44  ;;  %v6842_v46 = vmax.f32 %v6840_v1, %v6841_v33  ;;  %v6848_v52 = vrot.slane %v6847_v28, 1  ;;  %v6769_v48 = vrot.slane %v6768_v34, 2 }
 0x625   : > { %v7647_v40 = vsel %vm278_vm1, %v6828_v39, -inf  ;;  %v6775_v9 = vmax.f32 %v6773_v45, %v6774_v41  ;;  %v6783_v36 = vrot.slane %v6782_v2, 2  ;;  %v6789_v13 = vmax.f32 %v6787_v61, %v6788_v20  ;;  %v11336_v41 = vpop.f32.mrb[17].mxu1 }
 0x626   : > { %v6849_v22 = vmax.f32 %v6847_v28, %v6848_v52  ;;  %v7650_v5 = vsel %vm278_vm1, %v6835_v50, -inf  ;;  %v7653_v6 = vsel %vm278_vm1, %v6842_v46, -inf  ;;  %v6770_v17 = vmax.f32 %v6768_v34, %v6769_v48 }
 0x627   : > { %v6776_v58 = vrot.slane %v6775_v9, 2  ;;  %v6784_v60 = vmax.f32 %v6782_v2, %v6783_v36  ;;  %v6790_v14 = vrot.slane %v6789_v13, 2  ;;  %vm5944_vm5 = vcmp.gt.f32.partialorder %v5912_v19, 0.0 }
 0x628   : > { %v7656_v12 = vsel %vm278_vm1, %v6849_v22, -inf  ;;  %v6771_v55 = vrot.slane %v6770_v17, 1  ;;  %v5976_v51 = vmul.f32 0.1, %v5912_v19  ;;  %v5807_v56 = vmul.f32 %v11203_v26, %v11226_v37 }
 0x629   : > { %v6777_v3 = vmax.f32 %v6775_v9, %v6776_v58  ;;  %v6785_v35 = vrot.slane %v6784_v60, 1  ;;  %v6791_v11 = vmax.f32 %v6789_v13, %v6790_v14  ;;  %v5810_v25 = vmul.f32 %v11232_v43, %v11203_v26  ;;  %v5881_v9 = vld [vmem:[%s10191_s21 + $0x38] sm:$0xff] }
 0x62a   : > { %v6772_v29 = vmax.f32 %v6770_v17, %v6771_v55  ;;  %v6008_v42 = vsel %vm5944_vm5, %v5912_v19, %v5976_v51  ;;  %v5846_v47 = vadd.f32 %v11208_v21, %v5807_v56  ;;  %v11321_v0 = vmul.f32 %v11203_v26, %v11240_v24 }
 0x62b   : > { %v6778_v37 = vrot.slane %v6777_v3, 1  ;;  %v6786_v63 = vmax.f32 %v6784_v60, %v6785_v35  ;;  %v6792_v49 = vrot.slane %v6791_v11, 1  ;;  %v6168_v30 = vcombine.high %v6008_v42, %v6008_v42 }
 0x62c   : > { %v7646_v8 = vsel %vm278_vm1, %v6772_v29, -inf  ;;  %v6175_v1 = vrot.slane %v6008_v42, %v11221_v4  ;;  %v5910_v7 = vadd.f32 %v5878_v10, %v5846_v47  ;;  %v5849_v43 = vadd.f32 %v11208_v21, %v5810_v25 }
 0x62d   : > { %v6779_v19 = vmax.f32 %v6777_v3, %v6778_v37  ;;  %v6793_v62 = vmax.f32 %v6791_v11, %v6792_v49  ;;  %v7648_v16 = vmax.f32 %v7646_v8, %v7647_v40  ;;  %v7652_v45 = vsel %vm278_vm1, %v6786_v63, -inf }
 0x62e   : > { %v7654_v24 = vmax.f32 %v7652_v45, %v7653_v6  ;;  %v6182_v23 = vrot.slane %v6168_v30, %v11221_v4  ;;  %v6183_v61 = vcombine.high %v6175_v1, %v6175_v1  ;;  %v6906_v44 = vsel %vm281_vm2, %v6175_v1, -inf }
 0x62f   : > { %v7649_v33 = vsel %vm278_vm1, %v6779_v19, -inf  ;;  %v7655_v28 = vsel %vm278_vm1, %v6793_v62, -inf  ;;  %v7897_v34 = vsel %vm7896_vm3, %v7648_v16, %v11301_v38  ;;  %v6907_v39 = vrot.slane %v6906_v44, 4  ;;  %v11352_v62 = vpop.f32.mrb[18].mxu1 }
 0x630   : > { %v7651_v2 = vmax.f32 %v7649_v33, %v7650_v5  ;;  %v7657_v20 = vmax.f32 %v7655_v28, %v7656_v12  ;;  %v6184_v50 = vcombine.high %v6182_v23, %v6182_v23  ;;  %v6913_v46 = vsel %vm281_vm2, %v6183_v61, -inf }
 0x631   : > { %v6908_v52 = vmax.f32 %v6906_v44, %v6907_v39  ;;  %v6914_v48 = vrot.slane %v6913_v46, 4  ;;  %v6920_v40 = vsel %vm281_vm2, %v6182_v23, -inf  ;;  %vm5942_vm8 = vcmp.gt.f32.partialorder %v5910_v7, 0.0 }
 0x632   : > { %v7899_v36 = vsel %vm7898_vm4, %v7651_v2, %v7897_v34  ;;  %v6921_v13 = vrot.slane %v6920_v40, 4  ;;  %v6927_v22 = vsel %vm281_vm2, %v6184_v50, -inf  ;;  %v5974_v38 = vmul.f32 0.1, %v5910_v7 }
 0x633   : > { %v7901_v6 = vsel %vm7900_vm6, %v7654_v24, %v7899_v36  ;;  %v6909_v17 = vrot.slane %v6908_v52, 2  ;;  %v6915_v5 = vmax.f32 %v6913_v46, %v6914_v48  ;;  %v6928_v58 = vrot.slane %v6927_v22, 4 }
 0x634   : > { %v7903_v60 = vsel %vm7902_vm7, %v7657_v20, %v7901_v6  ;;  %v6922_v14 = vmax.f32 %v6920_v40, %v6921_v13  ;;  %v6006_v12 = vsel %vm5942_vm8, %v5910_v7, %v5974_v38  ;;  %v5913_v55 = vadd.f32 %v5881_v9, %v5849_v43 }
 0x635   : > { %7961 = vst.msk [vmem:[%s11345_s8] sm:$0xff] %vm278_vm1, %v7903_v60  ;;  %v6910_v51 = vmax.f32 %v6908_v52, %v6909_v17  ;;  %v6916_v56 = vrot.slane %v6915_v5, 2  ;;  %v6929_v3 = vmax.f32 %v6927_v22, %v6928_v58  ;;  %v6134_v35 = vcombine.high %v6006_v12, %v6006_v12 }
 0x636   : > { %v6923_v11 = vrot.slane %v6922_v14, 2  ;;  %v6141_v10 = vrot.slane %v6006_v12, %v11221_v4  ;;  %vm5945_vm9 = vcmp.gt.f32.partialorder %v5913_v55, 0.0  ;;  %v5977_v25 = vmul.f32 0.1, %v5913_v55 }
 0x637   : > { %v6911_v29 = vrot.slane %v6910_v51, 1  ;;  %v6917_v42 = vmax.f32 %v6915_v5, %v6916_v56  ;;  %v6930_v47 = vrot.slane %v6929_v3, 2  ;;  %v6148_v37 = vrot.slane %v6134_v35, %v11221_v4 }
 0x638   : > { %v6924_v63 = vmax.f32 %v6922_v14, %v6923_v11  ;;  %v6149_v49 = vcombine.high %v6141_v10, %v6141_v10  ;;  %v6850_v30 = vsel %vm281_vm2, %v6141_v10, -inf  ;;  %v6009_v8 = vsel %vm5945_vm9, %v5913_v55, %v5977_v25 }
 0x639   : > { %v6912_v1 = vmax.f32 %v6910_v51, %v6911_v29  ;;  %v6918_v7 = vrot.slane %v6917_v42, 1  ;;  %v6931_v43 = vmax.f32 %v6929_v3, %v6930_v47  ;;  %v6150_v19 = vcombine.high %v6148_v37, %v6148_v37 }
 0x63a   : > { %v6925_v16 = vrot.slane %v6924_v63, 1  ;;  %v6851_v45 = vrot.slane %v6850_v30, 4  ;;  %v6857_v24 = vsel %vm281_vm2, %v6149_v49, -inf  ;;  %v6864_v23 = vsel %vm281_vm2, %v6148_v37, -inf }
 0x63b   : > { %v6919_v61 = vmax.f32 %v6917_v42, %v6918_v7  ;;  %v6932_v44 = vrot.slane %v6931_v43, 1  ;;  %v11357_v33 = vsel %vm278_vm1, %v6912_v1, -inf  ;;  %v6858_v28 = vrot.slane %v6857_v24, 4 }
 0x63c   : > { %v6926_v34 = vmax.f32 %v6924_v63, %v6925_v16  ;;  %v6852_v39 = vmax.f32 %v6850_v30, %v6851_v45  ;;  %v6865_v2 = vrot.slane %v6864_v23, 4  ;;  %v6871_v20 = vsel %vm281_vm2, %v6150_v19, -inf }
 0x63d   : > { %v6933_v50 = vmax.f32 %v6931_v43, %v6932_v44  ;;  %v7662_v46 = vsel %vm278_vm1, %v6919_v61, -inf  ;;  %v6859_v52 = vmax.f32 %v6857_v24, %v6858_v28  ;;  %v6872_v48 = vrot.slane %v6871_v20, 4  ;;  %v11374_v28 = vpop.f32.mrb[19].mxu1 }
 0x63e   : > { %v7665_v40 = vsel %vm278_vm1, %v6926_v34, -inf  ;;  %v6853_v9 = vrot.slane %v6852_v39, 2  ;;  %v6866_v36 = vmax.f32 %v6864_v23, %v6865_v2  ;;  %v6185_v13 = vcombine.high %v6009_v8, %v6009_v8 }
 0x63f   : > { %v7668_v22 = vsel %vm278_vm1, %v6933_v50, -inf  ;;  %v6860_v38 = vrot.slane %v6859_v52, 2  ;;  %v6873_v6 = vmax.f32 %v6871_v20, %v6872_v48  ;;  %v6192_v17 = vrot.slane %v6009_v8, %v11221_v4  ;;  %v5879_v50 = vld [vmem:[%s10191_s21 + $0x28] sm:$0xff] }
 0x640   : > { %v6854_v5 = vmax.f32 %v6852_v39, %v6853_v9  ;;  %v6867_v58 = vrot.slane %v6866_v36, 2  ;;  %v6199_v60 = vrot.slane %v6185_v13, %v11221_v4  ;;  %v5847_v14 = vadd.f32 %v11208_v21, %v11321_v0 }
 0x641   : > { %v6861_v12 = vmax.f32 %v6859_v52, %v6860_v38  ;;  %v6874_v55 = vrot.slane %v6873_v6, 2  ;;  %v6200_v51 = vcombine.high %v6192_v17, %v6192_v17  ;;  %v6934_v56 = vsel %vm281_vm2, %v6192_v17, -inf }
 0x642   : > { %v6855_v3 = vrot.slane %v6854_v5, 1  ;;  %v6868_v35 = vmax.f32 %v6866_v36, %v6867_v58  ;;  %v6201_v11 = vcombine.high %v6199_v60, %v6199_v60  ;;  %v6935_v10 = vrot.slane %v6934_v56, 4 }
 0x643   : > { %v6862_v25 = vrot.slane %v6861_v12, 1  ;;  %v6875_v29 = vmax.f32 %v6873_v6, %v6874_v55  ;;  %v6941_v42 = vsel %vm281_vm2, %v6200_v51, -inf  ;;  %v6948_v47 = vsel %vm281_vm2, %v6199_v60, -inf }
 0x644   : > { %v6856_v37 = vmax.f32 %v6854_v5, %v6855_v3  ;;  %v6869_v63 = vrot.slane %v6868_v35, 1  ;;  %v6936_v49 = vmax.f32 %v6934_v56, %v6935_v10  ;;  %v6942_v30 = vrot.slane %v6941_v42, 4  ;;  %v5884_v3 = vld [vmem:[%s10191_s21 + $0x50] sm:$0xff] }
 0x645   : > { %v6863_v0 = vmax.f32 %v6861_v12, %v6862_v25  ;;  %v6876_v8 = vrot.slane %v6875_v29, 1  ;;  %v6949_v1 = vrot.slane %v6948_v47, 4  ;;  %v6955_v7 = vsel %vm281_vm2, %v6201_v11, -inf }
 0x646   : > { %v6870_v43 = vmax.f32 %v6868_v35, %v6869_v63  ;;  %v7658_v19 = vsel %vm278_vm1, %v6856_v37, -inf  ;;  %v6937_v16 = vrot.slane %v6936_v49, 2  ;;  %v6943_v45 = vmax.f32 %v6941_v42, %v6942_v30 }
 0x647   : > { %v6877_v24 = vmax.f32 %v6875_v29, %v6876_v8  ;;  %v7660_v23 = vmax.f32 %v7658_v19, %v11357_v33  ;;  %v7661_v61 = vsel %vm278_vm1, %v6863_v0, -inf  ;;  %v6950_v44 = vmax.f32 %v6948_v47, %v6949_v1  ;;  %v5885_v19 = vld [vmem:[%s10191_s21 + $0x58] sm:$0xff] }
 0x648   : > { %v7663_v34 = vmax.f32 %v7661_v61, %v7662_v46  ;;  %v7664_v39 = vsel %vm278_vm1, %v6870_v43, -inf  ;;  %v6938_v2 = vmax.f32 %v6936_v49, %v6937_v16  ;;  %v6944_v20 = vrot.slane %v6943_v45, 2  ;;  %v5882_v49 = vld [vmem:[%s10191_s21 + $0x40] sm:$0xff] }
 0x649   : > { %v7666_v52 = vmax.f32 %v7664_v39, %v7665_v40  ;;  %v7667_v48 = vsel %vm278_vm1, %v6877_v24, -inf  ;;  %v6951_v9 = vrot.slane %v6950_v44, 2  ;;  %v6956_v36 = vrot.slane %v6955_v7, 4 }
 0x64a   : > { %v7669_v13 = vmax.f32 %v7667_v48, %v7668_v22  ;;  %v7904_v33 = vsel %vm7890_vm13, %v7663_v34, %v7660_v23  ;;  %v6939_v38 = vrot.slane %v6938_v2, 1  ;;  %v6945_v6 = vmax.f32 %v6943_v45, %v6944_v20 }
 0x64b   : > { %v7905_v17 = vsel %vm7892_vm14, %v7666_v52, %v7904_v33  ;;  %v6952_v5 = vmax.f32 %v6950_v44, %v6951_v9  ;;  %v6957_v46 = vmax.f32 %v6955_v7, %v6956_v36  ;;  %v5911_v58 = vadd.f32 %v5879_v50, %v5847_v14 }
 0x64c   : > { %v6940_v60 = vmax.f32 %v6938_v2, %v6939_v38  ;;  %v6946_v12 = vrot.slane %v6945_v6, 1  ;;  %v11382_v55 = vsel %vm7894_vm15, %v7669_v13, %v7905_v17  ;;  %v5813_v40 = vmul.f32 %v11253_v53, %v11203_v26  ;;  %v11413_v38 = vpop.f32.mrb[20].mxu1 }
 0x64d   : > { %v6953_v51 = vrot.slane %v6952_v5, 1  ;;  %v6958_v22 = vrot.slane %v6957_v46, 2  ;;  %vm5943_vm0 = vcmp.gt.f32.partialorder %v5911_v58, 0.0  ;;  %v5975_v56 = vmul.f32 0.1, %v5911_v58 }
 0x64e   : > { %v6947_v35 = vmax.f32 %v6945_v6, %v6946_v12  ;;  %v5852_v11 = vadd.f32 %v11208_v21, %v5813_v40  ;;  %v5811_v14 = vmul.f32 %v11203_v26, %v11255_v31  ;;  %v5814_v42 = vmul.f32 %v11259_v32, %v11203_v26 }
 0x64f   : > { %v6954_v10 = vmax.f32 %v6952_v5, %v6953_v51  ;;  %v6959_v25 = vmax.f32 %v6957_v46, %v6958_v22  ;;  %v6007_v29 = vsel %vm5943_vm0, %v5911_v58, %v5975_v56  ;;  %v11393_v53 = vsel %vm278_vm1, %v6940_v60, -inf }
 0x650   : > { %v6151_v47 = vcombine.high %v6007_v29, %v6007_v29  ;;  %v6158_v37 = vrot.slane %v6007_v29, %v11221_v4  ;;  %v5916_v63 = vadd.f32 %v5884_v3, %v5852_v11  ;;  %v11398_v0 = vsel %vm278_vm1, %v6947_v35, -inf }
 0x651   : > { %v6960_v30 = vrot.slane %v6959_v25, 1  ;;  %v5850_v31 = vadd.f32 %v11208_v21, %v5811_v14  ;;  %v5853_v8 = vadd.f32 %v11208_v21, %v5814_v42  ;;  %v11403_v1 = vsel %vm278_vm1, %v6954_v10, -inf }
 0x652   : > { %v6165_v32 = vrot.slane %v6151_v47, %v11221_v4  ;;  %v6166_v7 = vcombine.high %v6158_v37, %v6158_v37  ;;  %v6878_v43 = vsel %vm281_vm2, %v6158_v37, -inf  ;;  %vm5948_vm10 = vcmp.gt.f32.partialorder %v5916_v63, 0.0  ;;  %v11421_v37 = vpop.f32.mrb[21].mxu1 }
 0x653   : > { %v6879_v16 = vrot.slane %v6878_v43, 4  ;;  %v5980_v45 = vmul.f32 0.1, %v5916_v63  ;;  %v5914_v24 = vadd.f32 %v5882_v49, %v5850_v31  ;;  %v6961_v23 = vmax.f32 %v6959_v25, %v6960_v30 }
 0x654   : > { %v6167_v61 = vcombine.high %v6165_v32, %v6165_v32  ;;  %v6885_v44 = vsel %vm281_vm2, %v6166_v7, -inf  ;;  %v6892_v34 = vsel %vm281_vm2, %v6165_v32, -inf  ;;  %v11410_v20 = vadd.f32 %v5885_v19, %v5853_v8 }
 0x655   : > { %v6880_v21 = vmax.f32 %v6878_v43, %v6879_v16  ;;  %v6886_v39 = vrot.slane %v6885_v44, 4  ;;  %v6893_v2 = vrot.slane %v6892_v34, 4  ;;  %v6012_v52 = vsel %vm5948_vm10, %v5916_v63, %v5980_v45 }
 0x656   : > { %v6899_v50 = vsel %vm281_vm2, %v6167_v61, -inf  ;;  %vm5946_vm11 = vcmp.gt.f32.partialorder %v5914_v24, 0.0  ;;  %v5978_v48 = vmul.f32 0.1, %v5914_v24  ;;  %v7680_v6 = vsel %vm278_vm1, %v6961_v23, -inf }
 0x657   : > { %v6881_v9 = vrot.slane %v6880_v21, 2  ;;  %v6887_v36 = vmax.f32 %v6885_v44, %v6886_v39  ;;  %v6894_v13 = vmax.f32 %v6892_v34, %v6893_v2  ;;  %v6900_v33 = vrot.slane %v6899_v50, 4 }
 0x658   : > { %v6236_v17 = vcombine.high %v6012_v52, %v6012_v52  ;;  %v6243_v5 = vrot.slane %v6012_v52, %v11221_v4  ;;  %v6010_v46 = vsel %vm5946_vm11, %v5914_v24, %v5978_v48  ;;  %vm5949_vm12 = vcmp.gt.f32.partialorder %v11410_v20, 0.0 }
 0x659   : > { %v6882_v58 = vmax.f32 %v6880_v21, %v6881_v9  ;;  %v6888_v60 = vrot.slane %v6887_v36, 2  ;;  %v6895_v12 = vrot.slane %v6894_v13, 2  ;;  %v6901_v40 = vmax.f32 %v6899_v50, %v6900_v33 }
 0x65a   : > { %v6250_v51 = vrot.slane %v6236_v17, %v11221_v4  ;;  %v6251_v22 = vcombine.high %v6243_v5, %v6243_v5  ;;  %v7018_v56 = vsel %vm281_vm2, %v6243_v5, -inf  ;;  %v6202_v3 = vcombine.high %v6010_v46, %v6010_v46 }
 0x65b   : > { %v6883_v35 = vrot.slane %v6882_v58, 1  ;;  %v6889_v11 = vmax.f32 %v6887_v36, %v6888_v60  ;;  %v6896_v14 = vmax.f32 %v6894_v13, %v6895_v12  ;;  %v6902_v10 = vrot.slane %v6901_v40, 2 }
 0x65c   : > { %v6252_v25 = vcombine.high %v6250_v51, %v6250_v51  ;;  %v7019_v29 = vrot.slane %v7018_v56, 4  ;;  %v7025_v42 = vsel %vm281_vm2, %v6251_v22, -inf  ;;  %v7032_v47 = vsel %vm281_vm2, %v6250_v51, -inf }
 0x65d   : > { %v6884_v63 = vmax.f32 %v6882_v58, %v6883_v35  ;;  %v6890_v49 = vrot.slane %v6889_v11, 1  ;;  %v6897_v30 = vrot.slane %v6896_v14, 1  ;;  %v6903_v31 = vmax.f32 %v6901_v40, %v6902_v10 }
 0x65e   : > { %v7020_v8 = vmax.f32 %v7018_v56, %v7019_v29  ;;  %v7026_v32 = vrot.slane %v7025_v42, 4  ;;  %v7033_v7 = vrot.slane %v7032_v47, 4  ;;  %v7039_v43 = vsel %vm281_vm2, %v6252_v25, -inf }
 0x65f   : > { %v6891_v19 = vmax.f32 %v6889_v11, %v6890_v49  ;;  %v6898_v16 = vmax.f32 %v6896_v14, %v6897_v30  ;;  %v6904_v45 = vrot.slane %v6903_v31, 1  ;;  %v7670_v24 = vsel %vm278_vm1, %v6884_v63, -inf }
 0x660   : > { %v7672_v23 = vmax.f32 %v7670_v24, %v11393_v53  ;;  %v7021_v61 = vrot.slane %v7020_v8, 2  ;;  %v7027_v44 = vmax.f32 %v7025_v42, %v7026_v32  ;;  %v7034_v34 = vmax.f32 %v7032_v47, %v7033_v7 }
 0x661   : > { %v6905_v21 = vmax.f32 %v6903_v31, %v6904_v45  ;;  %v7673_v39 = vsel %vm278_vm1, %v6891_v19, -inf  ;;  %v7676_v2 = vsel %vm278_vm1, %v6898_v16, -inf  ;;  %v7040_v50 = vrot.slane %v7039_v43, 4 }
 0x662   : > { %v7675_v52 = vmax.f32 %v7673_v39, %v11398_v0  ;;  %v7678_v48 = vmax.f32 %v7676_v2, %v11403_v1  ;;  %v7907_v9 = vsel %vm7896_vm3, %v7672_v23, %v11382_v55  ;;  %v7022_v36 = vmax.f32 %v7020_v8, %v7021_v61 }
 0x663   : > { %v7679_v53 = vsel %vm278_vm1, %v6905_v21, -inf  ;;  %v7028_v13 = vrot.slane %v7027_v44, 2  ;;  %v7035_v33 = vrot.slane %v7034_v34, 2  ;;  %v7041_v17 = vmax.f32 %v7039_v43, %v7040_v50 }
 0x664   : > { %v7681_v5 = vmax.f32 %v7679_v53, %v7680_v6  ;;  %v7908_v58 = vsel %vm7898_vm4, %v7675_v52, %v7907_v9  ;;  %v7023_v60 = vrot.slane %v7022_v36, 1  ;;  %v6209_v12 = vrot.slane %v6010_v46, %v11221_v4 }
 0x665   : > { %v7909_v0 = vsel %vm7900_vm6, %v7678_v48, %v7908_v58  ;;  %v7029_v40 = vmax.f32 %v7027_v44, %v7028_v13  ;;  %v7036_v1 = vmax.f32 %v7034_v34, %v7035_v33  ;;  %v7042_v51 = vrot.slane %v7041_v17, 2  ;;  %v11456_v44 = vpop.f32.mrb[22].mxu1 }
 0x666   : > { %v7910_v55 = vsel %vm7902_vm7, %v7681_v5, %v7909_v0  ;;  %v7024_v22 = vmax.f32 %v7022_v36, %v7023_v60  ;;  %v6216_v56 = vrot.slane %v6202_v3, %v11221_v4  ;;  %v6217_v35 = vcombine.high %v6209_v12, %v6209_v12 }
 0x667   : > { %7962 = vst.msk [vmem:[%s11345_s8 + $0x8] sm:$0xff] %vm278_vm1, %v7910_v55  ;;  %v7030_v11 = vrot.slane %v7029_v40, 1  ;;  %v7037_v6 = vrot.slane %v7036_v1, 1  ;;  %v7043_v14 = vmax.f32 %v7041_v17, %v7042_v51  ;;  %v6962_v10 = vsel %vm281_vm2, %v6209_v12, -inf }
 0x668   : > { %v11443_v46 = vsel %vm278_vm1, %v7024_v22, -inf  ;;  %v6218_v25 = vcombine.high %v6216_v56, %v6216_v56  ;;  %v6963_v29 = vrot.slane %v6962_v10, 4  ;;  %v6969_v42 = vsel %vm281_vm2, %v6217_v35, -inf }
 0x669   : > { %v7031_v47 = vmax.f32 %v7029_v40, %v7030_v11  ;;  %v7038_v63 = vmax.f32 %v7036_v1, %v7037_v6  ;;  %v7044_v49 = vrot.slane %v7043_v14, 1  ;;  %v6970_v30 = vrot.slane %v6969_v42, 4  ;;  %v11469_v11 = vpop.f32.mrb[23].mxu1 }
 0x66a   : > { %v6964_v3 = vmax.f32 %v6962_v10, %v6963_v29  ;;  %v6976_v31 = vsel %vm281_vm2, %v6216_v56, -inf  ;;  %v6983_v8 = vsel %vm281_vm2, %v6218_v25, -inf  ;;  %v5981_v32 = vmul.f32 0.1, %v11410_v20 }
 0x66b   : > { %v7045_v7 = vmax.f32 %v7043_v14, %v7044_v49  ;;  %v7686_v43 = vsel %vm278_vm1, %v7031_v47, -inf  ;;  %v11451_v19 = vsel %vm278_vm1, %v7038_v63, -inf  ;;  %v6971_v16 = vmax.f32 %v6969_v42, %v6970_v30 }
 0x66c   : > { %v6965_v45 = vrot.slane %v6964_v3, 2  ;;  %v6977_v24 = vrot.slane %v6976_v31, 4  ;;  %v6984_v23 = vrot.slane %v6983_v8, 4  ;;  %v6013_v61 = vsel %vm5949_vm12, %v11410_v20, %v5981_v32 }
 0x66d   : > { %v11459_v34 = vsel %vm278_vm1, %v7045_v7, -inf  ;;  %v6972_v21 = vrot.slane %v6971_v16, 2  ;;  %v6253_v39 = vcombine.high %v6013_v61, %v6013_v61  ;;  %v6260_v2 = vrot.slane %v6013_v61, %v11221_v4 }
 0x66e   : > { %v6966_v50 = vmax.f32 %v6964_v3, %v6965_v45  ;;  %v6978_v52 = vmax.f32 %v6976_v31, %v6977_v24  ;;  %v6985_v48 = vmax.f32 %v6983_v8, %v6984_v23  ;;  %v5812_v9 = vmul.f32 %v11203_v26, %v11261_v59  ;;  %v5883_v24 = vld [vmem:[%s10191_s21 + $0x48] sm:$0xff] }
 0x66f   : > { %v6973_v36 = vmax.f32 %v6971_v16, %v6972_v21  ;;  %v6267_v53 = vrot.slane %v6253_v39, %v11221_v4  ;;  %v6268_v13 = vcombine.high %v6260_v2, %v6260_v2  ;;  %v7046_v20 = vsel %vm281_vm2, %v6260_v2, -inf  ;;  %v11477_v16 = vld [vmem:[%s12083_s6] ss:$0 sm:$0xff] }
 0x670   : > { %v6967_v33 = vrot.slane %v6966_v50, 1  ;;  %v6979_v17 = vrot.slane %v6978_v52, 2  ;;  %v6986_v5 = vrot.slane %v6985_v48, 2  ;;  %v7047_v58 = vrot.slane %v7046_v20, 4 }
 0x671   : > { %v6974_v60 = vrot.slane %v6973_v36, 1  ;;  %v6269_v12 = vcombine.high %v6267_v53, %v6267_v53  ;;  %v7053_v0 = vsel %vm281_vm2, %v6268_v13, -inf  ;;  %v7060_v40 = vsel %vm281_vm2, %v6267_v53, -inf }
 0x672   : > { %v6968_v1 = vmax.f32 %v6966_v50, %v6967_v33  ;;  %v6980_v51 = vmax.f32 %v6978_v52, %v6979_v17  ;;  %v6987_v55 = vmax.f32 %v6985_v48, %v6986_v5  ;;  %v7048_v26 = vmax.f32 %v7046_v20, %v7047_v58 }
 0x673   : > { %v6975_v59 = vmax.f32 %v6973_v36, %v6974_v60  ;;  %v7054_v22 = vrot.slane %v7053_v0, 4  ;;  %v7061_v56 = vrot.slane %v7060_v40, 4  ;;  %v7067_v35 = vsel %vm281_vm2, %v6269_v12, -inf }
 0x674   : > { %v6981_v6 = vrot.slane %v6980_v51, 1  ;;  %v6988_v14 = vrot.slane %v6987_v55, 1  ;;  %v7682_v10 = vsel %vm278_vm1, %v6968_v1, -inf  ;;  %v7049_v25 = vrot.slane %v7048_v26, 2 }
 0x675   : > { %v7684_v29 = vmax.f32 %v7682_v10, %v11443_v46  ;;  %v7685_v42 = vsel %vm278_vm1, %v6975_v59, -inf  ;;  %v7055_v47 = vmax.f32 %v7053_v0, %v7054_v22  ;;  %v7062_v63 = vmax.f32 %v7060_v40, %v7061_v56  ;;  %v5888_v0 = vld [vmem:[%s10191_s21 + $0x70] sm:$0xff]  ;;  %v5886_v40 = vld [vmem:[%s10191_s21 + $0x60] sm:$0xff] }
 0x676   : > { %v6982_v49 = vmax.f32 %v6980_v51, %v6981_v6  ;;  %v6989_v30 = vmax.f32 %v6987_v55, %v6988_v14  ;;  %v7687_v3 = vmax.f32 %v7685_v42, %v7686_v43  ;;  %v7050_v31 = vmax.f32 %v7048_v26, %v7049_v25 }
 0x677   : > { %v7056_v8 = vrot.slane %v7055_v47, 2  ;;  %v7063_v32 = vrot.slane %v7062_v63, 2  ;;  %v7068_v7 = vrot.slane %v7067_v35, 4  ;;  %v5851_v45 = vadd.f32 %v11477_v16, %v5812_v9  ;;  %v11489_v9 = vld [vmem:[%s12082_s5] ss:$0 sm:$0xff] }
 0x678   : > { %v7688_v46 = vsel %vm278_vm1, %v6982_v49, -inf  ;;  %v7691_v23 = vsel %vm278_vm1, %v6989_v30, -inf  ;;  %v7911_v61 = vsel %vm7890_vm13, %v7687_v3, %v7684_v29  ;;  %v7051_v21 = vrot.slane %v7050_v31, 1 }
 0x679   : > { %v7690_v43 = vmax.f32 %v7688_v46, %v11451_v19  ;;  %v7693_v39 = vmax.f32 %v7691_v23, %v11459_v34  ;;  %v7057_v2 = vmax.f32 %v7055_v47, %v7056_v8  ;;  %v7064_v50 = vmax.f32 %v7062_v63, %v7063_v32 }
 0x67a   : > { %v7052_v52 = vmax.f32 %v7050_v31, %v7051_v21  ;;  %v7069_v48 = vmax.f32 %v7067_v35, %v7068_v7  ;;  %v5915_v36 = vadd.f32 %v5883_v24, %v5851_v45  ;;  %v5817_v53 = vmul.f32 %v11489_v9, %v11263_v54  ;;  %v5889_v45 = vld [vmem:[%s10191_s21 + $0x78] sm:$0xff]  ;;  %v11525_v24 = vpop.f32.mrb[24].mxu1 }
 0x67b   : > { %v7912_v13 = vsel %vm7892_vm14, %v7690_v43, %v7911_v61  ;;  %v7058_v19 = vrot.slane %v7057_v2, 1  ;;  %v7065_v20 = vrot.slane %v7064_v50, 1  ;;  %v5815_v34 = vmul.f32 %v11489_v9, %v11266_v27 }
 0x67c   : > { %v7070_v33 = vrot.slane %v7069_v48, 2  ;;  %vm5947_vm5 = vcmp.gt.f32.partialorder %v5915_v36, 0.0  ;;  %v5979_v17 = vmul.f32 0.1, %v5915_v36  ;;  %v11497_v60 = vsel %vm7894_vm15, %v7693_v39, %v7912_v13 }
 0x67d   : > { %v7059_v5 = vmax.f32 %v7057_v2, %v7058_v19  ;;  %v7066_v58 = vmax.f32 %v7064_v50, %v7065_v20  ;;  %v5856_v12 = vadd.f32 %v11477_v16, %v5817_v53  ;;  %v5854_v51 = vadd.f32 %v11477_v16, %v5815_v34 }
 0x67e   : > { %v7071_v54 = vmax.f32 %v7069_v48, %v7070_v33  ;;  %v6011_v1 = vsel %vm5947_vm5, %v5915_v36, %v5979_v17  ;;  %v5818_v55 = vmul.f32 %v11489_v9, %v11269_v57  ;;  %v11506_v27 = vsel %vm278_vm1, %v7052_v52, -inf }
 0x67f   : > { %v11509_v26 = vsel %vm278_vm1, %v7059_v5, -inf  ;;  %v6219_v59 = vcombine.high %v6011_v1, %v6011_v1  ;;  %v6226_v22 = vrot.slane %v6011_v1, %v11221_v4  ;;  %v11513_v35 = vsel %vm278_vm1, %v7066_v58, -inf }
 0x680   : > { %v7072_v56 = vrot.slane %v7071_v54, 1  ;;  %v5920_v6 = vadd.f32 %v5888_v0, %v5856_v12  ;;  %v5918_v14 = vadd.f32 %v5886_v40, %v5854_v51  ;;  %v5857_v29 = vadd.f32 %v11477_v16, %v5818_v55 }
 0x681   : > { %v6233_v10 = vrot.slane %v6219_v59, %v11221_v4  ;;  %v6234_v25 = vcombine.high %v6226_v22, %v6226_v22  ;;  %v6990_v57 = vsel %vm281_vm2, %v6226_v22, -inf  ;;  %v11522_v31 = vmul.f32 %v11489_v9, %v11288_v15 }
 0x682   : > { %v7073_v42 = vmax.f32 %v7071_v54, %v7072_v56  ;;  %v6991_v47 = vrot.slane %v6990_v57, 4  ;;  %vm5952_vm8 = vcmp.gt.f32.partialorder %v5920_v6, 0.0  ;;  %v5984_v63 = vmul.f32 0.1, %v5920_v6 }
 0x683   : > { %v6235_v49 = vcombine.high %v6233_v10, %v6233_v10  ;;  %v6997_v30 = vsel %vm281_vm2, %v6234_v25, -inf  ;;  %v7004_v3 = vsel %vm281_vm2, %v6233_v10, -inf  ;;  %vm5950_vm9 = vcmp.gt.f32.partialorder %v5918_v14, 0.0 }
 0x684   : > { %v6992_v8 = vmax.f32 %v6990_v57, %v6991_v47  ;;  %v6998_v32 = vrot.slane %v6997_v30, 4  ;;  %v7005_v7 = vrot.slane %v7004_v3, 4  ;;  %v11528_v46 = vsel %vm278_vm1, %v7073_v42, -inf }
 0x685   : > { %v7011_v23 = vsel %vm281_vm2, %v6235_v49, -inf  ;;  %v6016_v61 = vsel %vm5952_vm8, %v5920_v6, %v5984_v63  ;;  %v5982_v21 = vmul.f32 0.1, %v5918_v14  ;;  %v11532_v36 = vadd.f32 %v5889_v45, %v5857_v29  ;;  %v11539_v29 = vpop.f32.mrb[25].mxu1 }
 0x686   : > { %v6993_v43 = vrot.slane %v6992_v8, 2  ;;  %v6999_v39 = vmax.f32 %v6997_v30, %v6998_v32  ;;  %v7006_v2 = vmax.f32 %v7004_v3, %v7005_v7  ;;  %v7012_v50 = vrot.slane %v7011_v23, 4 }
 0x687   : > { %v6304_v15 = vcombine.high %v6016_v61, %v6016_v61  ;;  %v6311_v52 = vrot.slane %v6016_v61, %v11221_v4  ;;  %v6014_v48 = vsel %vm5950_vm9, %v5918_v14, %v5982_v21  ;;  %vm5953_vm0 = vcmp.gt.f32.partialorder %v11532_v36, 0.0 }
 0x688   : > { %v6994_v53 = vmax.f32 %v6992_v8, %v6993_v43  ;;  %v7000_v13 = vrot.slane %v6999_v39, 2  ;;  %v7007_v19 = vrot.slane %v7006_v2, 2  ;;  %v7013_v20 = vmax.f32 %v7011_v23, %v7012_v50 }
 0x689   : > { %v6318_v34 = vrot.slane %v6304_v15, %v11221_v4  ;;  %v6319_v33 = vcombine.high %v6311_v52, %v6311_v52  ;;  %v7130_v17 = vsel %vm281_vm2, %v6311_v52, -inf  ;;  %v6270_v5 = vcombine.high %v6014_v48, %v6014_v48 }
 0x68a   : > { %v6995_v58 = vrot.slane %v6994_v53, 1  ;;  %v7001_v12 = vmax.f32 %v6999_v39, %v7000_v13  ;;  %v7008_v0 = vmax.f32 %v7006_v2, %v7007_v19  ;;  %v7014_v40 = vrot.slane %v7013_v20, 2 }
 0x68b   : > { %v6320_v54 = vcombine.high %v6318_v34, %v6318_v34  ;;  %v7131_v1 = vrot.slane %v7130_v17, 4  ;;  %v7137_v51 = vsel %vm281_vm2, %v6319_v33, -inf  ;;  %v7144_v55 = vsel %vm281_vm2, %v6318_v34, -inf }
 0x68c   : > { %v6996_v59 = vmax.f32 %v6994_v53, %v6995_v58  ;;  %v7002_v22 = vrot.slane %v7001_v12, 1  ;;  %v7009_v56 = vrot.slane %v7008_v0, 1  ;;  %v7015_v6 = vmax.f32 %v7013_v20, %v7014_v40 }
 0x68d   : > { %v7132_v14 = vmax.f32 %v7130_v17, %v7131_v1  ;;  %v7138_v10 = vrot.slane %v7137_v51, 4  ;;  %v7145_v25 = vrot.slane %v7144_v55, 4  ;;  %v7151_v57 = vsel %vm281_vm2, %v6320_v54, -inf }
 0x68e   : > { %v7003_v42 = vmax.f32 %v7001_v12, %v7002_v22  ;;  %v7010_v47 = vmax.f32 %v7008_v0, %v7009_v56  ;;  %v7016_v63 = vrot.slane %v7015_v6, 1  ;;  %v7694_v49 = vsel %vm278_vm1, %v6996_v59, -inf }
 0x68f   : > { %v7696_v30 = vmax.f32 %v7694_v49, %v11506_v27  ;;  %v7133_v3 = vrot.slane %v7132_v14, 2  ;;  %v7139_v8 = vmax.f32 %v7137_v51, %v7138_v10  ;;  %v7146_v32 = vmax.f32 %v7144_v55, %v7145_v25 }
 0x690   : > { %v7017_v7 = vmax.f32 %v7015_v6, %v7016_v63  ;;  %v7697_v45 = vsel %vm278_vm1, %v7003_v42, -inf  ;;  %v7700_v23 = vsel %vm278_vm1, %v7010_v47, -inf  ;;  %v7152_v61 = vrot.slane %v7151_v57, 4 }
 0x691   : > { %v7699_v21 = vmax.f32 %v7697_v45, %v11509_v26  ;;  %v7702_v43 = vmax.f32 %v7700_v23, %v11513_v35  ;;  %v7914_v39 = vsel %vm7896_vm3, %v7696_v30, %v11497_v60  ;;  %v7134_v2 = vmax.f32 %v7132_v14, %v7133_v3 }
 0x692   : > { %v7703_v27 = vsel %vm278_vm1, %v7017_v7, -inf  ;;  %v7140_v50 = vrot.slane %v7139_v8, 2  ;;  %v7147_v15 = vrot.slane %v7146_v32, 2  ;;  %v7153_v52 = vmax.f32 %v7151_v57, %v7152_v61  ;;  %v11567_v57 = vpop.f32.mrb[26].mxu1 }
 0x693   : > { %v7705_v53 = vmax.f32 %v7703_v27, %v11528_v46  ;;  %v7915_v13 = vsel %vm7898_vm4, %v7699_v21, %v7914_v39  ;;  %v7135_v19 = vrot.slane %v7134_v2, 1  ;;  %v6277_v20 = vrot.slane %v6014_v48, %v11221_v4 }
 0x694   : > { %v7916_v26 = vsel %vm7900_vm6, %v7702_v43, %v7915_v13  ;;  %v7141_v35 = vmax.f32 %v7139_v8, %v7140_v50  ;;  %v7148_v34 = vmax.f32 %v7146_v32, %v7147_v15  ;;  %v7154_v33 = vrot.slane %v7153_v52, 2 }
 0x695   : > { %v7917_v60 = vsel %vm7902_vm7, %v7705_v53, %v7916_v26  ;;  %v7136_v17 = vmax.f32 %v7134_v2, %v7135_v19  ;;  %v6284_v58 = vrot.slane %v6270_v5, %v11221_v4  ;;  %v6285_v12 = vcombine.high %v6277_v20, %v6277_v20 }
 0x696   : > { %7963 = vst.msk [vmem:[%s11345_s8 + $0x10] sm:$0xff] %vm278_vm1, %v7917_v60  ;;  %v7142_v0 = vrot.slane %v7141_v35, 1  ;;  %v7149_v46 = vrot.slane %v7148_v34, 1  ;;  %v7155_v40 = vmax.f32 %v7153_v52, %v7154_v33  ;;  %v7074_v54 = vsel %vm281_vm2, %v6277_v20, -inf  ;;  %v11586_v33 = vpop.f32.mrb[27].mxu1 }
 0x697   : > { %v11561_v48 = vsel %vm278_vm1, %v7136_v17, -inf  ;;  %v6286_v1 = vcombine.high %v6284_v58, %v6284_v58  ;;  %v7075_v51 = vrot.slane %v7074_v54, 4  ;;  %v7081_v55 = vsel %vm281_vm2, %v6285_v12, -inf }
 0x698   : > { %v7143_v59 = vmax.f32 %v7141_v35, %v7142_v0  ;;  %v7150_v22 = vmax.f32 %v7148_v34, %v7149_v46  ;;  %v7156_v56 = vrot.slane %v7155_v40, 1  ;;  %v7082_v6 = vrot.slane %v7081_v55, 4 }
 0x699   : > { %v7076_v5 = vmax.f32 %v7074_v54, %v7075_v51  ;;  %v7088_v14 = vsel %vm281_vm2, %v6284_v58, -inf  ;;  %v7095_v10 = vsel %vm281_vm2, %v6286_v1, -inf  ;;  %v5985_v25 = vmul.f32 0.1, %v11532_v36 }
 0x69a   : > { %v7157_v42 = vmax.f32 %v7155_v40, %v7156_v56  ;;  %v7710_v47 = vsel %vm278_vm1, %v7143_v59, -inf  ;;  %v11571_v63 = vsel %vm278_vm1, %v7150_v22, -inf  ;;  %v7083_v49 = vmax.f32 %v7081_v55, %v7082_v6  ;;  %v5887_v59 = vld [vmem:[%s10191_s21 + $0x68] sm:$0xff] }
 0x69b   : > { %v7077_v30 = vrot.slane %v7076_v5, 2  ;;  %v7089_v3 = vrot.slane %v7088_v14, 4  ;;  %v7096_v8 = vrot.slane %v7095_v10, 4  ;;  %v6017_v32 = vsel %vm5953_vm0, %v11532_v36, %v5985_v25 }
 0x69c   : > { %v11577_v7 = vsel %vm278_vm1, %v7157_v42, -inf  ;;  %v7084_v45 = vrot.slane %v7083_v49, 2  ;;  %v6321_v23 = vcombine.high %v6017_v32, %v6017_v32  ;;  %v6328_v61 = vrot.slane %v6017_v32, %v11221_v4 }
 0x69d   : > { %v7078_v21 = vmax.f32 %v7076_v5, %v7077_v30  ;;  %v7090_v43 = vmax.f32 %v7088_v14, %v7089_v3  ;;  %v7097_v39 = vmax.f32 %v7095_v10, %v7096_v8  ;;  %v5855_v2 = vadd.f32 %v11477_v16, %v11522_v31 }
 0x69e   : > { %v7085_v27 = vmax.f32 %v7083_v49, %v7084_v45  ;;  %v6335_v50 = vrot.slane %v6321_v23, %v11221_v4  ;;  %v6336_v15 = vcombine.high %v6328_v61, %v6328_v61  ;;  %v7158_v52 = vsel %vm281_vm2, %v6328_v61, -inf }
 0x69f   : > { %v7079_v36 = vrot.slane %v7078_v21, 1  ;;  %v7091_v53 = vrot.slane %v7090_v43, 2  ;;  %v7098_v13 = vrot.slane %v7097_v39, 2  ;;  %v7159_v19 = vrot.slane %v7158_v52, 4 }
 0x6a0   : > { %v7086_v20 = vrot.slane %v7085_v27, 1  ;;  %v6337_v26 = vcombine.high %v6335_v50, %v6335_v50  ;;  %v7165_v35 = vsel %vm281_vm2, %v6336_v15, -inf  ;;  %v7172_v34 = vsel %vm281_vm2, %v6335_v50, -inf }
 0x6a1   : > { %v7080_v31 = vmax.f32 %v7078_v21, %v7079_v36  ;;  %v7092_v60 = vmax.f32 %v7090_v43, %v7091_v53  ;;  %v7099_v17 = vmax.f32 %v7097_v39, %v7098_v13  ;;  %v7160_v58 = vmax.f32 %v7158_v52, %v7159_v19 }
 0x6a2   : > { %v7087_v12 = vmax.f32 %v7085_v27, %v7086_v20  ;;  %v7166_v0 = vrot.slane %v7165_v35, 4  ;;  %v7173_v46 = vrot.slane %v7172_v34, 4  ;;  %v7179_v40 = vsel %vm281_vm2, %v6337_v26, -inf }
 0x6a3   : > { %v7093_v54 = vrot.slane %v7092_v60, 1  ;;  %v7100_v1 = vrot.slane %v7099_v17, 1  ;;  %v7706_v51 = vsel %vm278_vm1, %v7080_v31, -inf  ;;  %v7161_v55 = vrot.slane %v7160_v58, 2 }
 0x6a4   : > { %v7708_v22 = vmax.f32 %v7706_v51, %v11561_v48  ;;  %v7709_v56 = vsel %vm278_vm1, %v7087_v12, -inf  ;;  %v7167_v6 = vmax.f32 %v7165_v35, %v7166_v0  ;;  %v7174_v5 = vmax.f32 %v7172_v34, %v7173_v46  ;;  %v5892_v34 = vld [vmem:[%s10191_s21 + $0x90] sm:$0xff] }
 0x6a5   : > { %v7094_v14 = vmax.f32 %v7092_v60, %v7093_v54  ;;  %v7101_v10 = vmax.f32 %v7099_v17, %v7100_v1  ;;  %v7711_v25 = vmax.f32 %v7709_v56, %v7710_v47  ;;  %v7162_v42 = vmax.f32 %v7160_v58, %v7161_v55  ;;  %v5890_v55 = vld [vmem:[%s10191_s21 + $0x80] sm:$0xff] }
 0x6a6   : > { %v7168_v49 = vrot.slane %v7167_v6, 2  ;;  %v7175_v30 = vrot.slane %v7174_v5, 2  ;;  %v7180_v3 = vrot.slane %v7179_v40, 4  ;;  %v5919_v8 = vadd.f32 %v5887_v59, %v5855_v2 }
 0x6a7   : > { %v7712_v32 = vsel %vm278_vm1, %v7094_v14, -inf  ;;  %v7715_v45 = vsel %vm278_vm1, %v7101_v10, -inf  ;;  %v7918_v23 = vsel %vm7890_vm13, %v7711_v25, %v7708_v22  ;;  %v7163_v61 = vrot.slane %v7162_v42, 1 }
 0x6a8   : > { %v7714_v48 = vmax.f32 %v7712_v32, %v11571_v63  ;;  %v7717_v21 = vmax.f32 %v7715_v45, %v11577_v7  ;;  %v7169_v43 = vmax.f32 %v7167_v6, %v7168_v49  ;;  %v7176_v39 = vmax.f32 %v7174_v5, %v7175_v30 }
 0x6a9   : > { %v7164_v27 = vmax.f32 %v7162_v42, %v7163_v61  ;;  %v7181_v47 = vmax.f32 %v7179_v40, %v7180_v3  ;;  %vm5951_vm10 = vcmp.gt.f32.partialorder %v5919_v8, 0.0  ;;  %v5983_v50 = vmul.f32 0.1, %v5919_v8 }
 0x6aa   : > { %v7919_v2 = vsel %vm7892_vm14, %v7714_v48, %v7918_v23  ;;  %v7170_v15 = vrot.slane %v7169_v43, 1  ;;  %v7177_v52 = vrot.slane %v7176_v39, 1  ;;  %v5821_v36 = vmul.f32 %v11489_v9, %v11313_v18 }
 0x6ab   : > { %v7182_v53 = vrot.slane %v7181_v47, 2  ;;  %v11602_v13 = vsel %vm278_vm1, %v7164_v27, -inf  ;;  %v6015_v63 = vsel %vm5951_vm10, %v5919_v8, %v5983_v50  ;;  %v11605_v7 = vsel %vm7894_vm15, %v7717_v21, %v7919_v2 }
 0x6ac   : > { %v7171_v19 = vmax.f32 %v7169_v43, %v7170_v15  ;;  %v7178_v20 = vmax.f32 %v7176_v39, %v7177_v52  ;;  %v6287_v26 = vcombine.high %v6015_v63, %v6015_v63  ;;  %v6294_v35 = vrot.slane %v6015_v63, %v11221_v4 }
 0x6ad   : > { %v7183_v31 = vmax.f32 %v7181_v47, %v7182_v53  ;;  %v5860_v60 = vadd.f32 %v11477_v16, %v5821_v36  ;;  %v5819_v18 = vmul.f32 %v11489_v9, %v11336_v41  ;;  %v5822_v17 = vmul.f32 %v11489_v9, %v11352_v62 }
 0x6ae   : > { %v11615_v58 = vsel %vm278_vm1, %v7171_v19, -inf  ;;  %v11618_v12 = vsel %vm278_vm1, %v7178_v20, -inf  ;;  %v6301_v0 = vrot.slane %v6287_v26, %v11221_v4  ;;  %v6302_v46 = vcombine.high %v6294_v35, %v6294_v35  ;;  %v11636_v26 = vpop.f32.mrb[28].mxu1 }
 0x6af   : > { %v7184_v40 = vrot.slane %v7183_v31, 1  ;;  %v7102_v54 = vsel %vm281_vm2, %v6294_v35, -inf  ;;  %v5924_v1 = vadd.f32 %v5892_v34, %v5860_v60  ;;  %v5858_v51 = vadd.f32 %v11477_v16, %v5819_v18 }
 0x6b0   : > { %v6303_v41 = vcombine.high %v6301_v0, %v6301_v0  ;;  %v7103_v59 = vrot.slane %v7102_v54, 4  ;;  %v7109_v62 = vsel %vm281_vm2, %v6302_v46, -inf  ;;  %v7116_v22 = vsel %vm281_vm2, %v6301_v0, -inf }
 0x6b1   : > { %v7185_v56 = vmax.f32 %v7183_v31, %v7184_v40  ;;  %v7110_v6 = vrot.slane %v7109_v62, 4  ;;  %v7117_v5 = vrot.slane %v7116_v22, 4  ;;  %vm5956_vm11 = vcmp.gt.f32.partialorder %v5924_v1, 0.0  ;;  %v11640_v40 = vpop.f32.mrb[29].mxu1 }
 0x6b2   : > { %v7104_v14 = vmax.f32 %v7102_v54, %v7103_v59  ;;  %v7123_v10 = vsel %vm281_vm2, %v6303_v41, -inf  ;;  %v5988_v25 = vmul.f32 0.1, %v5924_v1  ;;  %v5922_v42 = vadd.f32 %v5890_v55, %v5858_v51 }
 0x6b3   : > { %v11628_v49 = vsel %vm278_vm1, %v7185_v56, -inf  ;;  %v7111_v30 = vmax.f32 %v7109_v62, %v7110_v6  ;;  %v7118_v3 = vmax.f32 %v7116_v22, %v7117_v5  ;;  %v7124_v8 = vrot.slane %v7123_v10, 4 }
 0x6b4   : > { %v7105_v32 = vrot.slane %v7104_v14, 2  ;;  %v6020_v45 = vsel %vm5956_vm11, %v5924_v1, %v5988_v25  ;;  %vm5954_vm12 = vcmp.gt.f32.partialorder %v5922_v42, 0.0  ;;  %v5986_v23 = vmul.f32 0.1, %v5922_v42 }
 0x6b5   : > { %v7112_v61 = vrot.slane %v7111_v30, 2  ;;  %v7119_v48 = vrot.slane %v7118_v3, 2  ;;  %v7125_v21 = vmax.f32 %v7123_v10, %v7124_v8  ;;  %v6372_v43 = vcombine.high %v6020_v45, %v6020_v45 }
 0x6b6   : > { %v7106_v39 = vmax.f32 %v7104_v14, %v7105_v32  ;;  %v6379_v27 = vrot.slane %v6020_v45, %v11221_v4  ;;  %v6018_v47 = vsel %vm5954_vm12, %v5922_v42, %v5986_v23  ;;  %v11632_v50 = vadd.f32 %v11477_v16, %v5822_v17 }
 0x6b7   : > { %v7113_v2 = vmax.f32 %v7111_v30, %v7112_v61  ;;  %v7120_v15 = vmax.f32 %v7118_v3, %v7119_v48  ;;  %v7126_v52 = vrot.slane %v7125_v21, 2  ;;  %v6386_v36 = vrot.slane %v6372_v43, %v11221_v4 }
 0x6b8   : > { %v7107_v53 = vrot.slane %v7106_v39, 1  ;;  %v6387_v63 = vcombine.high %v6379_v27, %v6379_v27  ;;  %v7242_v19 = vsel %vm281_vm2, %v6379_v27, -inf  ;;  %v6338_v20 = vcombine.high %v6018_v47, %v6018_v47 }
 0x6b9   : > { %v7114_v35 = vrot.slane %v7113_v2, 1  ;;  %v7121_v34 = vrot.slane %v7120_v15, 1  ;;  %v7127_v31 = vmax.f32 %v7125_v21, %v7126_v52  ;;  %v6388_v60 = vcombine.high %v6386_v36, %v6386_v36 }
 0x6ba   : > { %v7108_v18 = vmax.f32 %v7106_v39, %v7107_v53  ;;  %v7243_v0 = vrot.slane %v7242_v19, 4  ;;  %v7249_v17 = vsel %vm281_vm2, %v6387_v63, -inf  ;;  %v7256_v46 = vsel %vm281_vm2, %v6386_v36, -inf }
 0x6bb   : > { %v7115_v54 = vmax.f32 %v7113_v2, %v7114_v35  ;;  %v7122_v1 = vmax.f32 %v7120_v15, %v7121_v34  ;;  %v7128_v51 = vrot.slane %v7127_v31, 1  ;;  %v7250_v55 = vrot.slane %v7249_v17, 4 }
 0x6bc   : > { %v7718_v41 = vsel %vm278_vm1, %v7108_v18, -inf  ;;  %v7244_v59 = vmax.f32 %v7242_v19, %v7243_v0  ;;  %v7257_v62 = vrot.slane %v7256_v46, 4  ;;  %v7263_v22 = vsel %vm281_vm2, %v6388_v60, -inf }
 0x6bd   : > { %v7129_v56 = vmax.f32 %v7127_v31, %v7128_v51  ;;  %v7720_v6 = vmax.f32 %v7718_v41, %v11602_v13  ;;  %v7721_v5 = vsel %vm278_vm1, %v7115_v54, -inf  ;;  %v7724_v14 = vsel %vm278_vm1, %v7122_v1, -inf }
 0x6be   : > { %v7723_v10 = vmax.f32 %v7721_v5, %v11615_v58  ;;  %v7726_v25 = vmax.f32 %v7724_v14, %v11618_v12  ;;  %v7245_v42 = vrot.slane %v7244_v59, 2  ;;  %v7251_v30 = vmax.f32 %v7249_v17, %v7250_v55 }
 0x6bf   : > { %v7727_v3 = vsel %vm278_vm1, %v7129_v56, -inf  ;;  %v7921_v8 = vsel %vm7896_vm3, %v7720_v6, %v11605_v7  ;;  %v7258_v32 = vmax.f32 %v7256_v46, %v7257_v62  ;;  %v7264_v45 = vrot.slane %v7263_v22, 4  ;;  %v5893_v46 = vld [vmem:[%s10191_s21 + $0x98] sm:$0xff]  ;;  %v11669_v56 = vpop.f32.mrb[30].mxu1 }
 0x6c0   : > { %v7729_v13 = vmax.f32 %v7727_v3, %v11628_v49  ;;  %v7922_v23 = vsel %vm7898_vm4, %v7723_v10, %v7921_v8  ;;  %v7246_v61 = vmax.f32 %v7244_v59, %v7245_v42  ;;  %v7252_v48 = vrot.slane %v7251_v30, 2 }
 0x6c1   : > { %v7923_v58 = vsel %vm7900_vm6, %v7726_v25, %v7922_v23  ;;  %v7259_v21 = vrot.slane %v7258_v32, 2  ;;  %v7265_v12 = vmax.f32 %v7263_v22, %v7264_v45  ;;  %v6345_v43 = vrot.slane %v6018_v47, %v11221_v4 }
 0x6c2   : > { %v7924_v39 = vsel %vm7902_vm7, %v7729_v13, %v7923_v58  ;;  %v7247_v27 = vrot.slane %v7246_v61, 1  ;;  %v7253_v2 = vmax.f32 %v7251_v30, %v7252_v48  ;;  %v6352_v7 = vrot.slane %v6338_v20, %v11221_v4  ;;  %v5891_v58 = vld [vmem:[%s10191_s21 + $0x88] sm:$0xff] }
 0x6c3   : > { %7964 = vst.msk [vmem:[%s11345_s8 + $0x18] sm:$0xff] %vm278_vm1, %v7924_v39  ;;  %v7260_v15 = vmax.f32 %v7258_v32, %v7259_v21  ;;  %v7266_v49 = vrot.slane %v7265_v12, 2  ;;  %v6353_v52 = vcombine.high %v6345_v43, %v6345_v43  ;;  %v7186_v36 = vsel %vm281_vm2, %v6345_v43, -inf }
 0x6c4   : > { %v7248_v53 = vmax.f32 %v7246_v61, %v7247_v27  ;;  %v7254_v63 = vrot.slane %v7253_v2, 1  ;;  %v6354_v19 = vcombine.high %v6352_v7, %v6352_v7  ;;  %v7187_v35 = vrot.slane %v7186_v36, 4 }
 0x6c5   : > { %v7261_v34 = vrot.slane %v7260_v15, 1  ;;  %v7267_v47 = vmax.f32 %v7265_v12, %v7266_v49  ;;  %v7193_v31 = vsel %vm281_vm2, %v6353_v52, -inf  ;;  %v7200_v60 = vsel %vm281_vm2, %v6352_v7, -inf }
 0x6c6   : > { %v7255_v18 = vmax.f32 %v7253_v2, %v7254_v63  ;;  %v11664_v20 = vsel %vm278_vm1, %v7248_v53, -inf  ;;  %v7188_v0 = vmax.f32 %v7186_v36, %v7187_v35  ;;  %v7194_v17 = vrot.slane %v7193_v31, 4 }
 0x6c7   : > { %v7262_v54 = vmax.f32 %v7260_v15, %v7261_v34  ;;  %v7268_v1 = vrot.slane %v7267_v47, 1  ;;  %v7201_v51 = vrot.slane %v7200_v60, 4  ;;  %v7207_v55 = vsel %vm281_vm2, %v6354_v19, -inf }
 0x6c8   : > { %v7734_v41 = vsel %vm278_vm1, %v7255_v18, -inf  ;;  %v7189_v59 = vrot.slane %v7188_v0, 2  ;;  %v7195_v62 = vmax.f32 %v7193_v31, %v7194_v17  ;;  %v7208_v22 = vrot.slane %v7207_v55, 4 }
 0x6c9   : > { %v7269_v6 = vmax.f32 %v7267_v47, %v7268_v1  ;;  %v7737_v5 = vsel %vm278_vm1, %v7262_v54, -inf  ;;  %v7202_v14 = vmax.f32 %v7200_v60, %v7201_v51  ;;  %v5925_v10 = vadd.f32 %v5893_v46, %v11632_v50 }
 0x6ca   : > { %v7190_v25 = vmax.f32 %v7188_v0, %v7189_v59  ;;  %v7196_v42 = vrot.slane %v7195_v62, 2  ;;  %v7209_v30 = vmax.f32 %v7207_v55, %v7208_v22  ;;  %v5820_v3 = vmul.f32 %v11489_v9, %v11374_v28  ;;  %v11693_v59 = vpop.f32.mrb[31].mxu1 }
 0x6cb   : > { %v7740_v8 = vsel %vm278_vm1, %v7269_v6, -inf  ;;  %v7203_v32 = vrot.slane %v7202_v14, 2  ;;  %vm5957_vm5 = vcmp.gt.f32.partialorder %v5925_v10, 0.0  ;;  %v5989_v45 = vmul.f32 0.1, %v5925_v10 }
 0x6cc   : > { %v7191_v13 = vrot.slane %v7190_v25, 1  ;;  %v7197_v23 = vmax.f32 %v7195_v62, %v7196_v42  ;;  %v7210_v61 = vrot.slane %v7209_v30, 2  ;;  %v5859_v48 = vadd.f32 %v11477_v16, %v5820_v3 }
 0x6cd   : > { %v7204_v21 = vmax.f32 %v7202_v14, %v7203_v32  ;;  %v6021_v12 = vsel %vm5957_vm5, %v5925_v10, %v5989_v45  ;;  %v5825_v50 = vmul.f32 %v11489_v9, %v11413_v38  ;;  %v5823_v43 = vmul.f32 %v11489_v9, %v11421_v37 }
 0x6ce   : > { %v7192_v28 = vmax.f32 %v7190_v25, %v7191_v13  ;;  %v7198_v39 = vrot.slane %v7197_v23, 1  ;;  %v7211_v27 = vmax.f32 %v7209_v30, %v7210_v61  ;;  %v6389_v2 = vcombine.high %v6021_v12, %v6021_v12 }
 0x6cf   : > { %v7205_v7 = vrot.slane %v7204_v21, 1  ;;  %v6396_v15 = vrot.slane %v6021_v12, %v11221_v4  ;;  %v5923_v49 = vadd.f32 %v5891_v58, %v5859_v48  ;;  %v5864_v52 = vadd.f32 %v11477_v16, %v5825_v50 }
 0x6d0   : > { %v7199_v36 = vmax.f32 %v7197_v23, %v7198_v39  ;;  %v7212_v53 = vrot.slane %v7211_v27, 1  ;;  %v7730_v63 = vsel %vm278_vm1, %v7192_v28, -inf  ;;  %v6403_v19 = vrot.slane %v6389_v2, %v11221_v4 }
 0x6d1   : > { %v7206_v38 = vmax.f32 %v7204_v21, %v7205_v7  ;;  %v7732_v35 = vmax.f32 %v7730_v63, %v11664_v20  ;;  %v6404_v37 = vcombine.high %v6396_v15, %v6396_v15  ;;  %v7270_v34 = vsel %vm281_vm2, %v6396_v15, -inf }
 0x6d2   : > { %v7213_v47 = vmax.f32 %v7211_v27, %v7212_v53  ;;  %v7733_v31 = vsel %vm278_vm1, %v7199_v36, -inf  ;;  %v6405_v60 = vcombine.high %v6403_v19, %v6403_v19  ;;  %v7271_v18 = vrot.slane %v7270_v34, 4 }
 0x6d3   : > { %v7735_v0 = vmax.f32 %v7733_v31, %v7734_v41  ;;  %v7736_v17 = vsel %vm278_vm1, %v7206_v38, -inf  ;;  %v7277_v46 = vsel %vm281_vm2, %v6404_v37, -inf  ;;  %v7284_v54 = vsel %vm281_vm2, %v6403_v19, -inf  ;;  %v5896_v41 = vld [vmem:[%s10191_s21 + $0xb0] sm:$0xff] }
 0x6d4   : > { %v7738_v1 = vmax.f32 %v7736_v17, %v7737_v5  ;;  %v7739_v51 = vsel %vm278_vm1, %v7213_v47, -inf  ;;  %v7272_v20 = vmax.f32 %v7270_v34, %v7271_v18  ;;  %v7278_v55 = vrot.slane %v7277_v46, 4 }
 0x6d5   : > { %v7741_v62 = vmax.f32 %v7739_v51, %v7740_v8  ;;  %v7925_v22 = vsel %vm7890_vm13, %v7735_v0, %v7732_v35  ;;  %v7285_v6 = vrot.slane %v7284_v54, 4  ;;  %v7291_v14 = vsel %vm281_vm2, %v6405_v60, -inf }
 0x6d6   : > { %v7926_v10 = vsel %vm7892_vm14, %v7738_v1, %v7925_v22  ;;  %v7273_v25 = vrot.slane %v7272_v20, 2  ;;  %v7279_v42 = vmax.f32 %v7277_v46, %v7278_v55  ;;  %v7292_v30 = vrot.slane %v7291_v14, 4 }
 0x6d7   : > { %v7286_v3 = vmax.f32 %v7284_v54, %v7285_v6  ;;  %vm5955_vm8 = vcmp.gt.f32.partialorder %v5923_v49, 0.0  ;;  %v5987_v5 = vmul.f32 0.1, %v5923_v49  ;;  %v11700_v32 = vsel %vm7894_vm15, %v7741_v62, %v7926_v10  ;;  %v5894_v54 = vld [vmem:[%s10191_s21 + $0xa0] sm:$0xff] }
 0x6d8   : > { %v7274_v45 = vmax.f32 %v7272_v20, %v7273_v25  ;;  %v7280_v13 = vrot.slane %v7279_v42, 2  ;;  %v7293_v8 = vmax.f32 %v7291_v14, %v7292_v30  ;;  %v5928_v23 = vadd.f32 %v5896_v41, %v5864_v52 }
 0x6d9   : > { %v7287_v61 = vrot.slane %v7286_v3, 2  ;;  %v6019_v48 = vsel %vm5955_vm8, %v5923_v49, %v5987_v5  ;;  %v5862_v58 = vadd.f32 %v11477_v16, %v5823_v43  ;;  %v5826_v21 = vmul.f32 %v11489_v9, %v11456_v44 }
 0x6da   : > { %v7275_v12 = vrot.slane %v7274_v45, 1  ;;  %v7281_v50 = vmax.f32 %v7279_v42, %v7280_v13  ;;  %v7294_v28 = vrot.slane %v7293_v8, 2  ;;  %v6355_v39 = vcombine.high %v6019_v48, %v6019_v48 }
 0x6db   : > { %v7288_v27 = vmax.f32 %v7286_v3, %v7287_v61  ;;  %v6362_v2 = vrot.slane %v6019_v48, %v11221_v4  ;;  %vm5960_vm9 = vcmp.gt.f32.partialorder %v5928_v23, 0.0  ;;  %v5992_v7 = vmul.f32 0.1, %v5928_v23 }
 0x6dc   : > { %v7276_v15 = vmax.f32 %v7274_v45, %v7275_v12  ;;  %v7282_v36 = vrot.slane %v7281_v50, 1  ;;  %v7295_v53 = vmax.f32 %v7293_v8, %v7294_v28  ;;  %v6369_v52 = vrot.slane %v6355_v39, %v11221_v4 }
 0x6dd   : > { %v7289_v49 = vrot.slane %v7288_v27, 1  ;;  %v6370_v43 = vcombine.high %v6362_v2, %v6362_v2  ;;  %v7214_v63 = vsel %vm281_vm2, %v6362_v2, -inf  ;;  %v6024_v44 = vsel %vm5960_vm9, %v5928_v23, %v5992_v7 }
 0x6de   : > { %v7283_v19 = vmax.f32 %v7281_v50, %v7282_v36  ;;  %v7296_v38 = vrot.slane %v7295_v53, 1  ;;  %v11709_v35 = vsel %vm278_vm1, %v7276_v15, -inf  ;;  %v6371_v37 = vcombine.high %v6369_v52, %v6369_v52 }
 0x6df   : > { %v7290_v34 = vmax.f32 %v7288_v27, %v7289_v49  ;;  %v7215_v47 = vrot.slane %v7214_v63, 4  ;;  %v7221_v31 = vsel %vm281_vm2, %v6370_v43, -inf  ;;  %v7228_v60 = vsel %vm281_vm2, %v6369_v52, -inf }
 0x6e0   : > { %v7297_v18 = vmax.f32 %v7295_v53, %v7296_v38  ;;  %v11714_v0 = vsel %vm278_vm1, %v7283_v19, -inf  ;;  %v7222_v17 = vrot.slane %v7221_v31, 4  ;;  %v7229_v46 = vrot.slane %v7228_v60, 4 }
 0x6e1   : > { %v11718_v1 = vsel %vm278_vm1, %v7290_v34, -inf  ;;  %v7216_v51 = vmax.f32 %v7214_v63, %v7215_v47  ;;  %v7235_v20 = vsel %vm281_vm2, %v6371_v37, -inf  ;;  %v6440_v55 = vcombine.high %v6024_v44, %v6024_v44 }
 0x6e2   : > { %v11722_v62 = vsel %vm278_vm1, %v7297_v18, -inf  ;;  %v7223_v22 = vmax.f32 %v7221_v31, %v7222_v17  ;;  %v7230_v6 = vmax.f32 %v7228_v60, %v7229_v46  ;;  %v7236_v14 = vrot.slane %v7235_v20, 4 }
 0x6e3   : > { %v7217_v41 = vrot.slane %v7216_v51, 2  ;;  %v6447_v10 = vrot.slane %v6024_v44, %v11221_v4  ;;  %v6454_v25 = vrot.slane %v6440_v55, %v11221_v4  ;;  %v11726_v42 = vadd.f32 %v5894_v54, %v5862_v58 }
 0x6e4   : > { %v7224_v30 = vrot.slane %v7223_v22, 2  ;;  %v7231_v3 = vrot.slane %v7230_v6, 2  ;;  %v7237_v5 = vmax.f32 %v7235_v20, %v7236_v14  ;;  %v5865_v45 = vadd.f32 %v11477_v16, %v5826_v21 }
 0x6e5   : > { %v7218_v13 = vmax.f32 %v7216_v51, %v7217_v41  ;;  %v6455_v8 = vcombine.high %v6447_v10, %v6447_v10  ;;  %v6456_v23 = vcombine.high %v6454_v25, %v6454_v25  ;;  %v7354_v61 = vsel %vm281_vm2, %v6447_v10, -inf }
 0x6e6   : > { %v7225_v48 = vmax.f32 %v7223_v22, %v7224_v30  ;;  %v7232_v12 = vmax.f32 %v7230_v6, %v7231_v3  ;;  %v7238_v50 = vrot.slane %v7237_v5, 2  ;;  %v7355_v28 = vrot.slane %v7354_v61, 4  ;;  %v5897_v30 = vld [vmem:[%s10191_s21 + $0xb8] sm:$0xff] }
 0x6e7   : > { %v7219_v39 = vrot.slane %v7218_v13, 1  ;;  %v7361_v27 = vsel %vm281_vm2, %v6455_v8, -inf  ;;  %v7368_v58 = vsel %vm281_vm2, %v6454_v25, -inf  ;;  %v7375_v2 = vsel %vm281_vm2, %v6456_v23, -inf }
 0x6e8   : > { %v7226_v7 = vrot.slane %v7225_v48, 1  ;;  %v7233_v15 = vrot.slane %v7232_v12, 1  ;;  %v7239_v36 = vmax.f32 %v7237_v5, %v7238_v50  ;;  %v7356_v16 = vmax.f32 %v7354_v61, %v7355_v28 }
 0x6e9   : > { %v7220_v21 = vmax.f32 %v7218_v13, %v7219_v39  ;;  %v7362_v53 = vrot.slane %v7361_v27, 4  ;;  %v7369_v52 = vrot.slane %v7368_v58, 4  ;;  %v7376_v49 = vrot.slane %v7375_v2, 4 }
 0x6ea   : > { %v7227_v43 = vmax.f32 %v7225_v48, %v7226_v7  ;;  %v7234_v63 = vmax.f32 %v7232_v12, %v7233_v15  ;;  %v7240_v44 = vrot.slane %v7239_v36, 1  ;;  %v7357_v19 = vrot.slane %v7356_v16, 2  ;;  %v5895_v15 = vld [vmem:[%s10191_s21 + $0xa8] sm:$0xff] }
 0x6eb   : > { %v7742_v38 = vsel %vm278_vm1, %v7220_v21, -inf  ;;  %v7363_v37 = vmax.f32 %v7361_v27, %v7362_v53  ;;  %v7370_v34 = vmax.f32 %v7368_v58, %v7369_v52  ;;  %v7377_v47 = vmax.f32 %v7375_v2, %v7376_v49 }
 0x6ec   : > { %v7241_v31 = vmax.f32 %v7239_v36, %v7240_v44  ;;  %v7744_v60 = vmax.f32 %v7742_v38, %v11709_v35  ;;  %v7745_v18 = vsel %vm278_vm1, %v7227_v43, -inf  ;;  %v7748_v17 = vsel %vm278_vm1, %v7234_v63, -inf  ;;  %v11767_v36 = vld [vmem:[%s12083_s6] ss:$0 sm:$0xff] }
 0x6ed   : > { %v7747_v46 = vmax.f32 %v7745_v18, %v11714_v0  ;;  %v7750_v54 = vmax.f32 %v7748_v17, %v11718_v1  ;;  %v7358_v51 = vmax.f32 %v7356_v16, %v7357_v19  ;;  %v7364_v20 = vrot.slane %v7363_v37, 2 }
 0x6ee   : > { %v7751_v55 = vsel %vm278_vm1, %v7241_v31, -inf  ;;  %v7928_v22 = vsel %vm7896_vm3, %v7744_v60, %v11700_v32  ;;  %v7371_v6 = vrot.slane %v7370_v34, 2  ;;  %v7378_v14 = vrot.slane %v7377_v47, 2 }
 0x6ef   : > { %v7753_v35 = vmax.f32 %v7751_v55, %v11722_v62  ;;  %v7929_v41 = vsel %vm7898_vm4, %v7747_v46, %v7928_v22  ;;  %v7359_v10 = vrot.slane %v7358_v51, 1  ;;  %v7365_v25 = vmax.f32 %v7363_v37, %v7364_v20 }
 0x6f0   : > { %v7930_v0 = vsel %vm7900_vm6, %v7750_v54, %v7929_v41  ;;  %v7372_v1 = vmax.f32 %v7370_v34, %v7371_v6  ;;  %v7379_v3 = vmax.f32 %v7377_v47, %v7378_v14  ;;  %vm5958_vm0 = vcmp.gt.f32.partialorder %v11726_v42, 0.0 }
 0x6f1   : > { %v7931_v5 = vsel %vm7902_vm7, %v7753_v35, %v7930_v0  ;;  %v7360_v13 = vmax.f32 %v7358_v51, %v7359_v10  ;;  %v7366_v32 = vrot.slane %v7365_v25, 1  ;;  %v5990_v8 = vmul.f32 0.1, %v11726_v42 }
 0x6f2   : > { %7965 = vst.msk [vmem:[%s11345_s8 + $0x20] sm:$0xff] %vm278_vm1, %v7931_v5  ;;  %v7373_v62 = vrot.slane %v7372_v1, 1  ;;  %v7380_v23 = vrot.slane %v7379_v3, 1  ;;  %v5929_v61 = vadd.f32 %v5897_v30, %v5865_v45  ;;  %v5824_v48 = vmul.f32 %v11489_v9, %v11469_v11 }
 0x6f3   : > { %v7367_v12 = vmax.f32 %v7365_v25, %v7366_v32  ;;  %v11754_v50 = vsel %vm278_vm1, %v7360_v13, -inf  ;;  %v6022_v28 = vsel %vm5958_vm0, %v11726_v42, %v5990_v8  ;;  %v5829_v39 = vmul.f32 %v11489_v9, %v11525_v24 }
 0x6f4   : > { %v7374_v27 = vmax.f32 %v7372_v1, %v7373_v62  ;;  %v7381_v58 = vmax.f32 %v7379_v3, %v7380_v23  ;;  %v6406_v2 = vcombine.high %v6022_v28, %v6022_v28  ;;  %v6413_v7 = vrot.slane %v6022_v28, %v11221_v4 }
 0x6f5   : > { %v11762_v45 = vsel %vm278_vm1, %v7367_v12, -inf  ;;  %vm5961_vm10 = vcmp.gt.f32.partialorder %v5929_v61, 0.0  ;;  %v5993_v11 = vmul.f32 0.1, %v5929_v61  ;;  %v5863_v42 = vadd.f32 %v11767_v36, %v5824_v48 }
 0x6f6   : > { %v11771_v9 = vsel %vm278_vm1, %v7374_v27, -inf  ;;  %v11774_v24 = vsel %vm278_vm1, %v7381_v58, -inf  ;;  %v6420_v16 = vrot.slane %v6406_v2, %v11221_v4  ;;  %v6421_v21 = vcombine.high %v6413_v7, %v6413_v7 }
 0x6f7   : > { %v7298_v53 = vsel %vm281_vm2, %v6413_v7, -inf  ;;  %v6025_v52 = vsel %vm5961_vm10, %v5929_v61, %v5993_v11  ;;  %v5927_v49 = vadd.f32 %v5895_v15, %v5863_v42  ;;  %v11779_v43 = vadd.f32 %v11767_v36, %v5829_v39 }
 0x6f8   : > { %v6422_v63 = vcombine.high %v6420_v16, %v6420_v16  ;;  %v7299_v44 = vrot.slane %v7298_v53, 4  ;;  %v7305_v19 = vsel %vm281_vm2, %v6421_v21, -inf  ;;  %v7312_v38 = vsel %vm281_vm2, %v6420_v16, -inf }
 0x6f9   : > { %v7306_v37 = vrot.slane %v7305_v19, 4  ;;  %v7313_v34 = vrot.slane %v7312_v38, 4  ;;  %v6457_v47 = vcombine.high %v6025_v52, %v6025_v52  ;;  %v6464_v31 = vrot.slane %v6025_v52, %v11221_v4 }
 0x6fa   : > { %v7300_v60 = vmax.f32 %v7298_v53, %v7299_v44  ;;  %v7319_v18 = vsel %vm281_vm2, %v6422_v63, -inf  ;;  %vm5959_vm11 = vcmp.gt.f32.partialorder %v5927_v49, 0.0  ;;  %v5991_v17 = vmul.f32 0.1, %v5927_v49 }
 0x6fb   : > { %v7307_v46 = vmax.f32 %v7305_v19, %v7306_v37  ;;  %v7314_v54 = vmax.f32 %v7312_v38, %v7313_v34  ;;  %v7320_v51 = vrot.slane %v7319_v18, 4  ;;  %v6471_v20 = vrot.slane %v6457_v47, %v11221_v4 }
 0x6fc   : > { %v7301_v55 = vrot.slane %v7300_v60, 2  ;;  %v6472_v22 = vcombine.high %v6464_v31, %v6464_v31  ;;  %v7382_v6 = vsel %vm281_vm2, %v6464_v31, -inf  ;;  %v6023_v14 = vsel %vm5959_vm11, %v5927_v49, %v5991_v17 }
 0x6fd   : > { %v7308_v35 = vrot.slane %v7307_v46, 2  ;;  %v7315_v41 = vrot.slane %v7314_v54, 2  ;;  %v7321_v10 = vmax.f32 %v7319_v18, %v7320_v51  ;;  %v6473_v25 = vcombine.high %v6471_v20, %v6471_v20 }
 0x6fe   : > { %v7302_v30 = vmax.f32 %v7300_v60, %v7301_v55  ;;  %v7383_v0 = vrot.slane %v7382_v6, 4  ;;  %v7389_v1 = vsel %vm281_vm2, %v6472_v22, -inf  ;;  %v7396_v3 = vsel %vm281_vm2, %v6471_v20, -inf }
 0x6ff   : > { %v7309_v5 = vmax.f32 %v7307_v46, %v7308_v35  ;;  %v7316_v13 = vmax.f32 %v7314_v54, %v7315_v41  ;;  %v7322_v32 = vrot.slane %v7321_v10, 2  ;;  %v7390_v8 = vrot.slane %v7389_v1, 4 }
 0x700   : > { %v7303_v62 = vrot.slane %v7302_v30, 1  ;;  %v7384_v23 = vmax.f32 %v7382_v6, %v7383_v0  ;;  %v7397_v61 = vrot.slane %v7396_v3, 4  ;;  %v7403_v48 = vsel %vm281_vm2, %v6473_v25, -inf }
 0x701   : > { %v7310_v12 = vrot.slane %v7309_v5, 1  ;;  %v7317_v28 = vrot.slane %v7316_v13, 1  ;;  %v7323_v39 = vmax.f32 %v7321_v10, %v7322_v32  ;;  %v7391_v27 = vmax.f32 %v7389_v1, %v7390_v8 }
 0x702   : > { %v7304_v58 = vmax.f32 %v7302_v30, %v7303_v62  ;;  %v7385_v2 = vrot.slane %v7384_v23, 2  ;;  %v7398_v7 = vmax.f32 %v7396_v3, %v7397_v61  ;;  %v7404_v15 = vrot.slane %v7403_v48, 4  ;;  %v5900_v3 = vld [vmem:[%s10191_s21 + $0xd0] sm:$0xff] }
 0x703   : > { %v7311_v11 = vmax.f32 %v7309_v5, %v7310_v12  ;;  %v7318_v42 = vmax.f32 %v7316_v13, %v7317_v28  ;;  %v7324_v16 = vrot.slane %v7323_v39, 1  ;;  %v7392_v21 = vrot.slane %v7391_v27, 2 }
 0x704   : > { %v7754_v53 = vsel %vm278_vm1, %v7304_v58, -inf  ;;  %v7386_v52 = vmax.f32 %v7384_v23, %v7385_v2  ;;  %v7399_v49 = vrot.slane %v7398_v7, 2  ;;  %v7405_v63 = vmax.f32 %v7403_v48, %v7404_v15 }
 0x705   : > { %v7325_v44 = vmax.f32 %v7323_v39, %v7324_v16  ;;  %v7756_v19 = vmax.f32 %v7754_v53, %v11754_v50  ;;  %v7757_v38 = vsel %vm278_vm1, %v7311_v11, -inf  ;;  %v7760_v37 = vsel %vm278_vm1, %v7318_v42, -inf }
 0x706   : > { %v7759_v34 = vmax.f32 %v7757_v38, %v11762_v45  ;;  %v7762_v47 = vmax.f32 %v7760_v37, %v11771_v9  ;;  %v7387_v31 = vrot.slane %v7386_v52, 1  ;;  %v7393_v60 = vmax.f32 %v7391_v27, %v7392_v21 }
 0x707   : > { %v7763_v18 = vsel %vm278_vm1, %v7325_v44, -inf  ;;  %v7400_v17 = vmax.f32 %v7398_v7, %v7399_v49  ;;  %v7406_v46 = vrot.slane %v7405_v63, 2  ;;  %v6423_v54 = vcombine.high %v6023_v14, %v6023_v14  ;;  %v11826_v7 = vld [vmem:[%s12082_s5] ss:$0 sm:$0xff] }
 0x708   : > { %v7765_v51 = vmax.f32 %v7763_v18, %v11774_v24  ;;  %v7932_v50 = vsel %vm7890_vm13, %v7759_v34, %v7756_v19  ;;  %v7388_v20 = vmax.f32 %v7386_v52, %v7387_v31  ;;  %v7394_v55 = vrot.slane %v7393_v60, 1  ;;  %v5898_v52 = vld [vmem:[%s10191_s21 + $0xc0] sm:$0xff] }
 0x709   : > { %v7933_v22 = vsel %vm7892_vm14, %v7762_v47, %v7932_v50  ;;  %v7401_v6 = vrot.slane %v7400_v17, 1  ;;  %v7407_v45 = vmax.f32 %v7405_v63, %v7406_v46  ;;  %v6430_v9 = vrot.slane %v6023_v14, %v11221_v4 }
 0x70a   : > { %v7395_v35 = vmax.f32 %v7393_v60, %v7394_v55  ;;  %v11802_v41 = vsel %vm278_vm1, %v7388_v20, -inf  ;;  %v6437_v10 = vrot.slane %v6423_v54, %v11221_v4  ;;  %v11806_v25 = vsel %vm7894_vm15, %v7765_v51, %v7933_v22 }
 0x70b   : > { %v7402_v24 = vmax.f32 %v7400_v17, %v7401_v6  ;;  %v7408_v30 = vrot.slane %v7407_v45, 1  ;;  %v6438_v0 = vcombine.high %v6430_v9, %v6430_v9  ;;  %v7326_v1 = vsel %vm281_vm2, %v6430_v9, -inf }
 0x70c   : > { %v11811_v5 = vsel %vm278_vm1, %v7395_v35, -inf  ;;  %v6439_v13 = vcombine.high %v6437_v10, %v6437_v10  ;;  %v7327_v14 = vrot.slane %v7326_v1, 4  ;;  %v7340_v32 = vsel %vm281_vm2, %v6437_v10, -inf }
 0x70d   : > { %v7409_v8 = vmax.f32 %v7407_v45, %v7408_v30  ;;  %v11815_v62 = vsel %vm278_vm1, %v7402_v24, -inf  ;;  %v7333_v23 = vsel %vm281_vm2, %v6438_v0, -inf  ;;  %v7341_v61 = vrot.slane %v7340_v32, 4 }
 0x70e   : > { %v7328_v48 = vmax.f32 %v7326_v1, %v7327_v14  ;;  %v7334_v12 = vrot.slane %v7333_v23, 4  ;;  %v7347_v28 = vsel %vm281_vm2, %v6439_v13, -inf  ;;  %v5932_v39 = vadd.f32 %v5900_v3, %v11779_v43 }
 0x70f   : > { %v11821_v27 = vsel %vm278_vm1, %v7409_v8, -inf  ;;  %v7342_v58 = vmax.f32 %v7340_v32, %v7341_v61  ;;  %v7348_v2 = vrot.slane %v7347_v28, 4  ;;  %v5827_v15 = vmul.f32 %v11826_v7, %v11539_v29 }
 0x710   : > { %v7329_v11 = vrot.slane %v7328_v48, 2  ;;  %v7335_v42 = vmax.f32 %v7333_v23, %v7334_v12  ;;  %vm5964_vm12 = vcmp.gt.f32.partialorder %v5932_v39, 0.0  ;;  %v5996_v16 = vmul.f32 0.1, %v5932_v39 }
 0x711   : > { %v7343_v21 = vrot.slane %v7342_v58, 2  ;;  %v7349_v53 = vmax.f32 %v7347_v28, %v7348_v2  ;;  %v5866_v43 = vadd.f32 %v11767_v36, %v5827_v15  ;;  %v5830_v49 = vmul.f32 %v11826_v7, %v11567_v57  ;;  %v5901_v28 = vld [vmem:[%s10191_s21 + $0xd8] sm:$0xff] }
 0x712   : > { %v7330_v63 = vmax.f32 %v7328_v48, %v7329_v11  ;;  %v7336_v44 = vrot.slane %v7335_v42, 2  ;;  %v6028_v19 = vsel %vm5964_vm12, %v5932_v39, %v5996_v16  ;;  %v11836_v38 = vmul.f32 %v11826_v7, %v11586_v33 }
 0x713   : > { %v7344_v29 = vmax.f32 %v7342_v58, %v7343_v21  ;;  %v7350_v37 = vrot.slane %v7349_v53, 2  ;;  %v6508_v34 = vcombine.high %v6028_v19, %v6028_v19  ;;  %v6515_v47 = vrot.slane %v6028_v19, %v11221_v4 }
 0x714   : > { %v7331_v31 = vrot.slane %v7330_v63, 1  ;;  %v7337_v60 = vmax.f32 %v7335_v42, %v7336_v44  ;;  %v5930_v18 = vadd.f32 %v5898_v52, %v5866_v43  ;;  %v5869_v17 = vadd.f32 %v11767_v36, %v5830_v49 }
 0x715   : > { %v7345_v46 = vrot.slane %v7344_v29, 1  ;;  %v7351_v54 = vmax.f32 %v7349_v53, %v7350_v37  ;;  %v6522_v57 = vrot.slane %v6508_v34, %v11221_v4  ;;  %v6523_v51 = vcombine.high %v6515_v47, %v6515_v47 }
 0x716   : > { %v7332_v50 = vmax.f32 %v7330_v63, %v7331_v31  ;;  %v7338_v20 = vrot.slane %v7337_v60, 1  ;;  %v7466_v33 = vsel %vm281_vm2, %v6515_v47, -inf  ;;  %vm5962_vm5 = vcmp.gt.f32.partialorder %v5930_v18, 0.0 }
 0x717   : > { %v7346_v55 = vmax.f32 %v7344_v29, %v7345_v46  ;;  %v7352_v22 = vrot.slane %v7351_v54, 1  ;;  %v6524_v6 = vcombine.high %v6522_v57, %v6522_v57  ;;  %v7467_v45 = vrot.slane %v7466_v33, 4 }
 0x718   : > { %v7339_v9 = vmax.f32 %v7337_v60, %v7338_v20  ;;  %v7766_v35 = vsel %vm278_vm1, %v7332_v50, -inf  ;;  %v7473_v10 = vsel %vm281_vm2, %v6523_v51, -inf  ;;  %v7480_v24 = vsel %vm281_vm2, %v6522_v57, -inf }
 0x719   : > { %v7353_v30 = vmax.f32 %v7351_v54, %v7352_v22  ;;  %v7768_v0 = vmax.f32 %v7766_v35, %v11802_v41  ;;  %v7772_v1 = vsel %vm278_vm1, %v7346_v55, -inf  ;;  %v7468_v3 = vmax.f32 %v7466_v33, %v7467_v45 }
 0x71a   : > { %v7769_v13 = vsel %vm278_vm1, %v7339_v9, -inf  ;;  %v7774_v14 = vmax.f32 %v7772_v1, %v11815_v62  ;;  %v7474_v32 = vrot.slane %v7473_v10, 4  ;;  %v7481_v8 = vrot.slane %v7480_v24, 4 }
 0x71b   : > { %v7771_v23 = vmax.f32 %v7769_v13, %v11811_v5  ;;  %v7775_v61 = vsel %vm278_vm1, %v7353_v30, -inf  ;;  %v7935_v48 = vsel %vm7896_vm3, %v7768_v0, %v11806_v25  ;;  %v7469_v12 = vrot.slane %v7468_v3, 2 }
 0x71c   : > { %v7777_v41 = vmax.f32 %v7775_v61, %v11821_v27  ;;  %v7475_v39 = vmax.f32 %v7473_v10, %v7474_v32  ;;  %v7482_v58 = vmax.f32 %v7480_v24, %v7481_v8  ;;  %v7487_v2 = vsel %vm281_vm2, %v6524_v6, -inf }
 0x71d   : > { %v7936_v62 = vsel %vm7898_vm4, %v7771_v23, %v7935_v48  ;;  %v7470_v15 = vmax.f32 %v7468_v3, %v7469_v12  ;;  %v7488_v11 = vrot.slane %v7487_v2, 4  ;;  %v5994_v42 = vmul.f32 0.1, %v5930_v18 }
 0x71e   : > { %v7937_v5 = vsel %vm7900_vm6, %v7774_v14, %v7936_v62  ;;  %v7476_v16 = vrot.slane %v7475_v39, 2  ;;  %v7483_v21 = vrot.slane %v7482_v58, 2  ;;  %v5933_v53 = vadd.f32 %v5901_v28, %v5869_v17 }
 0x71f   : > { %v7938_v25 = vsel %vm7902_vm7, %v7777_v41, %v7937_v5  ;;  %v7471_v43 = vrot.slane %v7470_v15, 1  ;;  %v7489_v52 = vmax.f32 %v7487_v2, %v7488_v11  ;;  %v6026_v27 = vsel %vm5962_vm5, %v5930_v18, %v5994_v42 }
 0x720   : > { %7966 = vst.msk [vmem:[%s11345_s8 + $0x28] sm:$0xff] %vm278_vm1, %v7938_v25  ;;  %v7477_v49 = vmax.f32 %v7475_v39, %v7476_v16  ;;  %v7484_v63 = vmax.f32 %v7482_v58, %v7483_v21  ;;  %v6474_v44 = vcombine.high %v6026_v27, %v6026_v27  ;;  %v6481_v19 = vrot.slane %v6026_v27, %v11221_v4 }
 0x721   : > { %v7472_v29 = vmax.f32 %v7470_v15, %v7471_v43  ;;  %v7490_v37 = vrot.slane %v7489_v52, 2  ;;  %vm5965_vm8 = vcmp.gt.f32.partialorder %v5933_v53, 0.0  ;;  %v5997_v34 = vmul.f32 0.1, %v5933_v53 }
 0x722   : > { %v7478_v47 = vrot.slane %v7477_v49, 1  ;;  %v7485_v31 = vrot.slane %v7484_v63, 1  ;;  %v6488_v60 = vrot.slane %v6474_v44, %v11221_v4  ;;  %v6489_v17 = vcombine.high %v6481_v19, %v6481_v19 }
 0x723   : > { %v7491_v46 = vmax.f32 %v7489_v52, %v7490_v37  ;;  %v11865_v54 = vsel %vm278_vm1, %v7472_v29, -inf  ;;  %v7410_v18 = vsel %vm281_vm2, %v6481_v19, -inf  ;;  %v6029_v57 = vsel %vm5965_vm8, %v5933_v53, %v5997_v34 }
 0x724   : > { %v7479_v51 = vmax.f32 %v7477_v49, %v7478_v47  ;;  %v7486_v50 = vmax.f32 %v7484_v63, %v7485_v31  ;;  %v6490_v20 = vcombine.high %v6488_v60, %v6488_v60  ;;  %v7411_v33 = vrot.slane %v7410_v18, 4 }
 0x725   : > { %v7492_v55 = vrot.slane %v7491_v46, 1  ;;  %v7417_v22 = vsel %vm281_vm2, %v6489_v17, -inf  ;;  %v7424_v6 = vsel %vm281_vm2, %v6488_v60, -inf  ;;  %v6525_v45 = vcombine.high %v6029_v57, %v6029_v57 }
 0x726   : > { %v11871_v9 = vsel %vm278_vm1, %v7479_v51, -inf  ;;  %v11874_v35 = vsel %vm278_vm1, %v7486_v50, -inf  ;;  %v7412_v10 = vmax.f32 %v7410_v18, %v7411_v33  ;;  %v7418_v24 = vrot.slane %v7417_v22, 4 }
 0x727   : > { %v7493_v30 = vmax.f32 %v7491_v46, %v7492_v55  ;;  %v7425_v0 = vrot.slane %v7424_v6, 4  ;;  %v7431_v1 = vsel %vm281_vm2, %v6490_v20, -inf  ;;  %v6532_v3 = vrot.slane %v6029_v57, %v11221_v4 }
 0x728   : > { %v7413_v13 = vrot.slane %v7412_v10, 2  ;;  %v7419_v14 = vmax.f32 %v7417_v22, %v7418_v24  ;;  %v7432_v32 = vrot.slane %v7431_v1, 4  ;;  %v6539_v8 = vrot.slane %v6525_v45, %v11221_v4 }
 0x729   : > { %v7788_v23 = vsel %vm278_vm1, %v7493_v30, -inf  ;;  %v7426_v61 = vmax.f32 %v7424_v6, %v7425_v0  ;;  %v6540_v48 = vcombine.high %v6532_v3, %v6532_v3  ;;  %v7494_v12 = vsel %vm281_vm2, %v6532_v3, -inf }
 0x72a   : > { %v7414_v28 = vmax.f32 %v7412_v10, %v7413_v13  ;;  %v7420_v41 = vrot.slane %v7419_v14, 2  ;;  %v7433_v39 = vmax.f32 %v7431_v1, %v7432_v32  ;;  %v6541_v58 = vcombine.high %v6539_v8, %v6539_v8 }
 0x72b   : > { %v7427_v2 = vrot.slane %v7426_v61, 2  ;;  %v7495_v62 = vrot.slane %v7494_v12, 4  ;;  %v7501_v15 = vsel %vm281_vm2, %v6540_v48, -inf  ;;  %v7508_v11 = vsel %vm281_vm2, %v6539_v8, -inf }
 0x72c   : > { %v7415_v42 = vrot.slane %v7414_v28, 1  ;;  %v7421_v5 = vmax.f32 %v7419_v14, %v7420_v41  ;;  %v7434_v16 = vrot.slane %v7433_v39, 2  ;;  %v7502_v21 = vrot.slane %v7501_v15, 4  ;;  %v5899_v14 = vld [vmem:[%s10191_s21 + $0xc8] sm:$0xff] }
 0x72d   : > { %v7428_v53 = vmax.f32 %v7426_v61, %v7427_v2  ;;  %v7496_v25 = vmax.f32 %v7494_v12, %v7495_v62  ;;  %v7509_v43 = vrot.slane %v7508_v11, 4  ;;  %v7515_v52 = vsel %vm281_vm2, %v6541_v58, -inf  ;;  %v5902_v62 = vld [vmem:[%s10191_s21 + $0xe0] sm:$0xff] }
 0x72e   : > { %v7416_v27 = vmax.f32 %v7414_v28, %v7415_v42  ;;  %v7422_v49 = vrot.slane %v7421_v5, 1  ;;  %v7435_v63 = vmax.f32 %v7433_v39, %v7434_v16  ;;  %v7503_v44 = vmax.f32 %v7501_v15, %v7502_v21  ;;  %v5904_v39 = vld [vmem:[%s10191_s21 + $0xf0] sm:$0xff] }
 0x72f   : > { %v7429_v19 = vrot.slane %v7428_v53, 1  ;;  %v7497_v29 = vrot.slane %v7496_v25, 2  ;;  %v7510_v37 = vmax.f32 %v7508_v11, %v7509_v43  ;;  %v7516_v34 = vrot.slane %v7515_v52, 4 }
 0x730   : > { %v7423_v47 = vmax.f32 %v7421_v5, %v7422_v49  ;;  %v7436_v31 = vrot.slane %v7435_v63, 1  ;;  %v7778_v60 = vsel %vm278_vm1, %v7416_v27, -inf  ;;  %v7504_v17 = vrot.slane %v7503_v44, 2 }
 0x731   : > { %v7430_v46 = vmax.f32 %v7428_v53, %v7429_v19  ;;  %v7780_v18 = vmax.f32 %v7778_v60, %v11865_v54  ;;  %v7498_v57 = vmax.f32 %v7496_v25, %v7497_v29  ;;  %v7511_v51 = vrot.slane %v7510_v37, 2 }
 0x732   : > { %v7437_v50 = vmax.f32 %v7435_v63, %v7436_v31  ;;  %v7781_v20 = vsel %vm278_vm1, %v7423_v47, -inf  ;;  %v7505_v33 = vmax.f32 %v7503_v44, %v7504_v17  ;;  %v7517_v55 = vmax.f32 %v7515_v52, %v7516_v34 }
 0x733   : > { %v7783_v22 = vmax.f32 %v7781_v20, %v11871_v9  ;;  %v7784_v6 = vsel %vm278_vm1, %v7430_v46, -inf  ;;  %v7499_v45 = vrot.slane %v7498_v57, 1  ;;  %v7512_v10 = vmax.f32 %v7510_v37, %v7511_v51 }
 0x734   : > { %v7786_v24 = vmax.f32 %v7784_v6, %v11874_v35  ;;  %v7787_v30 = vsel %vm278_vm1, %v7437_v50, -inf  ;;  %v7506_v0 = vrot.slane %v7505_v33, 1  ;;  %v7518_v54 = vrot.slane %v7517_v55, 2 }
 0x735   : > { %v7789_v1 = vmax.f32 %v7787_v30, %v7788_v23  ;;  %v7939_v3 = vsel %vm7890_vm13, %v7783_v22, %v7780_v18  ;;  %v7513_v13 = vrot.slane %v7512_v10, 1  ;;  %v5867_v8 = vadd.f32 %v11767_v36, %v11836_v38 }
 0x736   : > { %v7940_v32 = vsel %vm7892_vm14, %v7786_v24, %v7939_v3  ;;  %v7519_v9 = vmax.f32 %v7517_v55, %v7518_v54  ;;  %v7500_v61 = vmax.f32 %v7498_v57, %v7499_v45  ;;  %v7507_v48 = vmax.f32 %v7505_v33, %v7506_v0 }
 0x737   : > { %v11897_v35 = vsel %vm7894_vm15, %v7789_v1, %v7940_v32  ;;  %v5833_v12 = vmul.f32 %v11826_v7, %v11636_v26  ;;  %v7514_v23 = vmax.f32 %v7512_v10, %v7513_v13  ;;  %v5931_v41 = vadd.f32 %v5899_v14, %v5867_v8 }
 0x738   : > { %v7520_v28 = vrot.slane %v7519_v9, 1  ;;  %v5831_v58 = vmul.f32 %v11826_v7, %v11640_v40  ;;  %v5834_v38 = vmul.f32 %v11826_v7, %v11669_v56  ;;  %v5832_v15 = vmul.f32 %v11826_v7, %v11693_v59 }
 0x739   : > { %v5872_v2 = vadd.f32 %v11767_v36, %v5833_v12  ;;  %vm5963_vm9 = vcmp.gt.f32.partialorder %v5931_v41, 0.0  ;;  %v5995_v42 = vmul.f32 0.1, %v5931_v41  ;;  %v11912_v5 = vsel %vm278_vm1, %v7500_v61, -inf }
 0x73a   : > { %v7521_v11 = vmax.f32 %v7519_v9, %v7520_v28  ;;  %v5870_v26 = vadd.f32 %v11767_v36, %v5831_v58  ;;  %v11915_v16 = vsel %vm278_vm1, %v7507_v48, -inf  ;;  %v11918_v21 = vsel %vm278_vm1, %v7514_v23, -inf }
 0x73b   : > { %v5936_v40 = vadd.f32 %v5904_v39, %v5872_v2  ;;  %v6027_v53 = vsel %vm5963_vm9, %v5931_v41, %v5995_v42  ;;  %v11921_v25 = vadd.f32 %v11767_v36, %v5834_v38  ;;  %v11928_v49 = vadd.f32 %v11767_v36, %v5832_v15 }
 0x73c   : > { %v5934_v56 = vadd.f32 %v5902_v62, %v5870_v26  ;;  %v6491_v59 = vcombine.high %v6027_v53, %v6027_v53  ;;  %v6498_v7 = vrot.slane %v6027_v53, %v11221_v4  ;;  %v11925_v52 = vsel %vm278_vm1, %v7521_v11, -inf }
 0x73d   : > { %vm5968_vm0 = vcmp.gt.f32.partialorder %v5936_v40, 0.0  ;;  %v6000_v43 = vmul.f32 0.1, %v5936_v40 }
 0x73e   : > { %vm5966_vm10 = vcmp.gt.f32.partialorder %v5934_v56, 0.0  ;;  %v5998_v27 = vmul.f32 0.1, %v5934_v56  ;;  %v6505_v63 = vrot.slane %v6491_v59, %v11221_v4  ;;  %v6506_v44 = vcombine.high %v6498_v7, %v6498_v7 }
 0x73f   : > { %v7438_v19 = vsel %vm281_vm2, %v6498_v7, -inf  ;;  %v6032_v29 = vsel %vm5968_vm0, %v5936_v40, %v6000_v43 }
 0x740   : > { %v7439_v37 = vrot.slane %v7438_v19, 4  ;;  %v6576_v34 = vcombine.high %v6032_v29, %v6032_v29  ;;  %v6583_v47 = vrot.slane %v6032_v29, %v11221_v4  ;;  %v11933_v31 = vsel %vm5966_vm10, %v5934_v56, %v5998_v27 }
 0x741   : > { %v6507_v60 = vcombine.high %v6505_v63, %v6505_v63  ;;  %v7445_v17 = vsel %vm281_vm2, %v6506_v44, -inf  ;;  %v7452_v46 = vsel %vm281_vm2, %v6505_v63, -inf  ;;  %v6542_v36 = vcombine.high %v11933_v31, %v11933_v31 }
 0x742   : > { %v7440_v18 = vmax.f32 %v7438_v19, %v7439_v37  ;;  %v7446_v57 = vrot.slane %v7445_v17, 4  ;;  %v7453_v51 = vrot.slane %v7452_v46, 4  ;;  %v6590_v50 = vrot.slane %v6576_v34, %v11221_v4 }
 0x743   : > { %v7459_v20 = vsel %vm281_vm2, %v6507_v60, -inf  ;;  %v6591_v33 = vcombine.high %v6583_v47, %v6583_v47  ;;  %v7578_v55 = vsel %vm281_vm2, %v6583_v47, -inf  ;;  %v11944_v22 = vrot.slane %v11933_v31, %v11221_v4 }
 0x744   : > { %v7441_v6 = vrot.slane %v7440_v18, 2  ;;  %v7447_v45 = vmax.f32 %v7445_v17, %v7446_v57  ;;  %v7454_v10 = vmax.f32 %v7452_v46, %v7453_v51  ;;  %v7460_v24 = vrot.slane %v7459_v20, 4  ;;  %v5905_v17 = vld [vmem:[%s10191_s21 + $0xf8] sm:$0xff] }
 0x745   : > { %v6592_v30 = vcombine.high %v6590_v50, %v6590_v50  ;;  %v7579_v0 = vrot.slane %v7578_v55, 4  ;;  %v7585_v54 = vsel %vm281_vm2, %v6591_v33, -inf  ;;  %v7592_v1 = vsel %vm281_vm2, %v6590_v50, -inf  ;;  %v5903_v50 = vld [vmem:[%s10191_s21 + $0xe8] sm:$0xff]  ;;  %s8366_s21 = sshll.u32 %s9992_s28, 10  ;;  %s12036_s28 = scalar_lea.sflag [#allocation5], %s269_s23 }
 0x746   : > { %v7442_v3 = vmax.f32 %v7440_v18, %v7441_v6  ;;  %v7448_v13 = vrot.slane %v7447_v45, 2  ;;  %v7455_v14 = vrot.slane %v7454_v10, 2  ;;  %v7461_v32 = vmax.f32 %v7459_v20, %v7460_v24  ;;  %s12026_s9 = scalar_lea.hbm %s12084_s7, %s8366_s21 }
 0x747   : > { %v7580_v9 = vmax.f32 %v7578_v55, %v7579_v0  ;;  %v7586_v8 = vrot.slane %v7585_v54, 4  ;;  %v7593_v61 = vrot.slane %v7592_v1, 4  ;;  %v7599_v48 = vsel %vm281_vm2, %v6592_v30, -inf }
 0x748   : > { %v7443_v12 = vrot.slane %v7442_v3, 1  ;;  %v7449_v23 = vmax.f32 %v7447_v45, %v7448_v13  ;;  %v7456_v28 = vmax.f32 %v7454_v10, %v7455_v14  ;;  %v7462_v41 = vrot.slane %v7461_v32, 2 }
 0x749   : > { %v7581_v39 = vrot.slane %v7580_v9, 2  ;;  %v7587_v58 = vmax.f32 %v7585_v54, %v7586_v8  ;;  %v7594_v2 = vmax.f32 %v7592_v1, %v7593_v61  ;;  %v7600_v62 = vrot.slane %v7599_v48, 4 }
 0x74a   : > { %v7444_v38 = vmax.f32 %v7442_v3, %v7443_v12  ;;  %v7450_v15 = vrot.slane %v7449_v23, 1  ;;  %v7457_v11 = vrot.slane %v7456_v28, 1  ;;  %v7463_v42 = vmax.f32 %v7461_v32, %v7462_v41 }
 0x74b   : > { %v7582_v26 = vmax.f32 %v7580_v9, %v7581_v39  ;;  %v7588_v40 = vrot.slane %v7587_v58, 2  ;;  %v7595_v53 = vrot.slane %v7594_v2, 2  ;;  %v7601_v56 = vmax.f32 %v7599_v48, %v7600_v62 }
 0x74c   : > { %v7451_v59 = vmax.f32 %v7449_v23, %v7450_v15  ;;  %v7458_v7 = vmax.f32 %v7456_v28, %v7457_v11  ;;  %v7464_v43 = vrot.slane %v7463_v42, 1  ;;  %v7790_v27 = vsel %vm278_vm1, %v7444_v38, -inf }
 0x74d   : > { %v7792_v63 = vmax.f32 %v7790_v27, %v11912_v5  ;;  %v7583_v44 = vrot.slane %v7582_v26, 1  ;;  %v7589_v19 = vmax.f32 %v7587_v58, %v7588_v40  ;;  %v7596_v29 = vmax.f32 %v7594_v2, %v7595_v53 }
 0x74e   : > { %v7465_v37 = vmax.f32 %v7463_v42, %v7464_v43  ;;  %v7793_v34 = vsel %vm278_vm1, %v7451_v59, -inf  ;;  %v7796_v47 = vsel %vm278_vm1, %v7458_v7, -inf  ;;  %v7602_v60 = vrot.slane %v7601_v56, 2 }
 0x74f   : > { %v7795_v46 = vmax.f32 %v7793_v34, %v11915_v16  ;;  %v7798_v18 = vmax.f32 %v7796_v47, %v11918_v21  ;;  %v7942_v57 = vsel %vm7896_vm3, %v7792_v63, %v11897_v35  ;;  %v7584_v51 = vmax.f32 %v7582_v26, %v7583_v44 }
 0x750   : > { %v7799_v5 = vsel %vm278_vm1, %v7465_v37, -inf  ;;  %v7590_v20 = vrot.slane %v7589_v19, 1  ;;  %v7597_v33 = vrot.slane %v7596_v29, 1  ;;  %v7603_v55 = vmax.f32 %v7601_v56, %v7602_v60 }
 0x751   : > { %v7801_v6 = vmax.f32 %v7799_v5, %v11925_v52  ;;  %v7943_v45 = vsel %vm7898_vm4, %v7795_v46, %v7942_v57  ;;  %v6556_v16 = vrot.slane %v6542_v36, %v11221_v4  ;;  %v5937_v21 = vadd.f32 %v5905_v17, %v11921_v25 }
 0x752   : > { %v7944_v35 = vsel %vm7900_vm6, %v7798_v18, %v7943_v45  ;;  %v7591_v10 = vmax.f32 %v7589_v19, %v7590_v20  ;;  %v7604_v24 = vrot.slane %v7603_v55, 1  ;;  %v5935_v30 = vadd.f32 %v5903_v50, %v11928_v49 }
 0x753   : > { %v7945_v0 = vsel %vm7902_vm7, %v7801_v6, %v7944_v35  ;;  %v6557_v52 = vcombine.high %v11944_v22, %v11944_v22  ;;  %v6558_v54 = vcombine.high %v6556_v16, %v6556_v16  ;;  %v7522_v1 = vsel %vm281_vm2, %v11944_v22, -inf }
 0x754   : > { %7967 = vst.msk [vmem:[%s11345_s8 + $0x30] sm:$0xff] %vm278_vm1, %v7945_v0  ;;  %v7598_v31 = vmax.f32 %v7596_v29, %v7597_v33  ;;  %v7605_v36 = vmax.f32 %v7603_v55, %v7604_v24  ;;  %v11977_v25 = vsel %vm278_vm1, %v7584_v51, -inf  ;;  %v7523_v3 = vrot.slane %v7522_v1, 4 }
 0x755   : > { %v11980_v13 = vsel %vm278_vm1, %v7591_v10, -inf  ;;  %v7529_v49 = vsel %vm281_vm2, %v6557_v52, -inf  ;;  %v7536_v14 = vsel %vm281_vm2, %v6556_v16, -inf  ;;  %v7543_v32 = vsel %vm281_vm2, %v6558_v54, -inf }
 0x756   : > { %v7524_v9 = vmax.f32 %v7522_v1, %v7523_v3  ;;  %v7530_v8 = vrot.slane %v7529_v49, 4  ;;  %v7537_v22 = vrot.slane %v7536_v14, 4  ;;  %vm5969_vm11 = vcmp.gt.f32.partialorder %v5937_v21, 0.0 }
 0x757   : > { %v7544_v61 = vrot.slane %v7543_v32, 4  ;;  %v6001_v48 = vmul.f32 0.1, %v5937_v21  ;;  %vm5967_vm12 = vcmp.gt.f32.partialorder %v5935_v30, 0.0  ;;  %v5999_v12 = vmul.f32 0.1, %v5935_v30 }
 0x758   : > { %v7809_v23 = vsel %vm278_vm1, %v7598_v31, -inf  ;;  %v7525_v28 = vrot.slane %v7524_v9, 2  ;;  %v7531_v41 = vmax.f32 %v7529_v49, %v7530_v8  ;;  %v7538_v39 = vmax.f32 %v7536_v14, %v7537_v22 }
 0x759   : > { %v11987_v58 = vsel %vm278_vm1, %v7605_v36, -inf  ;;  %v7545_v2 = vmax.f32 %v7543_v32, %v7544_v61  ;;  %v6033_v62 = vsel %vm5969_vm11, %v5937_v21, %v6001_v48  ;;  %v6031_v38 = vsel %vm5967_vm12, %v5935_v30, %v5999_v12 }
 0x75a   : > { %v7526_v15 = vmax.f32 %v7524_v9, %v7525_v28  ;;  %v7532_v11 = vrot.slane %v7531_v41, 2  ;;  %v7539_v42 = vrot.slane %v7538_v39, 2  ;;  %v6593_v26 = vcombine.high %v6033_v62, %v6033_v62 }
 0x75b   : > { %v7546_v40 = vrot.slane %v7545_v2, 2  ;;  %v6600_v53 = vrot.slane %v6033_v62, %v11221_v4  ;;  %v6559_v56 = vcombine.high %v6031_v38, %v6031_v38  ;;  %v6566_v59 = vrot.slane %v6031_v38, %v11221_v4 }
 0x75c   : > { %v7527_v7 = vrot.slane %v7526_v15, 1  ;;  %v7533_v43 = vmax.f32 %v7531_v41, %v7532_v11  ;;  %v7540_v27 = vmax.f32 %v7538_v39, %v7539_v42  ;;  %v6607_v63 = vrot.slane %v6593_v26, %v11221_v4 }
 0x75d   : > { %v7547_v44 = vmax.f32 %v7545_v2, %v7546_v40  ;;  %v6608_v19 = vcombine.high %v6600_v53, %v6600_v53  ;;  %v7606_v29 = vsel %vm281_vm2, %v6600_v53, -inf  ;;  %v6573_v37 = vrot.slane %v6559_v56, %v11221_v4 }
 0x75e   : > { %v7528_v34 = vmax.f32 %v7526_v15, %v7527_v7  ;;  %v7534_v47 = vrot.slane %v7533_v43, 1  ;;  %v7541_v60 = vrot.slane %v7540_v27, 1  ;;  %v6609_v17 = vcombine.high %v6607_v63, %v6607_v63 }
 0x75f   : > { %v7548_v46 = vrot.slane %v7547_v44, 1  ;;  %v7607_v18 = vrot.slane %v7606_v29, 4  ;;  %v7613_v57 = vsel %vm281_vm2, %v6608_v19, -inf  ;;  %v7620_v51 = vsel %vm281_vm2, %v6607_v63, -inf }
 0x760   : > { %v7535_v50 = vmax.f32 %v7533_v43, %v7534_v47  ;;  %v7542_v5 = vmax.f32 %v7540_v27, %v7541_v60  ;;  %v7802_v20 = vsel %vm278_vm1, %v7528_v34, -inf  ;;  %v7614_v33 = vrot.slane %v7613_v57, 4 }
 0x761   : > { %v7549_v55 = vmax.f32 %v7547_v44, %v7548_v46  ;;  %v7804_v6 = vmax.f32 %v7802_v20, %v11977_v25  ;;  %v7608_v45 = vmax.f32 %v7606_v29, %v7607_v18  ;;  %v7621_v4 = vrot.slane %v7620_v51, 4 }
 0x762   : > { %v7805_v16 = vsel %vm278_vm1, %v7535_v50, -inf  ;;  %v7808_v21 = vsel %vm278_vm1, %v7542_v5, -inf  ;;  %v7615_v35 = vmax.f32 %v7613_v57, %v7614_v33  ;;  %v7627_v10 = vsel %vm281_vm2, %v6609_v17, -inf }
 0x763   : > { %v7807_v24 = vmax.f32 %v7805_v16, %v11980_v13  ;;  %v7810_v30 = vmax.f32 %v7808_v21, %v7809_v23  ;;  %v7811_v0 = vsel %vm278_vm1, %v7549_v55, -inf  ;;  %v7609_v52 = vrot.slane %v7608_v45, 2 }
 0x764   : > { %v7813_v54 = vmax.f32 %v7811_v0, %v11987_v58  ;;  %v7616_v1 = vrot.slane %v7615_v35, 2  ;;  %v7622_v31 = vmax.f32 %v7620_v51, %v7621_v4  ;;  %v7628_v36 = vrot.slane %v7627_v10, 4 }
 0x765   : > { %v7946_v25 = vsel %vm7890_vm13, %v7807_v24, %v7804_v6  ;;  %v7610_v3 = vmax.f32 %v7608_v45, %v7609_v52  ;;  %v6574_v49 = vcombine.high %v6566_v59, %v6566_v59  ;;  %v6575_v14 = vcombine.high %v6573_v37, %v6573_v37 }
 0x766   : > { %v7947_v32 = vsel %vm7892_vm14, %v7810_v30, %v7946_v25  ;;  %v7617_v9 = vmax.f32 %v7615_v35, %v7616_v1  ;;  %v7623_v8 = vrot.slane %v7622_v31, 2  ;;  %v7629_v22 = vmax.f32 %v7627_v10, %v7628_v36 }
 0x767   : > { %v7550_v13 = vsel %vm281_vm2, %v6566_v59, -inf  ;;  %v7557_v61 = vsel %vm281_vm2, %v6574_v49, -inf  ;;  %v7564_v48 = vsel %vm281_vm2, %v6573_v37, -inf  ;;  %v7571_v58 = vsel %vm281_vm2, %v6575_v14, -inf }
 0x768   : > { %v7624_v12 = vmax.f32 %v7622_v31, %v7623_v8  ;;  %v7630_v23 = vrot.slane %v7629_v22, 2  ;;  %v7551_v28 = vrot.slane %v7550_v13, 4  ;;  %v7558_v41 = vrot.slane %v7557_v61, 4 }
 0x769   : > { %v7565_v39 = vrot.slane %v7564_v48, 4  ;;  %v7611_v2 = vrot.slane %v7610_v3, 1  ;;  %v7618_v62 = vrot.slane %v7617_v9, 1  ;;  %v7572_v40 = vrot.slane %v7571_v58, 4 }
 0x76a   : > { %v7631_v38 = vmax.f32 %v7629_v22, %v7630_v23  ;;  %v7552_v15 = vmax.f32 %v7550_v13, %v7551_v28  ;;  %v7625_v11 = vrot.slane %v7624_v12, 1  ;;  %v7559_v42 = vmax.f32 %v7557_v61, %v7558_v41 }
 0x76b   : > { %v7566_v26 = vmax.f32 %v7564_v48, %v7565_v39  ;;  %v7573_v43 = vmax.f32 %v7571_v58, %v7572_v40  ;;  %v7948_v27 = vsel %vm7894_vm15, %v7813_v54, %v7947_v32  ;;  %v7612_v63 = vmax.f32 %v7610_v3, %v7611_v2 }
 0x76c   : > { %v7632_v53 = vrot.slane %v7631_v38, 1  ;;  %v7553_v56 = vrot.slane %v7552_v15, 2  ;;  %v7560_v59 = vrot.slane %v7559_v42, 2  ;;  %v7619_v44 = vmax.f32 %v7617_v9, %v7618_v62 }
 0x76d   : > { %v7567_v7 = vrot.slane %v7566_v26, 2  ;;  %v7626_v29 = vmax.f32 %v7624_v12, %v7625_v11  ;;  %v7574_v47 = vrot.slane %v7573_v43, 2  ;;  %v7815_v51 = vsel %vm278_vm1, %v7612_v63, -inf }
 0x76e   : > { %v7554_v19 = vmax.f32 %v7552_v15, %v7553_v56  ;;  %v7561_v37 = vmax.f32 %v7559_v42, %v7560_v59  ;;  %v7633_v60 = vmax.f32 %v7631_v38, %v7632_v53  ;;  %v7818_v50 = vsel %vm278_vm1, %v7619_v44, -inf }
 0x76f   : > { %v7568_v34 = vmax.f32 %v7566_v26, %v7567_v7  ;;  %v7575_v57 = vmax.f32 %v7573_v43, %v7574_v47  ;;  %v7821_v20 = vsel %vm278_vm1, %v7626_v29, -inf }
 0x770   : > { %v7555_v17 = vrot.slane %v7554_v19, 1  ;;  %v7562_v46 = vrot.slane %v7561_v37, 1  ;;  %v7824_v45 = vsel %vm278_vm1, %v7633_v60, -inf }
 0x771   : > { %v7569_v18 = vrot.slane %v7568_v34, 1  ;;  %v7576_v6 = vrot.slane %v7575_v57, 1 }
 0x772   : > { %v7556_v5 = vmax.f32 %v7554_v19, %v7555_v17  ;;  %v7563_v33 = vmax.f32 %v7561_v37, %v7562_v46 }
 0x773   : > { %v7570_v55 = vmax.f32 %v7568_v34, %v7569_v18  ;;  %v7577_v16 = vmax.f32 %v7575_v57, %v7576_v6 }
 0x774   : > { %v7814_v4 = vsel %vm278_vm1, %v7556_v5, -inf  ;;  %v7817_v35 = vsel %vm278_vm1, %v7563_v33, -inf }
 0x775   : > { %v7816_v21 = vmax.f32 %v7814_v4, %v7815_v51  ;;  %v7820_v10 = vsel %vm278_vm1, %v7570_v55, -inf  ;;  %v7819_v24 = vmax.f32 %v7817_v35, %v7818_v50  ;;  %v7823_v0 = vsel %vm278_vm1, %v7577_v16, -inf }
 0x776   : > { %v7822_v30 = vmax.f32 %v7820_v10, %v7821_v20  ;;  %v7825_v54 = vmax.f32 %v7823_v0, %v7824_v45 }
 0x777   : > { %v7949_v52 = vsel %vm7896_vm3, %v7816_v21, %v7948_v27 }
 0x778   : > { %v7950_v1 = vsel %vm7898_vm4, %v7819_v24, %v7949_v52 }
 0x779   : > { %v7951_v31 = vsel %vm7900_vm6, %v7822_v30, %v7950_v1 }
 0x77a   : > { %v7952_v36 = vsel %vm7902_vm7, %v7825_v54, %v7951_v31 }
 0x77b   : > { %7968 = vst.msk [vmem:[%s11345_s8 + $0x38] sm:$0xff] %vm278_vm1, %v7952_v36 }
 0x77c   : > { %9875 = shalt.err (!%p9872_p3)
}
 0x77d   : > { %s9876_s23 = scalar_lea.hbm %s12026_s9, 1024  ;;  %s9880_s18 = scalar_lea.hbm %s12084_s7, 2048 }
 0x77e   : > { %p9877_p4 = scmp.ne.s32.totalorder %s12026_s9, %s9876_s23  ;;  %p9881_p9 = scmp.lt.u32.totalorder %s12026_s9, %s12084_s7 }
 0x77f   : > { %p9882_p10 = scmp.lt.u32.totalorder %s9880_s18, %s9876_s23  ;;  %p9884_p12 = scmp.lt.u32.totalorder %s9876_s23, %s12026_s9 }
 0x780   : > { %p9878_p7 = pnand %p9877_p4, %p10009_p5 }
 0x781   : > { %p9883_p11 = por %p9882_p10, %p9881_p9 }
 0x782   : > { %p9879_p8 = pneg %p9878_p7 }
 0x783   : > { %p9885_p13 = por %p9884_p12, %p9883_p11 }
 0x785   : > { %p9886_p0 = pnand %p9885_p13, %p9879_p8 }
 0x787   : > { %9889 = shalt.err (!%p9886_p0)
}
 0x788   : > { %s9929_s22 = smov 128   ;;  %s9930_s29 = smov 8  }
 0x789   : > { %9815 = dma.vmem_to_hbm [thread:$0]  (%p10009_p5), %s12028_s20, 1024, %s12026_s9, %s12036_s28, %s9929_s22, %s9929_s22, %s9930_s29  }
 0x78a PF: > { %p9821_p1 = scmp.ge.s32.totalorder %s9924_s27, 2  ;;  %s7998_s13 = sand.u32 1, %s9912_s24  }
 0x78b   : > { %s7999_s14 = scalar_lea.sflag [#allocation5], %s7998_s13 }
 0x78c   : > { %p9818_p2 = pnand %p9821_p1, %p10013_p6 }
 0x78e   : > { %9907 = dma.done.wait (!%p9818_p2), %s7999_s14, 1024  }
 0x78f   : > { %9909 = vsyncadd (!%p9818_p2), %s7999_s14, 4294966272  ;;  %p17_p3 = scmp.ge.s32.totalorder %s9996_s30, 4   ;;  %s12087_s24 = smov %s9916_s25 }
 0x790   : > { %s12088_s25 = smov %s9920_s26  ;;  %s12089_s26 = smov %s10007_s10 }
 0x791   : > { %s12090_s27 = smov %s9996_s30  ;;  %19 = sbr.rel (!%p17_p3) target bundleno = 3 (0x3), region = 105 }
 0x798   :  { %8004 = vsyncpa [#allocation5], 1 }
 0x799   :  { %8006 = vsyncpa [#allocation5 + $0x1], 1 }

</bundles_post_ra>
